<compile_context>
chip_gen: v7x
topology: tpu7x:2x2x1
jax: 0.10.0
libtpu: 0.0.40
codegen_flags: <defaults>
</compile_context>

<pallas_src>
import functools
import math

import jax
import jax.numpy as jnp
from jax.experimental import pallas as pl
from jax.experimental.pallas import tpu as pltpu


# ----------------------------- in-kernel helpers -----------------------------

def _linear_nt(x, w):
    """x @ w.T with f32 accumulation (PyTorch nn.Linear weight convention)."""
    return jax.lax.dot_general(
        x, w, (((1,), (1,)), ((), ())), preferred_element_type=jnp.float32)


def _layer_norm(x, gamma, beta, eps=1e-5):
    mean = jnp.mean(x, axis=-1, keepdims=True)
    var = jnp.mean((x - mean) ** 2, axis=-1, keepdims=True)
    return (x - mean) * jax.lax.rsqrt(var + eps) * gamma + beta


def _mh_attention(q, k, v, mask, ctx_ref, *, nb, tq, tk, heads, head_dim, fill):
    """Multi-head attention core.

    q: (nb*tq, E) already projected AND pre-scaled by 1/sqrt(E);
    k, v: (nb*tk, E) already projected; mask: (1 or nb, tq, tk).
    Per-head contexts are written into ctx_ref (nb*tq, E) so the caller can do
    the output projection as a single full-width matmul against Wo.
    """
    e_dim = heads * head_dim
    q3 = q.reshape(nb, tq, e_dim)
    k3 = k.reshape(nb, tk, e_dim)
    v3 = v.reshape(nb, tk, e_dim)
    masked = mask == 0                      # hoisted: one compare per attention
    for h in range(heads):
        sl = slice(h * head_dim, (h + 1) * head_dim)
        energy = jnp.einsum('nqd,nkd->nqk', q3[:, :, sl], k3[:, :, sl],
                            preferred_element_type=jnp.float32)
        # Reference uses masked_fill(mask == 0, 1e-20) (tiny positive, NOT -inf);
        # energy here already carries the 1/sqrt(E) scale, so the fill does too.
        energy = jnp.where(masked, fill, energy)
        m = jnp.max(energy, axis=-1, keepdims=True)
        p = jnp.exp(energy - m)
        att = p * pl.reciprocal(jnp.sum(p, axis=-1, keepdims=True), approx=True)
        ctx_h = jnp.einsum('nqk,nkd->nqd', att, v3[:, :, sl],
                           preferred_element_type=jnp.float32)
        ctx_ref[:, sl] = ctx_h.reshape(nb * tq, head_dim)
    return ctx_ref[...]


# --------------------------------- kernel ------------------------------------

def decoder_block_kernel(
        x_ref, val_ref, key_ref, smask_ref, tmask_ref,
        wq1_ref, wk1_ref, wv1_ref, wo1_ref, bo1_ref, g0_ref, b0_ref,
        wq2_ref, wk2_ref, wv2_ref, wo2_ref, bo2_ref, g1_ref, b1_ref,
        wf1_ref, bf1_ref, wf2_ref, bf2_ref, g2_ref, b2_ref,
        out_ref, ctx_ref,
        *, nb, t, s, heads, head_dim, fill):
    x2 = x_ref[...]                      # (NB*T, E) decoder input, flattened
    enc_v = val_ref[...]                 # (NB*S, E) encoder output (value)
    enc_k = key_ref[...]                 # (NB*S, E) encoder output (key)
    tmask = tmask_ref[...]               # (1, T, T)  causal mask (shared)
    smask = smask_ref[...]               # (NB, T, S) source padding mask

    # ---- masked self attention: att = MHA(x, x, x, trg_mask) ----
    q = _linear_nt(x2, wq1_ref[...])     # block-diag weight, pre-scaled 1/sqrt(E)
    k = _linear_nt(x2, wk1_ref[...])
    v = _linear_nt(x2, wv1_ref[...])
    ctx = _mh_attention(q, k, v, tmask, ctx_ref,
                        nb=nb, tq=t, tk=t, heads=heads, head_dim=head_dim,
                        fill=fill)
    att = _linear_nt(ctx, wo1_ref[...]) + bo1_ref[0]
    # TODO(synk): nn.Dropout is a no-op here (reference Transformer uses drop=0).
    query = _layer_norm(att + x2, g0_ref[0], b0_ref[0])

    # ---- cross attention: TransformerBlock.att(enc, enc, query, src_mask) ----
    q2 = _linear_nt(query, wq2_ref[...])
    k2 = _linear_nt(enc_k, wk2_ref[...])
    v2 = _linear_nt(enc_v, wv2_ref[...])
    ctx2 = _mh_attention(q2, k2, v2, smask, ctx_ref,
                         nb=nb, tq=t, tk=s, heads=heads, head_dim=head_dim,
                         fill=fill)
    att2 = _linear_nt(ctx2, wo2_ref[...]) + bo2_ref[0]
    xcb = _layer_norm(att2 + query, g1_ref[0], b1_ref[0])

    # ---- feed forward: Linear(E,F) -> ReLU -> Linear(F,E) ----
    hid = jnp.maximum(_linear_nt(xcb, wf1_ref[...]) + bf1_ref[0], 0.0)
    ff = _linear_nt(hid, wf2_ref[...]) + bf2_ref[0]
    out_ref[...] = _layer_norm(ff + xcb, g2_ref[0], b2_ref[0])


# --------------------------------- wrapper -----------------------------------

def _block_diag(w, heads):
    """Host-side: replicate the per-head (D,D) weight into a block-diag (E,E)."""
    d = w.shape[0]
    e = d * heads
    out = jnp.zeros((e, e), w.dtype)
    for h in range(heads):
        out = out.at[h * d:(h + 1) * d, h * d:(h + 1) * d].set(w)
    return out


def decoder_block(x, value, key, src_mask, trg_mask, params, heads,
                  block_batch=None):
    N, T, E = x.shape
    S = value.shape[1]
    D = E // heads
    inv_scale = 1.0 / math.sqrt(E)

    if block_batch is None:
        # Fold batch rows so the matmul M dim (NB*T) is reasonably large while
        # staying a divisor of N.  (On v7x at production batch sizes, prefer an
        # even, >=2 step grid so both TensorCores stay busy.)
        block_batch = 1
        for nb in range(1, N + 1):
            if N % nb == 0 and nb * T <= 256:
                block_batch = nb
    NB = block_batch
    G = N // NB

    # Host-side weight prep: block-diagonal Q/K/V (fold softmax scale into Q).
    wq1b = _block_diag(params["wq1"], heads) * inv_scale
    wk1b = _block_diag(params["wk1"], heads)
    wv1b = _block_diag(params["wv1"], heads)
    wq2b = _block_diag(params["wq2"], heads) * inv_scale
    wk2b = _block_diag(params["wk2"], heads)
    wv2b = _block_diag(params["wv2"], heads)

    weights = [
        wq1b, wk1b, wv1b, params["wo1"], params["bo1"], params["g0"], params["b0"],
        wq2b, wk2b, wv2b, params["wo2"], params["bo2"], params["g1"], params["b1"],
        params["wf1"], params["bf1"], params["wf2"], params["bf2"],
        params["g2"], params["b2"],
    ]

    # Flatten activations host-side so the kernel sees (rows, E) tiles directly.
    x2d = x.reshape(N * T, E)
    v2d = value.reshape(N * S, E)
    k2d = key.reshape(N * S, E)

    # Causal mask is identical across the batch: pass it once as (1, T, T).
    if trg_mask.ndim == 2:
        tmask3 = trg_mask.reshape(1, T, T)
    else:
        tmask3 = trg_mask[:1]

    in_specs = [
        pl.BlockSpec((NB * T, E), lambda b: (b, 0)),        # x
        pl.BlockSpec((NB * S, E), lambda b: (b, 0)),        # value (enc_out)
        pl.BlockSpec((NB * S, E), lambda b: (b, 0)),        # key   (enc_out)
        pl.BlockSpec((NB, T, S), lambda b: (b, 0, 0)),      # src_mask
        pl.BlockSpec((1, T, T), lambda b: (0, 0, 0)),       # trg_mask (shared)
    ]
    for w in weights:
        in_specs.append(pl.BlockSpec(w.shape, lambda b, nd=w.ndim: (0,) * nd))

    kernel = functools.partial(
        decoder_block_kernel, nb=NB, t=T, s=S, heads=heads, head_dim=D,
        fill=1e-20 * inv_scale)

    out_flat = pl.pallas_call(
        kernel,
        out_shape=jax.ShapeDtypeStruct((N * T, E), jnp.float32),
        grid=(G,),
        in_specs=in_specs,
        out_specs=pl.BlockSpec((NB * T, E), lambda b: (b, 0)),
        scratch_shapes=[pltpu.VMEM((NB * T, E), jnp.float32)],
        compiler_params=pltpu.CompilerParams(
            dimension_semantics=("parallel",),
            vmem_limit_bytes=48 * 1024 * 1024),   # safe on v5e/v6e and v7x (64MiB)
    )(x2d, v2d, k2d, src_mask, tmask3, *weights)
    return out_flat.reshape(N, T, E)


# ------------------------------ JAX reference ---------------------------------

def _ref_mha(q, k, v, mask, wq, wk, wv, wo, bo, heads, head_dim, embed):
    N, Tq, E = q.shape
    Tk = k.shape[1]
    P = jax.lax.Precision.HIGHEST
    qh = jnp.einsum("nqhd,od->nqho", q.reshape(N, Tq, heads, head_dim), wq, precision=P)
    kh = jnp.einsum("nkhd,od->nkho", k.reshape(N, Tk, heads, head_dim), wk, precision=P)
    vh = jnp.einsum("nkhd,od->nkho", v.reshape(N, Tk, heads, head_dim), wv, precision=P)
    energy = jnp.einsum("nqhd,nkhd->nhqk", qh, kh, precision=P)
    energy = jnp.where(mask[:, None, :, :] == 0, jnp.float32(1e-20), energy)
    att = jax.nn.softmax(energy / math.sqrt(embed), axis=3)
    out = jnp.einsum("nhqk,nkhd->nqhd", att, vh, precision=P).reshape(N, Tq, E)
    return jnp.einsum("nqe,oe->nqo", out, wo, precision=P) + bo


def _ref_ln(x, g, b, eps=1e-5):
    mean = jnp.mean(x, axis=-1, keepdims=True)
    var = jnp.mean((x - mean) ** 2, axis=-1, keepdims=True)
    return (x - mean) / jnp.sqrt(var + eps) * g + b


def ref_decoder_block(x, value, key, src_mask, trg_mask, p, heads):
    E = x.shape[-1]
    D = E // heads
    P = jax.lax.Precision.HIGHEST
    att = _ref_mha(x, x, x, trg_mask, p["wq1"], p["wk1"], p["wv1"],
                   p["wo1"], p["bo1"][0], heads, D, E)
    query = _ref_ln(att + x, p["g0"][0], p["b0"][0])
    att2 = _ref_mha(query, key, value, src_mask, p["wq2"], p["wk2"], p["wv2"],
                    p["wo2"], p["bo2"][0], heads, D, E)
    xcb = _ref_ln(att2 + query, p["g1"][0], p["b1"][0])
    h = jax.nn.relu(jnp.einsum("nqe,fe->nqf", xcb, p["wf1"], precision=P) + p["bf1"][0])
    ff = jnp.einsum("nqf,ef->nqe", h, p["wf2"], precision=P) + p["bf2"][0]
    return _ref_ln(ff + xcb, p["g2"][0], p["b2"][0])


# ----------------------------------- main -------------------------------------

if __name__ == "__main__":
    # small shapes consistent with the module: batch=2, trg_len=8, src_len=8,
    # embed=64, heads=4 (head_dim=16), forward_exp=4
    N, T, S, E, H = 2, 8, 8, 64, 4
    F = 4 * E
    D = E // H

    rng = jax.random.PRNGKey(0)
    ks = jax.random.split(rng, 16)

    def nrm(k, shape, scale=0.1):
        return jax.random.normal(k, shape, jnp.float32) * scale

    params = {
        # self-attention (DecoderBlock.att)
        "wq1": nrm(ks[0], (D, D)), "wk1": nrm(ks[1], (D, D)),
        "wv1": nrm(ks[2], (D, D)), "wo1": nrm(ks[3], (E, E)),
        "bo1": jnp.full((1, E), 0.01, jnp.float32),
        # DecoderBlock.norm
        "g0": jnp.ones((1, E), jnp.float32), "b0": jnp.zeros((1, E), jnp.float32),
        # cross-attention (TransformerBlock.att)
        "wq2": nrm(ks[4], (D, D)), "wk2": nrm(ks[5], (D, D)),
        "wv2": nrm(ks[6], (D, D)), "wo2": nrm(ks[7], (E, E)),
        "bo2": jnp.full((1, E), 0.02, jnp.float32),
        # TransformerBlock.norm1
        "g1": jnp.ones((1, E), jnp.float32), "b1": jnp.zeros((1, E), jnp.float32),
        # feed forward
        "wf1": nrm(ks[8], (F, E)), "bf1": nrm(ks[9], (1, F), 0.01),
        "wf2": nrm(ks[10], (E, F)), "bf2": nrm(ks[11], (1, E), 0.01),
        # TransformerBlock.norm2
        "g2": jnp.ones((1, E), jnp.float32), "b2": jnp.zeros((1, E), jnp.float32),
    }

    x = nrm(ks[12], (N, T, E), 1.0)          # decoder activations
    enc_out = nrm(ks[13], (N, S, E), 1.0)    # encoder output; value = key = enc_out
    value = enc_out
    key = enc_out

    # trg_mask = tril(ones) — causal, shared across the batch (passed once)
    trg_mask2d = jnp.tril(jnp.ones((T, T), jnp.float32))
    # src_mask = (src != pad_idx) broadcast to (N, T, S)
    src_tokens = jnp.array([[1, 5, 6, 4, 3, 9, 5, 0],
                            [1, 8, 7, 3, 4, 5, 6, 2]], jnp.int32)
    src_mask = jnp.broadcast_to(
        (src_tokens != 0).astype(jnp.float32)[:, None, :], (N, T, S))

    out = decoder_block(x, value, key, src_mask, trg_mask2d, params, heads=H)
    out = jax.block_until_ready(out)

    trg_mask_full = jnp.broadcast_to(trg_mask2d, (N, T, T))
    ref = ref_decoder_block(x, value, key, src_mask, trg_mask_full, params, heads=H)
    assert out.shape == (N, T, E)
    assert bool(jnp.all(jnp.isfinite(out)))
    max_err = float(jnp.max(jnp.abs(out - ref)))
    assert bool(jnp.allclose(out, ref, atol=1e-2, rtol=1e-2)), max_err
    print("KERNEL_OK")
</pallas_src>

<mosaic_0001>
module attributes {stable_mosaic.version = 11 : i64} {
  func.func @decoder_block_kernel(%arg0: i32, %arg1: memref<16x64xf32, #tpu.memory_space<vmem>>, %arg2: memref<16x64xf32, #tpu.memory_space<vmem>>, %arg3: memref<16x64xf32, #tpu.memory_space<vmem>>, %arg4: memref<2x8x8xf32, #tpu.memory_space<vmem>>, %arg5: memref<1x8x8xf32, #tpu.memory_space<vmem>>, %arg6: memref<64x64xf32, #tpu.memory_space<vmem>>, %arg7: memref<64x64xf32, #tpu.memory_space<vmem>>, %arg8: memref<64x64xf32, #tpu.memory_space<vmem>>, %arg9: memref<64x64xf32, #tpu.memory_space<vmem>>, %arg10: memref<1x64xf32, #tpu.memory_space<vmem>>, %arg11: memref<1x64xf32, #tpu.memory_space<vmem>>, %arg12: memref<1x64xf32, #tpu.memory_space<vmem>>, %arg13: memref<64x64xf32, #tpu.memory_space<vmem>>, %arg14: memref<64x64xf32, #tpu.memory_space<vmem>>, %arg15: memref<64x64xf32, #tpu.memory_space<vmem>>, %arg16: memref<64x64xf32, #tpu.memory_space<vmem>>, %arg17: memref<1x64xf32, #tpu.memory_space<vmem>>, %arg18: memref<1x64xf32, #tpu.memory_space<vmem>>, %arg19: memref<1x64xf32, #tpu.memory_space<vmem>>, %arg20: memref<256x64xf32, #tpu.memory_space<vmem>>, %arg21: memref<1x256xf32, #tpu.memory_space<vmem>>, %arg22: memref<64x256xf32, #tpu.memory_space<vmem>>, %arg23: memref<1x64xf32, #tpu.memory_space<vmem>>, %arg24: memref<1x64xf32, #tpu.memory_space<vmem>>, %arg25: memref<1x64xf32, #tpu.memory_space<vmem>>, %arg26: memref<16x64xf32, #tpu.memory_space<vmem>>, %arg27: memref<16x64xf32, #tpu.memory_space<vmem>>) attributes {dimension_semantics = [#tpu.dimension_semantics<parallel>], iteration_bounds = array<i64: 1>, scalar_prefetch = 0 : i64, scratch_operands = 1 : i64, tpu.core_type = #tpu.core_type<tc>, window_params = [{transform_indices = @transform_0, window_bounds = array<i64: 16, 64>}, {transform_indices = @transform_1, window_bounds = array<i64: 16, 64>}, {transform_indices = @transform_2, window_bounds = array<i64: 16, 64>}, {transform_indices = @transform_3, window_bounds = array<i64: 2, 8, 8>}, {pipeline_mode = #tpu.pipeline_mode<synchronous>, transform_indices = @transform_4, window_bounds = array<i64: 1, 8, 8>}, {pipeline_mode = #tpu.pipeline_mode<synchronous>, transform_indices = @transform_5, window_bounds = array<i64: 64, 64>}, {pipeline_mode = #tpu.pipeline_mode<synchronous>, transform_indices = @transform_6, window_bounds = array<i64: 64, 64>}, {pipeline_mode = #tpu.pipeline_mode<synchronous>, transform_indices = @transform_7, window_bounds = array<i64: 64, 64>}, {pipeline_mode = #tpu.pipeline_mode<synchronous>, transform_indices = @transform_8, window_bounds = array<i64: 64, 64>}, {pipeline_mode = #tpu.pipeline_mode<synchronous>, transform_indices = @transform_9, window_bounds = array<i64: 1, 64>}, {pipeline_mode = #tpu.pipeline_mode<synchronous>, transform_indices = @transform_10, window_bounds = array<i64: 1, 64>}, {pipeline_mode = #tpu.pipeline_mode<synchronous>, transform_indices = @transform_11, window_bounds = array<i64: 1, 64>}, {pipeline_mode = #tpu.pipeline_mode<synchronous>, transform_indices = @transform_12, window_bounds = array<i64: 64, 64>}, {pipeline_mode = #tpu.pipeline_mode<synchronous>, transform_indices = @transform_13, window_bounds = array<i64: 64, 64>}, {pipeline_mode = #tpu.pipeline_mode<synchronous>, transform_indices = @transform_14, window_bounds = array<i64: 64, 64>}, {pipeline_mode = #tpu.pipeline_mode<synchronous>, transform_indices = @transform_15, window_bounds = array<i64: 64, 64>}, {pipeline_mode = #tpu.pipeline_mode<synchronous>, transform_indices = @transform_16, window_bounds = array<i64: 1, 64>}, {pipeline_mode = #tpu.pipeline_mode<synchronous>, transform_indices = @transform_17, window_bounds = array<i64: 1, 64>}, {pipeline_mode = #tpu.pipeline_mode<synchronous>, transform_indices = @transform_18, window_bounds = array<i64: 1, 64>}, {pipeline_mode = #tpu.pipeline_mode<synchronous>, transform_indices = @transform_19, window_bounds = array<i64: 256, 64>}, {pipeline_mode = #tpu.pipeline_mode<synchronous>, transform_indices = @transform_20, window_bounds = array<i64: 1, 256>}, {pipeline_mode = #tpu.pipeline_mode<synchronous>, transform_indices = @transform_21, window_bounds = array<i64: 64, 256>}, {pipeline_mode = #tpu.pipeline_mode<synchronous>, transform_indices = @transform_22, window_bounds = array<i64: 1, 64>}, {pipeline_mode = #tpu.pipeline_mode<synchronous>, transform_indices = @transform_23, window_bounds = array<i64: 1, 64>}, {pipeline_mode = #tpu.pipeline_mode<synchronous>, transform_indices = @transform_24, window_bounds = array<i64: 1, 64>}, {transform_indices = @transform_25, window_bounds = array<i64: 16, 64>}]} {
    %c0 = arith.constant 0 : index
    %c0_0 = arith.constant 0 : index
    %0 = vector.load %arg1[%c0, %c0_0] : memref<16x64xf32, #tpu.memory_space<vmem>>, vector<16x64xf32>
    %c0_1 = arith.constant 0 : index
    %c0_2 = arith.constant 0 : index
    %1 = vector.load %arg2[%c0_1, %c0_2] : memref<16x64xf32, #tpu.memory_space<vmem>>, vector<16x64xf32>
    %c0_3 = arith.constant 0 : index
    %c0_4 = arith.constant 0 : index
    %2 = vector.load %arg3[%c0_3, %c0_4] : memref<16x64xf32, #tpu.memory_space<vmem>>, vector<16x64xf32>
    %c0_5 = arith.constant 0 : index
    %c0_6 = arith.constant 0 : index
    %c0_7 = arith.constant 0 : index
    %3 = vector.load %arg5[%c0_5, %c0_6, %c0_7] : memref<1x8x8xf32, #tpu.memory_space<vmem>>, vector<1x8x8xf32>
    %c0_8 = arith.constant 0 : index
    %c0_9 = arith.constant 0 : index
    %c0_10 = arith.constant 0 : index
    %4 = vector.load %arg4[%c0_8, %c0_9, %c0_10] : memref<2x8x8xf32, #tpu.memory_space<vmem>>, vector<2x8x8xf32>
    %c0_11 = arith.constant 0 : index
    %c0_12 = arith.constant 0 : index
    %5 = vector.load %arg6[%c0_11, %c0_12] : memref<64x64xf32, #tpu.memory_space<vmem>>, vector<64x64xf32>
    %cst = arith.constant dense<0.000000e+00> : vector<16x64xf32>
    %6 = tpu.matmul %0, %5, %cst {dimension_numbers = #tpu.dot_dimension_numbers<[1], [1], [0], [0], [0, 0, 1, 0], [], []>} : vector<16x64xf32>, vector<64x64xf32>, vector<16x64xf32> -> vector<16x64xf32>
    %c0_13 = arith.constant 0 : index
    %c0_14 = arith.constant 0 : index
    %7 = vector.load %arg7[%c0_13, %c0_14] : memref<64x64xf32, #tpu.memory_space<vmem>>, vector<64x64xf32>
    %cst_15 = arith.constant dense<0.000000e+00> : vector<16x64xf32>
    %8 = tpu.matmul %0, %7, %cst_15 {dimension_numbers = #tpu.dot_dimension_numbers<[1], [1], [0], [0], [0, 0, 1, 0], [], []>} : vector<16x64xf32>, vector<64x64xf32>, vector<16x64xf32> -> vector<16x64xf32>
    %c0_16 = arith.constant 0 : index
    %c0_17 = arith.constant 0 : index
    %9 = vector.load %arg8[%c0_16, %c0_17] : memref<64x64xf32, #tpu.memory_space<vmem>>, vector<64x64xf32>
    %cst_18 = arith.constant dense<0.000000e+00> : vector<16x64xf32>
    %10 = tpu.matmul %0, %9, %cst_18 {dimension_numbers = #tpu.dot_dimension_numbers<[1], [1], [0], [0], [0, 0, 1, 0], [], []>} : vector<16x64xf32>, vector<64x64xf32>, vector<16x64xf32> -> vector<16x64xf32>
    %11 = vector.shape_cast %6 : vector<16x64xf32> to vector<2x8x64xf32>
    %12 = vector.shape_cast %8 : vector<16x64xf32> to vector<2x8x64xf32>
    %13 = vector.shape_cast %10 : vector<16x64xf32> to vector<2x8x64xf32>
    %cst_19 = arith.constant 0.000000e+00 : f32
    %14 = vector.broadcast %cst_19 : f32 to vector<1x8x8xf32>
    %15 = arith.cmpf oeq, %3, %14 : vector<1x8x8xf32>
    %16 = vector.extract_strided_slice %11 {offsets = [0, 0, 0], sizes = [2, 8, 16], strides = [1, 1, 1]} : vector<2x8x64xf32> to vector<2x8x16xf32>
    %17 = vector.extract_strided_slice %12 {offsets = [0, 0, 0], sizes = [2, 8, 16], strides = [1, 1, 1]} : vector<2x8x64xf32> to vector<2x8x16xf32>
    "tpu.trace_start"() <{level = 10 : i32, message = "nqd,nkd->nqk"}> : () -> ()
    %cst_20 = arith.constant dense<0.000000e+00> : vector<2x8x8xf32>
    %18 = tpu.matmul %16, %17, %cst_20 {dimension_numbers = #tpu.dot_dimension_numbers<[2], [2], [1], [1], [0, 0, 0, 1, 1, 1], [0], [0]>} : vector<2x8x16xf32>, vector<2x8x16xf32>, vector<2x8x8xf32> -> vector<2x8x8xf32>
    %cst_21 = arith.constant 1.250000e-21 : f32
    "tpu.trace_stop"() : () -> ()
    %19 = vector.shape_cast %15 : vector<1x8x8xi1> to vector<1x8x8xi1>
    %20 = vector.broadcast %19 : vector<1x8x8xi1> to vector<2x8x8xi1>
    %21 = vector.broadcast %cst_21 : f32 to vector<2x8x8xf32>
    %22 = arith.select %20, %21, %18 : vector<2x8x8xi1>, vector<2x8x8xf32>
    %cst_22 = arith.constant dense<0xFF800000> : vector<2x8xf32>
    %23 = vector.multi_reduction <maximumf>, %22, %cst_22 [2] : vector<2x8x8xf32> to vector<2x8xf32>
    %24 = vector.shape_cast %23 : vector<2x8xf32> to vector<2x8x1xf32>
    %25 = vector.broadcast %24 : vector<2x8x1xf32> to vector<2x8x8xf32>
    %26 = arith.subf %22, %25 : vector<2x8x8xf32>
    %27 = math.exp %26 : vector<2x8x8xf32>
    %cst_23 = arith.constant dense<0.000000e+00> : vector<2x8xf32>
    %28 = vector.multi_reduction <add>, %27, %cst_23 [2] : vector<2x8x8xf32> to vector<2x8xf32>
    %29 = vector.shape_cast %28 : vector<2x8xf32> to vector<2x8x1xf32>
    %30 = tpu.reciprocal %29 {approx = true} : vector<2x8x1xf32> -> vector<2x8x1xf32>
    %31 = vector.broadcast %30 : vector<2x8x1xf32> to vector<2x8x8xf32>
    %32 = arith.mulf %27, %31 : vector<2x8x8xf32>
    %33 = vector.extract_strided_slice %13 {offsets = [0, 0, 0], sizes = [2, 8, 16], strides = [1, 1, 1]} : vector<2x8x64xf32> to vector<2x8x16xf32>
    "tpu.trace_start"() <{level = 10 : i32, message = "nqk,nkd->nqd"}> : () -> ()
    %cst_24 = arith.constant dense<0.000000e+00> : vector<2x8x16xf32>
    %34 = tpu.matmul %32, %33, %cst_24 {dimension_numbers = #tpu.dot_dimension_numbers<[2], [1], [1], [2], [0, 0, 0, 1, 1, 2], [0], [0]>} : vector<2x8x8xf32>, vector<2x8x16xf32>, vector<2x8x16xf32> -> vector<2x8x16xf32>
    "tpu.trace_stop"() : () -> ()
    %35 = vector.shape_cast %34 : vector<2x8x16xf32> to vector<16x16xf32>
    %c0_25 = arith.constant 0 : index
    %c0_26 = arith.constant 0 : index
    %36 = vector.load %arg27[%c0_25, %c0_26] : memref<16x64xf32, #tpu.memory_space<vmem>>, vector<16x16xf32>
    tpu.vector_store %arg27[%c0_25, %c0_26], %35 {strides = array<i32>} : memref<16x64xf32, #tpu.memory_space<vmem>>, vector<16x16xf32>,
    %37 = vector.extract_strided_slice %11 {offsets = [0, 0, 16], sizes = [2, 8, 16], strides = [1, 1, 1]} : vector<2x8x64xf32> to vector<2x8x16xf32>
    %38 = vector.extract_strided_slice %12 {offsets = [0, 0, 16], sizes = [2, 8, 16], strides = [1, 1, 1]} : vector<2x8x64xf32> to vector<2x8x16xf32>
    "tpu.trace_start"() <{level = 10 : i32, message = "nqd,nkd->nqk"}> : () -> ()
    %cst_27 = arith.constant dense<0.000000e+00> : vector<2x8x8xf32>
    %39 = tpu.matmul %37, %38, %cst_27 {dimension_numbers = #tpu.dot_dimension_numbers<[2], [2], [1], [1], [0, 0, 0, 1, 1, 1], [0], [0]>} : vector<2x8x16xf32>, vector<2x8x16xf32>, vector<2x8x8xf32> -> vector<2x8x8xf32>
    %cst_28 = arith.constant 1.250000e-21 : f32
    "tpu.trace_stop"() : () -> ()
    %40 = vector.shape_cast %15 : vector<1x8x8xi1> to vector<1x8x8xi1>
    %41 = vector.broadcast %40 : vector<1x8x8xi1> to vector<2x8x8xi1>
    %42 = vector.broadcast %cst_28 : f32 to vector<2x8x8xf32>
    %43 = arith.select %41, %42, %39 : vector<2x8x8xi1>, vector<2x8x8xf32>
    %cst_29 = arith.constant dense<0xFF800000> : vector<2x8xf32>
    %44 = vector.multi_reduction <maximumf>, %43, %cst_29 [2] : vector<2x8x8xf32> to vector<2x8xf32>
    %45 = vector.shape_cast %44 : vector<2x8xf32> to vector<2x8x1xf32>
    %46 = vector.broadcast %45 : vector<2x8x1xf32> to vector<2x8x8xf32>
    %47 = arith.subf %43, %46 : vector<2x8x8xf32>
    %48 = math.exp %47 : vector<2x8x8xf32>
    %cst_30 = arith.constant dense<0.000000e+00> : vector<2x8xf32>
    %49 = vector.multi_reduction <add>, %48, %cst_30 [2] : vector<2x8x8xf32> to vector<2x8xf32>
    %50 = vector.shape_cast %49 : vector<2x8xf32> to vector<2x8x1xf32>
    %51 = tpu.reciprocal %50 {approx = true} : vector<2x8x1xf32> -> vector<2x8x1xf32>
    %52 = vector.broadcast %51 : vector<2x8x1xf32> to vector<2x8x8xf32>
    %53 = arith.mulf %48, %52 : vector<2x8x8xf32>
    %54 = vector.extract_strided_slice %13 {offsets = [0, 0, 16], sizes = [2, 8, 16], strides = [1, 1, 1]} : vector<2x8x64xf32> to vector<2x8x16xf32>
    "tpu.trace_start"() <{level = 10 : i32, message = "nqk,nkd->nqd"}> : () -> ()
    %cst_31 = arith.constant dense<0.000000e+00> : vector<2x8x16xf32>
    %55 = tpu.matmul %53, %54, %cst_31 {dimension_numbers = #tpu.dot_dimension_numbers<[2], [1], [1], [2], [0, 0, 0, 1, 1, 2], [0], [0]>} : vector<2x8x8xf32>, vector<2x8x16xf32>, vector<2x8x16xf32> -> vector<2x8x16xf32>
    "tpu.trace_stop"() : () -> ()
    %56 = vector.shape_cast %55 : vector<2x8x16xf32> to vector<16x16xf32>
    %c0_32 = arith.constant 0 : index
    %c16 = arith.constant 16 : index
    %57 = vector.load %arg27[%c0_32, %c16] : memref<16x64xf32, #tpu.memory_space<vmem>>, vector<16x16xf32>
    tpu.vector_store %arg27[%c0_32, %c16], %56 {strides = array<i32>} : memref<16x64xf32, #tpu.memory_space<vmem>>, vector<16x16xf32>,
    %58 = vector.extract_strided_slice %11 {offsets = [0, 0, 32], sizes = [2, 8, 16], strides = [1, 1, 1]} : vector<2x8x64xf32> to vector<2x8x16xf32>
    %59 = vector.extract_strided_slice %12 {offsets = [0, 0, 32], sizes = [2, 8, 16], strides = [1, 1, 1]} : vector<2x8x64xf32> to vector<2x8x16xf32>
    "tpu.trace_start"() <{level = 10 : i32, message = "nqd,nkd->nqk"}> : () -> ()
    %cst_33 = arith.constant dense<0.000000e+00> : vector<2x8x8xf32>
    %60 = tpu.matmul %58, %59, %cst_33 {dimension_numbers = #tpu.dot_dimension_numbers<[2], [2], [1], [1], [0, 0, 0, 1, 1, 1], [0], [0]>} : vector<2x8x16xf32>, vector<2x8x16xf32>, vector<2x8x8xf32> -> vector<2x8x8xf32>
    %cst_34 = arith.constant 1.250000e-21 : f32
    "tpu.trace_stop"() : () -> ()
    %61 = vector.shape_cast %15 : vector<1x8x8xi1> to vector<1x8x8xi1>
    %62 = vector.broadcast %61 : vector<1x8x8xi1> to vector<2x8x8xi1>
    %63 = vector.broadcast %cst_34 : f32 to vector<2x8x8xf32>
    %64 = arith.select %62, %63, %60 : vector<2x8x8xi1>, vector<2x8x8xf32>
    %cst_35 = arith.constant dense<0xFF800000> : vector<2x8xf32>
    %65 = vector.multi_reduction <maximumf>, %64, %cst_35 [2] : vector<2x8x8xf32> to vector<2x8xf32>
    %66 = vector.shape_cast %65 : vector<2x8xf32> to vector<2x8x1xf32>
    %67 = vector.broadcast %66 : vector<2x8x1xf32> to vector<2x8x8xf32>
    %68 = arith.subf %64, %67 : vector<2x8x8xf32>
    %69 = math.exp %68 : vector<2x8x8xf32>
    %cst_36 = arith.constant dense<0.000000e+00> : vector<2x8xf32>
    %70 = vector.multi_reduction <add>, %69, %cst_36 [2] : vector<2x8x8xf32> to vector<2x8xf32>
    %71 = vector.shape_cast %70 : vector<2x8xf32> to vector<2x8x1xf32>
    %72 = tpu.reciprocal %71 {approx = true} : vector<2x8x1xf32> -> vector<2x8x1xf32>
    %73 = vector.broadcast %72 : vector<2x8x1xf32> to vector<2x8x8xf32>
    %74 = arith.mulf %69, %73 : vector<2x8x8xf32>
    %75 = vector.extract_strided_slice %13 {offsets = [0, 0, 32], sizes = [2, 8, 16], strides = [1, 1, 1]} : vector<2x8x64xf32> to vector<2x8x16xf32>
    "tpu.trace_start"() <{level = 10 : i32, message = "nqk,nkd->nqd"}> : () -> ()
    %cst_37 = arith.constant dense<0.000000e+00> : vector<2x8x16xf32>
    %76 = tpu.matmul %74, %75, %cst_37 {dimension_numbers = #tpu.dot_dimension_numbers<[2], [1], [1], [2], [0, 0, 0, 1, 1, 2], [0], [0]>} : vector<2x8x8xf32>, vector<2x8x16xf32>, vector<2x8x16xf32> -> vector<2x8x16xf32>
    "tpu.trace_stop"() : () -> ()
    %77 = vector.shape_cast %76 : vector<2x8x16xf32> to vector<16x16xf32>
    %c0_38 = arith.constant 0 : index
    %c32 = arith.constant 32 : index
    %78 = vector.load %arg27[%c0_38, %c32] : memref<16x64xf32, #tpu.memory_space<vmem>>, vector<16x16xf32>
    tpu.vector_store %arg27[%c0_38, %c32], %77 {strides = array<i32>} : memref<16x64xf32, #tpu.memory_space<vmem>>, vector<16x16xf32>,
    %79 = vector.extract_strided_slice %11 {offsets = [0, 0, 48], sizes = [2, 8, 16], strides = [1, 1, 1]} : vector<2x8x64xf32> to vector<2x8x16xf32>
    %80 = vector.extract_strided_slice %12 {offsets = [0, 0, 48], sizes = [2, 8, 16], strides = [1, 1, 1]} : vector<2x8x64xf32> to vector<2x8x16xf32>
    "tpu.trace_start"() <{level = 10 : i32, message = "nqd,nkd->nqk"}> : () -> ()
    %cst_39 = arith.constant dense<0.000000e+00> : vector<2x8x8xf32>
    %81 = tpu.matmul %79, %80, %cst_39 {dimension_numbers = #tpu.dot_dimension_numbers<[2], [2], [1], [1], [0, 0, 0, 1, 1, 1], [0], [0]>} : vector<2x8x16xf32>, vector<2x8x16xf32>, vector<2x8x8xf32> -> vector<2x8x8xf32>
    %cst_40 = arith.constant 1.250000e-21 : f32
    "tpu.trace_stop"() : () -> ()
    %82 = vector.shape_cast %15 : vector<1x8x8xi1> to vector<1x8x8xi1>
    %83 = vector.broadcast %82 : vector<1x8x8xi1> to vector<2x8x8xi1>
    %84 = vector.broadcast %cst_40 : f32 to vector<2x8x8xf32>
    %85 = arith.select %83, %84, %81 : vector<2x8x8xi1>, vector<2x8x8xf32>
    %cst_41 = arith.constant dense<0xFF800000> : vector<2x8xf32>
    %86 = vector.multi_reduction <maximumf>, %85, %cst_41 [2] : vector<2x8x8xf32> to vector<2x8xf32>
    %87 = vector.shape_cast %86 : vector<2x8xf32> to vector<2x8x1xf32>
    %88 = vector.broadcast %87 : vector<2x8x1xf32> to vector<2x8x8xf32>
    %89 = arith.subf %85, %88 : vector<2x8x8xf32>
    %90 = math.exp %89 : vector<2x8x8xf32>
    %cst_42 = arith.constant dense<0.000000e+00> : vector<2x8xf32>
    %91 = vector.multi_reduction <add>, %90, %cst_42 [2] : vector<2x8x8xf32> to vector<2x8xf32>
    %92 = vector.shape_cast %91 : vector<2x8xf32> to vector<2x8x1xf32>
    %93 = tpu.reciprocal %92 {approx = true} : vector<2x8x1xf32> -> vector<2x8x1xf32>
    %94 = vector.broadcast %93 : vector<2x8x1xf32> to vector<2x8x8xf32>
    %95 = arith.mulf %90, %94 : vector<2x8x8xf32>
    %96 = vector.extract_strided_slice %13 {offsets = [0, 0, 48], sizes = [2, 8, 16], strides = [1, 1, 1]} : vector<2x8x64xf32> to vector<2x8x16xf32>
    "tpu.trace_start"() <{level = 10 : i32, message = "nqk,nkd->nqd"}> : () -> ()
    %cst_43 = arith.constant dense<0.000000e+00> : vector<2x8x16xf32>
    %97 = tpu.matmul %95, %96, %cst_43 {dimension_numbers = #tpu.dot_dimension_numbers<[2], [1], [1], [2], [0, 0, 0, 1, 1, 2], [0], [0]>} : vector<2x8x8xf32>, vector<2x8x16xf32>, vector<2x8x16xf32> -> vector<2x8x16xf32>
    "tpu.trace_stop"() : () -> ()
    %98 = vector.shape_cast %97 : vector<2x8x16xf32> to vector<16x16xf32>
    %c0_44 = arith.constant 0 : index
    %c48 = arith.constant 48 : index
    %99 = vector.load %arg27[%c0_44, %c48] : memref<16x64xf32, #tpu.memory_space<vmem>>, vector<16x16xf32>
    tpu.vector_store %arg27[%c0_44, %c48], %98 {strides = array<i32>} : memref<16x64xf32, #tpu.memory_space<vmem>>, vector<16x16xf32>,
    %c0_45 = arith.constant 0 : index
    %c0_46 = arith.constant 0 : index
    %100 = vector.load %arg27[%c0_45, %c0_46] : memref<16x64xf32, #tpu.memory_space<vmem>>, vector<16x64xf32>
    %c0_47 = arith.constant 0 : index
    %c0_48 = arith.constant 0 : index
    %101 = vector.load %arg9[%c0_47, %c0_48] : memref<64x64xf32, #tpu.memory_space<vmem>>, vector<64x64xf32>
    %cst_49 = arith.constant dense<0.000000e+00> : vector<16x64xf32>
    %102 = tpu.matmul %100, %101, %cst_49 {dimension_numbers = #tpu.dot_dimension_numbers<[1], [1], [0], [0], [0, 0, 1, 0], [], []>} : vector<16x64xf32>, vector<64x64xf32>, vector<16x64xf32> -> vector<16x64xf32>
    %c0_50 = arith.constant 0 : index
    %c0_51 = arith.constant 0 : index
    %103 = vector.load %arg10[%c0_50, %c0_51] : memref<1x64xf32, #tpu.memory_space<vmem>>, vector<1x64xf32>
    %104 = vector.shape_cast %103 : vector<1x64xf32> to vector<64xf32>
    %105 = vector.shape_cast %104 : vector<64xf32> to vector<1x64xf32>
    %106 = vector.broadcast %105 : vector<1x64xf32> to vector<16x64xf32>
    %107 = arith.addf %102, %106 : vector<16x64xf32>
    %108 = arith.addf %107, %0 : vector<16x64xf32>
    %c0_52 = arith.constant 0 : index
    %c0_53 = arith.constant 0 : index
    %109 = vector.load %arg11[%c0_52, %c0_53] : memref<1x64xf32, #tpu.memory_space<vmem>>, vector<1x64xf32>
    %110 = vector.shape_cast %109 : vector<1x64xf32> to vector<64xf32>
    %c0_54 = arith.constant 0 : index
    %c0_55 = arith.constant 0 : index
    %111 = vector.load %arg12[%c0_54, %c0_55] : memref<1x64xf32, #tpu.memory_space<vmem>>, vector<1x64xf32>
    %112 = vector.shape_cast %111 : vector<1x64xf32> to vector<64xf32>
    %cst_56 = arith.constant dense<0.000000e+00> : vector<16xf32>
    %113 = vector.multi_reduction <add>, %108, %cst_56 [1] : vector<16x64xf32> to vector<16xf32>
    %114 = vector.shape_cast %113 : vector<16xf32> to vector<16x1xf32>
    %cst_57 = arith.constant 6.400000e+01 : f32
    %115 = vector.broadcast %cst_57 : f32 to vector<16x1xf32>
    %116 = arith.divf %114, %115 : vector<16x1xf32>
    %117 = vector.broadcast %116 : vector<16x1xf32> to vector<16x64xf32>
    %118 = arith.subf %108, %117 : vector<16x64xf32>
    %119 = arith.mulf %118, %118 : vector<16x64xf32>
    %cst_58 = arith.constant dense<0.000000e+00> : vector<16xf32>
    %120 = vector.multi_reduction <add>, %119, %cst_58 [1] : vector<16x64xf32> to vector<16xf32>
    %121 = vector.shape_cast %120 : vector<16xf32> to vector<16x1xf32>
    %cst_59 = arith.constant 6.400000e+01 : f32
    %122 = vector.broadcast %cst_59 : f32 to vector<16x1xf32>
    %123 = arith.divf %121, %122 : vector<16x1xf32>
    %124 = vector.broadcast %116 : vector<16x1xf32> to vector<16x64xf32>
    %125 = arith.subf %108, %124 : vector<16x64xf32>
    %cst_60 = arith.constant 9.99999974E-6 : f32
    %126 = vector.broadcast %cst_60 : f32 to vector<16x1xf32>
    %127 = arith.addf %123, %126 : vector<16x1xf32>
    %128 = math.rsqrt %127 : vector<16x1xf32>
    %129 = vector.broadcast %128 : vector<16x1xf32> to vector<16x64xf32>
    %130 = arith.mulf %125, %129 : vector<16x64xf32>
    %131 = vector.shape_cast %110 : vector<64xf32> to vector<1x64xf32>
    %132 = vector.broadcast %131 : vector<1x64xf32> to vector<16x64xf32>
    %133 = arith.mulf %130, %132 : vector<16x64xf32>
    %134 = vector.shape_cast %112 : vector<64xf32> to vector<1x64xf32>
    %135 = vector.broadcast %134 : vector<1x64xf32> to vector<16x64xf32>
    %136 = arith.addf %133, %135 : vector<16x64xf32>
    %c0_61 = arith.constant 0 : index
    %c0_62 = arith.constant 0 : index
    %137 = vector.load %arg13[%c0_61, %c0_62] : memref<64x64xf32, #tpu.memory_space<vmem>>, vector<64x64xf32>
    %cst_63 = arith.constant dense<0.000000e+00> : vector<16x64xf32>
    %138 = tpu.matmul %136, %137, %cst_63 {dimension_numbers = #tpu.dot_dimension_numbers<[1], [1], [0], [0], [0, 0, 1, 0], [], []>} : vector<16x64xf32>, vector<64x64xf32>, vector<16x64xf32> -> vector<16x64xf32>
    %c0_64 = arith.constant 0 : index
    %c0_65 = arith.constant 0 : index
    %139 = vector.load %arg14[%c0_64, %c0_65] : memref<64x64xf32, #tpu.memory_space<vmem>>, vector<64x64xf32>
    %cst_66 = arith.constant dense<0.000000e+00> : vector<16x64xf32>
    %140 = tpu.matmul %2, %139, %cst_66 {dimension_numbers = #tpu.dot_dimension_numbers<[1], [1], [0], [0], [0, 0, 1, 0], [], []>} : vector<16x64xf32>, vector<64x64xf32>, vector<16x64xf32> -> vector<16x64xf32>
    %c0_67 = arith.constant 0 : index
    %c0_68 = arith.constant 0 : index
    %141 = vector.load %arg15[%c0_67, %c0_68] : memref<64x64xf32, #tpu.memory_space<vmem>>, vector<64x64xf32>
    %cst_69 = arith.constant dense<0.000000e+00> : vector<16x64xf32>
    %142 = tpu.matmul %1, %141, %cst_69 {dimension_numbers = #tpu.dot_dimension_numbers<[1], [1], [0], [0], [0, 0, 1, 0], [], []>} : vector<16x64xf32>, vector<64x64xf32>, vector<16x64xf32> -> vector<16x64xf32>
    %143 = vector.shape_cast %138 : vector<16x64xf32> to vector<2x8x64xf32>
    %144 = vector.shape_cast %140 : vector<16x64xf32> to vector<2x8x64xf32>
    %145 = vector.shape_cast %142 : vector<16x64xf32> to vector<2x8x64xf32>
    %cst_70 = arith.constant 0.000000e+00 : f32
    %146 = vector.broadcast %cst_70 : f32 to vector<2x8x8xf32>
    %147 = arith.cmpf oeq, %4, %146 : vector<2x8x8xf32>
    %148 = vector.extract_strided_slice %143 {offsets = [0, 0, 0], sizes = [2, 8, 16], strides = [1, 1, 1]} : vector<2x8x64xf32> to vector<2x8x16xf32>
    %149 = vector.extract_strided_slice %144 {offsets = [0, 0, 0], sizes = [2, 8, 16], strides = [1, 1, 1]} : vector<2x8x64xf32> to vector<2x8x16xf32>
    "tpu.trace_start"() <{level = 10 : i32, message = "nqd,nkd->nqk"}> : () -> ()
    %cst_71 = arith.constant dense<0.000000e+00> : vector<2x8x8xf32>
    %150 = tpu.matmul %148, %149, %cst_71 {dimension_numbers = #tpu.dot_dimension_numbers<[2], [2], [1], [1], [0, 0, 0, 1, 1, 1], [0], [0]>} : vector<2x8x16xf32>, vector<2x8x16xf32>, vector<2x8x8xf32> -> vector<2x8x8xf32>
    %cst_72 = arith.constant 1.250000e-21 : f32
    "tpu.trace_stop"() : () -> ()
    %151 = vector.broadcast %cst_72 : f32 to vector<2x8x8xf32>
    %152 = arith.select %147, %151, %150 : vector<2x8x8xi1>, vector<2x8x8xf32>
    %cst_73 = arith.constant dense<0xFF800000> : vector<2x8xf32>
    %153 = vector.multi_reduction <maximumf>, %152, %cst_73 [2] : vector<2x8x8xf32> to vector<2x8xf32>
    %154 = vector.shape_cast %153 : vector<2x8xf32> to vector<2x8x1xf32>
    %155 = vector.broadcast %154 : vector<2x8x1xf32> to vector<2x8x8xf32>
    %156 = arith.subf %152, %155 : vector<2x8x8xf32>
    %157 = math.exp %156 : vector<2x8x8xf32>
    %cst_74 = arith.constant dense<0.000000e+00> : vector<2x8xf32>
    %158 = vector.multi_reduction <add>, %157, %cst_74 [2] : vector<2x8x8xf32> to vector<2x8xf32>
    %159 = vector.shape_cast %158 : vector<2x8xf32> to vector<2x8x1xf32>
    %160 = tpu.reciprocal %159 {approx = true} : vector<2x8x1xf32> -> vector<2x8x1xf32>
    %161 = vector.broadcast %160 : vector<2x8x1xf32> to vector<2x8x8xf32>
    %162 = arith.mulf %157, %161 : vector<2x8x8xf32>
    %163 = vector.extract_strided_slice %145 {offsets = [0, 0, 0], sizes = [2, 8, 16], strides = [1, 1, 1]} : vector<2x8x64xf32> to vector<2x8x16xf32>
    "tpu.trace_start"() <{level = 10 : i32, message = "nqk,nkd->nqd"}> : () -> ()
    %cst_75 = arith.constant dense<0.000000e+00> : vector<2x8x16xf32>
    %164 = tpu.matmul %162, %163, %cst_75 {dimension_numbers = #tpu.dot_dimension_numbers<[2], [1], [1], [2], [0, 0, 0, 1, 1, 2], [0], [0]>} : vector<2x8x8xf32>, vector<2x8x16xf32>, vector<2x8x16xf32> -> vector<2x8x16xf32>
    "tpu.trace_stop"() : () -> ()
    %165 = vector.shape_cast %164 : vector<2x8x16xf32> to vector<16x16xf32>
    %c0_76 = arith.constant 0 : index
    %c0_77 = arith.constant 0 : index
    %166 = vector.load %arg27[%c0_76, %c0_77] : memref<16x64xf32, #tpu.memory_space<vmem>>, vector<16x16xf32>
    tpu.vector_store %arg27[%c0_76, %c0_77], %165 {strides = array<i32>} : memref<16x64xf32, #tpu.memory_space<vmem>>, vector<16x16xf32>,
    %167 = vector.extract_strided_slice %143 {offsets = [0, 0, 16], sizes = [2, 8, 16], strides = [1, 1, 1]} : vector<2x8x64xf32> to vector<2x8x16xf32>
    %168 = vector.extract_strided_slice %144 {offsets = [0, 0, 16], sizes = [2, 8, 16], strides = [1, 1, 1]} : vector<2x8x64xf32> to vector<2x8x16xf32>
    "tpu.trace_start"() <{level = 10 : i32, message = "nqd,nkd->nqk"}> : () -> ()
    %cst_78 = arith.constant dense<0.000000e+00> : vector<2x8x8xf32>
    %169 = tpu.matmul %167, %168, %cst_78 {dimension_numbers = #tpu.dot_dimension_numbers<[2], [2], [1], [1], [0, 0, 0, 1, 1, 1], [0], [0]>} : vector<2x8x16xf32>, vector<2x8x16xf32>, vector<2x8x8xf32> -> vector<2x8x8xf32>
    %cst_79 = arith.constant 1.250000e-21 : f32
    "tpu.trace_stop"() : () -> ()
    %170 = vector.broadcast %cst_79 : f32 to vector<2x8x8xf32>
    %171 = arith.select %147, %170, %169 : vector<2x8x8xi1>, vector<2x8x8xf32>
    %cst_80 = arith.constant dense<0xFF800000> : vector<2x8xf32>
    %172 = vector.multi_reduction <maximumf>, %171, %cst_80 [2] : vector<2x8x8xf32> to vector<2x8xf32>
    %173 = vector.shape_cast %172 : vector<2x8xf32> to vector<2x8x1xf32>
    %174 = vector.broadcast %173 : vector<2x8x1xf32> to vector<2x8x8xf32>
    %175 = arith.subf %171, %174 : vector<2x8x8xf32>
    %176 = math.exp %175 : vector<2x8x8xf32>
    %cst_81 = arith.constant dense<0.000000e+00> : vector<2x8xf32>
    %177 = vector.multi_reduction <add>, %176, %cst_81 [2] : vector<2x8x8xf32> to vector<2x8xf32>
    %178 = vector.shape_cast %177 : vector<2x8xf32> to vector<2x8x1xf32>
    %179 = tpu.reciprocal %178 {approx = true} : vector<2x8x1xf32> -> vector<2x8x1xf32>
    %180 = vector.broadcast %179 : vector<2x8x1xf32> to vector<2x8x8xf32>
    %181 = arith.mulf %176, %180 : vector<2x8x8xf32>
    %182 = vector.extract_strided_slice %145 {offsets = [0, 0, 16], sizes = [2, 8, 16], strides = [1, 1, 1]} : vector<2x8x64xf32> to vector<2x8x16xf32>
    "tpu.trace_start"() <{level = 10 : i32, message = "nqk,nkd->nqd"}> : () -> ()
    %cst_82 = arith.constant dense<0.000000e+00> : vector<2x8x16xf32>
    %183 = tpu.matmul %181, %182, %cst_82 {dimension_numbers = #tpu.dot_dimension_numbers<[2], [1], [1], [2], [0, 0, 0, 1, 1, 2], [0], [0]>} : vector<2x8x8xf32>, vector<2x8x16xf32>, vector<2x8x16xf32> -> vector<2x8x16xf32>
    "tpu.trace_stop"() : () -> ()
    %184 = vector.shape_cast %183 : vector<2x8x16xf32> to vector<16x16xf32>
    %c0_83 = arith.constant 0 : index
    %c16_84 = arith.constant 16 : index
    %185 = vector.load %arg27[%c0_83, %c16_84] : memref<16x64xf32, #tpu.memory_space<vmem>>, vector<16x16xf32>
    tpu.vector_store %arg27[%c0_83, %c16_84], %184 {strides = array<i32>} : memref<16x64xf32, #tpu.memory_space<vmem>>, vector<16x16xf32>,
    %186 = vector.extract_strided_slice %143 {offsets = [0, 0, 32], sizes = [2, 8, 16], strides = [1, 1, 1]} : vector<2x8x64xf32> to vector<2x8x16xf32>
    %187 = vector.extract_strided_slice %144 {offsets = [0, 0, 32], sizes = [2, 8, 16], strides = [1, 1, 1]} : vector<2x8x64xf32> to vector<2x8x16xf32>
    "tpu.trace_start"() <{level = 10 : i32, message = "nqd,nkd->nqk"}> : () -> ()
    %cst_85 = arith.constant dense<0.000000e+00> : vector<2x8x8xf32>
    %188 = tpu.matmul %186, %187, %cst_85 {dimension_numbers = #tpu.dot_dimension_numbers<[2], [2], [1], [1], [0, 0, 0, 1, 1, 1], [0], [0]>} : vector<2x8x16xf32>, vector<2x8x16xf32>, vector<2x8x8xf32> -> vector<2x8x8xf32>
    %cst_86 = arith.constant 1.250000e-21 : f32
    "tpu.trace_stop"() : () -> ()
    %189 = vector.broadcast %cst_86 : f32 to vector<2x8x8xf32>
    %190 = arith.select %147, %189, %188 : vector<2x8x8xi1>, vector<2x8x8xf32>
    %cst_87 = arith.constant dense<0xFF800000> : vector<2x8xf32>
    %191 = vector.multi_reduction <maximumf>, %190, %cst_87 [2] : vector<2x8x8xf32> to vector<2x8xf32>
    %192 = vector.shape_cast %191 : vector<2x8xf32> to vector<2x8x1xf32>
    %193 = vector.broadcast %192 : vector<2x8x1xf32> to vector<2x8x8xf32>
    %194 = arith.subf %190, %193 : vector<2x8x8xf32>
    %195 = math.exp %194 : vector<2x8x8xf32>
    %cst_88 = arith.constant dense<0.000000e+00> : vector<2x8xf32>
    %196 = vector.multi_reduction <add>, %195, %cst_88 [2] : vector<2x8x8xf32> to vector<2x8xf32>
    %197 = vector.shape_cast %196 : vector<2x8xf32> to vector<2x8x1xf32>
    %198 = tpu.reciprocal %197 {approx = true} : vector<2x8x1xf32> -> vector<2x8x1xf32>
    %199 = vector.broadcast %198 : vector<2x8x1xf32> to vector<2x8x8xf32>
    %200 = arith.mulf %195, %199 : vector<2x8x8xf32>
    %201 = vector.extract_strided_slice %145 {offsets = [0, 0, 32], sizes = [2, 8, 16], strides = [1, 1, 1]} : vector<2x8x64xf32> to vector<2x8x16xf32>
    "tpu.trace_start"() <{level = 10 : i32, message = "nqk,nkd->nqd"}> : () -> ()
    %cst_89 = arith.constant dense<0.000000e+00> : vector<2x8x16xf32>
    %202 = tpu.matmul %200, %201, %cst_89 {dimension_numbers = #tpu.dot_dimension_numbers<[2], [1], [1], [2], [0, 0, 0, 1, 1, 2], [0], [0]>} : vector<2x8x8xf32>, vector<2x8x16xf32>, vector<2x8x16xf32> -> vector<2x8x16xf32>
    "tpu.trace_stop"() : () -> ()
    %203 = vector.shape_cast %202 : vector<2x8x16xf32> to vector<16x16xf32>
    %c0_90 = arith.constant 0 : index
    %c32_91 = arith.constant 32 : index
    %204 = vector.load %arg27[%c0_90, %c32_91] : memref<16x64xf32, #tpu.memory_space<vmem>>, vector<16x16xf32>
    tpu.vector_store %arg27[%c0_90, %c32_91], %203 {strides = array<i32>} : memref<16x64xf32, #tpu.memory_space<vmem>>, vector<16x16xf32>,
    %205 = vector.extract_strided_slice %143 {offsets = [0, 0, 48], sizes = [2, 8, 16], strides = [1, 1, 1]} : vector<2x8x64xf32> to vector<2x8x16xf32>
    %206 = vector.extract_strided_slice %144 {offsets = [0, 0, 48], sizes = [2, 8, 16], strides = [1, 1, 1]} : vector<2x8x64xf32> to vector<2x8x16xf32>
    "tpu.trace_start"() <{level = 10 : i32, message = "nqd,nkd->nqk"}> : () -> ()
    %cst_92 = arith.constant dense<0.000000e+00> : vector<2x8x8xf32>
    %207 = tpu.matmul %205, %206, %cst_92 {dimension_numbers = #tpu.dot_dimension_numbers<[2], [2], [1], [1], [0, 0, 0, 1, 1, 1], [0], [0]>} : vector<2x8x16xf32>, vector<2x8x16xf32>, vector<2x8x8xf32> -> vector<2x8x8xf32>
    %cst_93 = arith.constant 1.250000e-21 : f32
    "tpu.trace_stop"() : () -> ()
    %208 = vector.broadcast %cst_93 : f32 to vector<2x8x8xf32>
    %209 = arith.select %147, %208, %207 : vector<2x8x8xi1>, vector<2x8x8xf32>
    %cst_94 = arith.constant dense<0xFF800000> : vector<2x8xf32>
    %210 = vector.multi_reduction <maximumf>, %209, %cst_94 [2] : vector<2x8x8xf32> to vector<2x8xf32>
    %211 = vector.shape_cast %210 : vector<2x8xf32> to vector<2x8x1xf32>
    %212 = vector.broadcast %211 : vector<2x8x1xf32> to vector<2x8x8xf32>
    %213 = arith.subf %209, %212 : vector<2x8x8xf32>
    %214 = math.exp %213 : vector<2x8x8xf32>
    %cst_95 = arith.constant dense<0.000000e+00> : vector<2x8xf32>
    %215 = vector.multi_reduction <add>, %214, %cst_95 [2] : vector<2x8x8xf32> to vector<2x8xf32>
    %216 = vector.shape_cast %215 : vector<2x8xf32> to vector<2x8x1xf32>
    %217 = tpu.reciprocal %216 {approx = true} : vector<2x8x1xf32> -> vector<2x8x1xf32>
    %218 = vector.broadcast %217 : vector<2x8x1xf32> to vector<2x8x8xf32>
    %219 = arith.mulf %214, %218 : vector<2x8x8xf32>
    %220 = vector.extract_strided_slice %145 {offsets = [0, 0, 48], sizes = [2, 8, 16], strides = [1, 1, 1]} : vector<2x8x64xf32> to vector<2x8x16xf32>
    "tpu.trace_start"() <{level = 10 : i32, message = "nqk,nkd->nqd"}> : () -> ()
    %cst_96 = arith.constant dense<0.000000e+00> : vector<2x8x16xf32>
    %221 = tpu.matmul %219, %220, %cst_96 {dimension_numbers = #tpu.dot_dimension_numbers<[2], [1], [1], [2], [0, 0, 0, 1, 1, 2], [0], [0]>} : vector<2x8x8xf32>, vector<2x8x16xf32>, vector<2x8x16xf32> -> vector<2x8x16xf32>
    "tpu.trace_stop"() : () -> ()
    %222 = vector.shape_cast %221 : vector<2x8x16xf32> to vector<16x16xf32>
    %c0_97 = arith.constant 0 : index
    %c48_98 = arith.constant 48 : index
    %223 = vector.load %arg27[%c0_97, %c48_98] : memref<16x64xf32, #tpu.memory_space<vmem>>, vector<16x16xf32>
    tpu.vector_store %arg27[%c0_97, %c48_98], %222 {strides = array<i32>} : memref<16x64xf32, #tpu.memory_space<vmem>>, vector<16x16xf32>,
    %c0_99 = arith.constant 0 : index
    %c0_100 = arith.constant 0 : index
    %224 = vector.load %arg27[%c0_99, %c0_100] : memref<16x64xf32, #tpu.memory_space<vmem>>, vector<16x64xf32>
    %c0_101 = arith.constant 0 : index
    %c0_102 = arith.constant 0 : index
    %225 = vector.load %arg16[%c0_101, %c0_102] : memref<64x64xf32, #tpu.memory_space<vmem>>, vector<64x64xf32>
    %cst_103 = arith.constant dense<0.000000e+00> : vector<16x64xf32>
    %226 = tpu.matmul %224, %225, %cst_103 {dimension_numbers = #tpu.dot_dimension_numbers<[1], [1], [0], [0], [0, 0, 1, 0], [], []>} : vector<16x64xf32>, vector<64x64xf32>, vector<16x64xf32> -> vector<16x64xf32>
    %c0_104 = arith.constant 0 : index
    %c0_105 = arith.constant 0 : index
    %227 = vector.load %arg17[%c0_104, %c0_105] : memref<1x64xf32, #tpu.memory_space<vmem>>, vector<1x64xf32>
    %228 = vector.shape_cast %227 : vector<1x64xf32> to vector<64xf32>
    %229 = vector.shape_cast %228 : vector<64xf32> to vector<1x64xf32>
    %230 = vector.broadcast %229 : vector<1x64xf32> to vector<16x64xf32>
    %231 = arith.addf %226, %230 : vector<16x64xf32>
    %232 = arith.addf %231, %136 : vector<16x64xf32>
    %c0_106 = arith.constant 0 : index
    %c0_107 = arith.constant 0 : index
    %233 = vector.load %arg18[%c0_106, %c0_107] : memref<1x64xf32, #tpu.memory_space<vmem>>, vector<1x64xf32>
    %234 = vector.shape_cast %233 : vector<1x64xf32> to vector<64xf32>
    %c0_108 = arith.constant 0 : index
    %c0_109 = arith.constant 0 : index
    %235 = vector.load %arg19[%c0_108, %c0_109] : memref<1x64xf32, #tpu.memory_space<vmem>>, vector<1x64xf32>
    %236 = vector.shape_cast %235 : vector<1x64xf32> to vector<64xf32>
    %cst_110 = arith.constant dense<0.000000e+00> : vector<16xf32>
    %237 = vector.multi_reduction <add>, %232, %cst_110 [1] : vector<16x64xf32> to vector<16xf32>
    %238 = vector.shape_cast %237 : vector<16xf32> to vector<16x1xf32>
    %cst_111 = arith.constant 6.400000e+01 : f32
    %239 = vector.broadcast %cst_111 : f32 to vector<16x1xf32>
    %240 = arith.divf %238, %239 : vector<16x1xf32>
    %241 = vector.broadcast %240 : vector<16x1xf32> to vector<16x64xf32>
    %242 = arith.subf %232, %241 : vector<16x64xf32>
    %243 = arith.mulf %242, %242 : vector<16x64xf32>
    %cst_112 = arith.constant dense<0.000000e+00> : vector<16xf32>
    %244 = vector.multi_reduction <add>, %243, %cst_112 [1] : vector<16x64xf32> to vector<16xf32>
    %245 = vector.shape_cast %244 : vector<16xf32> to vector<16x1xf32>
    %cst_113 = arith.constant 6.400000e+01 : f32
    %246 = vector.broadcast %cst_113 : f32 to vector<16x1xf32>
    %247 = arith.divf %245, %246 : vector<16x1xf32>
    %248 = vector.broadcast %240 : vector<16x1xf32> to vector<16x64xf32>
    %249 = arith.subf %232, %248 : vector<16x64xf32>
    %cst_114 = arith.constant 9.99999974E-6 : f32
    %250 = vector.broadcast %cst_114 : f32 to vector<16x1xf32>
    %251 = arith.addf %247, %250 : vector<16x1xf32>
    %252 = math.rsqrt %251 : vector<16x1xf32>
    %253 = vector.broadcast %252 : vector<16x1xf32> to vector<16x64xf32>
    %254 = arith.mulf %249, %253 : vector<16x64xf32>
    %255 = vector.shape_cast %234 : vector<64xf32> to vector<1x64xf32>
    %256 = vector.broadcast %255 : vector<1x64xf32> to vector<16x64xf32>
    %257 = arith.mulf %254, %256 : vector<16x64xf32>
    %258 = vector.shape_cast %236 : vector<64xf32> to vector<1x64xf32>
    %259 = vector.broadcast %258 : vector<1x64xf32> to vector<16x64xf32>
    %260 = arith.addf %257, %259 : vector<16x64xf32>
    %c0_115 = arith.constant 0 : index
    %c0_116 = arith.constant 0 : index
    %261 = vector.load %arg20[%c0_115, %c0_116] : memref<256x64xf32, #tpu.memory_space<vmem>>, vector<256x64xf32>
    %cst_117 = arith.constant dense<0.000000e+00> : vector<16x256xf32>
    %262 = tpu.matmul %260, %261, %cst_117 {dimension_numbers = #tpu.dot_dimension_numbers<[1], [1], [0], [0], [0, 0, 1, 0], [], []>} : vector<16x64xf32>, vector<256x64xf32>, vector<16x256xf32> -> vector<16x256xf32>
    %c0_118 = arith.constant 0 : index
    %c0_119 = arith.constant 0 : index
    %263 = vector.load %arg21[%c0_118, %c0_119] : memref<1x256xf32, #tpu.memory_space<vmem>>, vector<1x256xf32>
    %264 = vector.shape_cast %263 : vector<1x256xf32> to vector<256xf32>
    %265 = vector.shape_cast %264 : vector<256xf32> to vector<1x256xf32>
    %266 = vector.broadcast %265 : vector<1x256xf32> to vector<16x256xf32>
    %267 = arith.addf %262, %266 : vector<16x256xf32>
    %cst_120 = arith.constant 0.000000e+00 : f32
    %268 = vector.broadcast %cst_120 : f32 to vector<16x256xf32>
    %269 = arith.maximumf %267, %268 : vector<16x256xf32>
    %c0_121 = arith.constant 0 : index
    %c0_122 = arith.constant 0 : index
    %270 = vector.load %arg22[%c0_121, %c0_122] : memref<64x256xf32, #tpu.memory_space<vmem>>, vector<64x256xf32>
    %cst_123 = arith.constant dense<0.000000e+00> : vector<16x64xf32>
    %271 = tpu.matmul %269, %270, %cst_123 {dimension_numbers = #tpu.dot_dimension_numbers<[1], [1], [0], [0], [0, 0, 1, 0], [], []>} : vector<16x256xf32>, vector<64x256xf32>, vector<16x64xf32> -> vector<16x64xf32>
    %c0_124 = arith.constant 0 : index
    %c0_125 = arith.constant 0 : index
    %272 = vector.load %arg23[%c0_124, %c0_125] : memref<1x64xf32, #tpu.memory_space<vmem>>, vector<1x64xf32>
    %273 = vector.shape_cast %272 : vector<1x64xf32> to vector<64xf32>
    %274 = vector.shape_cast %273 : vector<64xf32> to vector<1x64xf32>
    %275 = vector.broadcast %274 : vector<1x64xf32> to vector<16x64xf32>
    %276 = arith.addf %271, %275 : vector<16x64xf32>
    %277 = arith.addf %276, %260 : vector<16x64xf32>
    %c0_126 = arith.constant 0 : index
    %c0_127 = arith.constant 0 : index
    %278 = vector.load %arg24[%c0_126, %c0_127] : memref<1x64xf32, #tpu.memory_space<vmem>>, vector<1x64xf32>
    %279 = vector.shape_cast %278 : vector<1x64xf32> to vector<64xf32>
    %c0_128 = arith.constant 0 : index
    %c0_129 = arith.constant 0 : index
    %280 = vector.load %arg25[%c0_128, %c0_129] : memref<1x64xf32, #tpu.memory_space<vmem>>, vector<1x64xf32>
    %281 = vector.shape_cast %280 : vector<1x64xf32> to vector<64xf32>
    %cst_130 = arith.constant dense<0.000000e+00> : vector<16xf32>
    %282 = vector.multi_reduction <add>, %277, %cst_130 [1] : vector<16x64xf32> to vector<16xf32>
    %283 = vector.shape_cast %282 : vector<16xf32> to vector<16x1xf32>
    %cst_131 = arith.constant 6.400000e+01 : f32
    %284 = vector.broadcast %cst_131 : f32 to vector<16x1xf32>
    %285 = arith.divf %283, %284 : vector<16x1xf32>
    %286 = vector.broadcast %285 : vector<16x1xf32> to vector<16x64xf32>
    %287 = arith.subf %277, %286 : vector<16x64xf32>
    %288 = arith.mulf %287, %287 : vector<16x64xf32>
    %cst_132 = arith.constant dense<0.000000e+00> : vector<16xf32>
    %289 = vector.multi_reduction <add>, %288, %cst_132 [1] : vector<16x64xf32> to vector<16xf32>
    %290 = vector.shape_cast %289 : vector<16xf32> to vector<16x1xf32>
    %cst_133 = arith.constant 6.400000e+01 : f32
    %291 = vector.broadcast %cst_133 : f32 to vector<16x1xf32>
    %292 = arith.divf %290, %291 : vector<16x1xf32>
    %293 = vector.broadcast %285 : vector<16x1xf32> to vector<16x64xf32>
    %294 = arith.subf %277, %293 : vector<16x64xf32>
    %cst_134 = arith.constant 9.99999974E-6 : f32
    %295 = vector.broadcast %cst_134 : f32 to vector<16x1xf32>
    %296 = arith.addf %292, %295 : vector<16x1xf32>
    %297 = math.rsqrt %296 : vector<16x1xf32>
    %298 = vector.broadcast %297 : vector<16x1xf32> to vector<16x64xf32>
    %299 = arith.mulf %294, %298 : vector<16x64xf32>
    %300 = vector.shape_cast %279 : vector<64xf32> to vector<1x64xf32>
    %301 = vector.broadcast %300 : vector<1x64xf32> to vector<16x64xf32>
    %302 = arith.mulf %299, %301 : vector<16x64xf32>
    %303 = vector.shape_cast %281 : vector<64xf32> to vector<1x64xf32>
    %304 = vector.broadcast %303 : vector<1x64xf32> to vector<16x64xf32>
    %305 = arith.addf %302, %304 : vector<16x64xf32>
    %c0_135 = arith.constant 0 : index
    %c0_136 = arith.constant 0 : index
    %306 = vector.load %arg26[%c0_135, %c0_136] : memref<16x64xf32, #tpu.memory_space<vmem>>, vector<16x64xf32>
    tpu.vector_store %arg26[%c0_135, %c0_136], %305 {strides = array<i32>} : memref<16x64xf32, #tpu.memory_space<vmem>>, vector<16x64xf32>,
    return
  }
  func.func @transform_0(%arg0: i32) -> (i32, i32) {
    %c0_i32 = arith.constant 0 : i32
    %c0_i32_0 = arith.constant 0 : i32
    return %arg0, %c0_i32 : i32, i32
  }
  func.func @transform_1(%arg0: i32) -> (i32, i32) {
    %c0_i32 = arith.constant 0 : i32
    %c0_i32_0 = arith.constant 0 : i32
    return %arg0, %c0_i32 : i32, i32
  }
  func.func @transform_2(%arg0: i32) -> (i32, i32) {
    %c0_i32 = arith.constant 0 : i32
    %c0_i32_0 = arith.constant 0 : i32
    return %arg0, %c0_i32 : i32, i32
  }
  func.func @transform_3(%arg0: i32) -> (i32, i32, i32) {
    %c0_i32 = arith.constant 0 : i32
    %c0_i32_0 = arith.constant 0 : i32
    %c0_i32_1 = arith.constant 0 : i32
    return %arg0, %c0_i32, %c0_i32_0 : i32, i32, i32
  }
  func.func @transform_4(%arg0: i32) -> (i32, i32, i32) {
    %c0_i32 = arith.constant 0 : i32
    %c0_i32_0 = arith.constant 0 : i32
    %c0_i32_1 = arith.constant 0 : i32
    %c0_i32_2 = arith.constant 0 : i32
    return %c0_i32, %c0_i32_0, %c0_i32_1 : i32, i32, i32
  }
  func.func @transform_5(%arg0: i32) -> (i32, i32) {
    %c0_i32 = arith.constant 0 : i32
    %c0_i32_0 = arith.constant 0 : i32
    %c0_i32_1 = arith.constant 0 : i32
    return %c0_i32, %c0_i32_0 : i32, i32
  }
  func.func @transform_6(%arg0: i32) -> (i32, i32) {
    %c0_i32 = arith.constant 0 : i32
    %c0_i32_0 = arith.constant 0 : i32
    %c0_i32_1 = arith.constant 0 : i32
    return %c0_i32, %c0_i32_0 : i32, i32
  }
  func.func @transform_7(%arg0: i32) -> (i32, i32) {
    %c0_i32 = arith.constant 0 : i32
    %c0_i32_0 = arith.constant 0 : i32
    %c0_i32_1 = arith.constant 0 : i32
    return %c0_i32, %c0_i32_0 : i32, i32
  }
  func.func @transform_8(%arg0: i32) -> (i32, i32) {
    %c0_i32 = arith.constant 0 : i32
    %c0_i32_0 = arith.constant 0 : i32
    %c0_i32_1 = arith.constant 0 : i32
    return %c0_i32, %c0_i32_0 : i32, i32
  }
  func.func @transform_9(%arg0: i32) -> (i32, i32) {
    %c0_i32 = arith.constant 0 : i32
    %c0_i32_0 = arith.constant 0 : i32
    %c0_i32_1 = arith.constant 0 : i32
    return %c0_i32, %c0_i32_0 : i32, i32
  }
  func.func @transform_10(%arg0: i32) -> (i32, i32) {
    %c0_i32 = arith.constant 0 : i32
    %c0_i32_0 = arith.constant 0 : i32
    %c0_i32_1 = arith.constant 0 : i32
    return %c0_i32, %c0_i32_0 : i32, i32
  }
  func.func @transform_11(%arg0: i32) -> (i32, i32) {
    %c0_i32 = arith.constant 0 : i32
    %c0_i32_0 = arith.constant 0 : i32
    %c0_i32_1 = arith.constant 0 : i32
    return %c0_i32, %c0_i32_0 : i32, i32
  }
  func.func @transform_12(%arg0: i32) -> (i32, i32) {
    %c0_i32 = arith.constant 0 : i32
    %c0_i32_0 = arith.constant 0 : i32
    %c0_i32_1 = arith.constant 0 : i32
    return %c0_i32, %c0_i32_0 : i32, i32
  }
  func.func @transform_13(%arg0: i32) -> (i32, i32) {
    %c0_i32 = arith.constant 0 : i32
    %c0_i32_0 = arith.constant 0 : i32
    %c0_i32_1 = arith.constant 0 : i32
    return %c0_i32, %c0_i32_0 : i32, i32
  }
  func.func @transform_14(%arg0: i32) -> (i32, i32) {
    %c0_i32 = arith.constant 0 : i32
    %c0_i32_0 = arith.constant 0 : i32
    %c0_i32_1 = arith.constant 0 : i32
    return %c0_i32, %c0_i32_0 : i32, i32
  }
  func.func @transform_15(%arg0: i32) -> (i32, i32) {
    %c0_i32 = arith.constant 0 : i32
    %c0_i32_0 = arith.constant 0 : i32
    %c0_i32_1 = arith.constant 0 : i32
    return %c0_i32, %c0_i32_0 : i32, i32
  }
  func.func @transform_16(%arg0: i32) -> (i32, i32) {
    %c0_i32 = arith.constant 0 : i32
    %c0_i32_0 = arith.constant 0 : i32
    %c0_i32_1 = arith.constant 0 : i32
    return %c0_i32, %c0_i32_0 : i32, i32
  }
  func.func @transform_17(%arg0: i32) -> (i32, i32) {
    %c0_i32 = arith.constant 0 : i32
    %c0_i32_0 = arith.constant 0 : i32
    %c0_i32_1 = arith.constant 0 : i32
    return %c0_i32, %c0_i32_0 : i32, i32
  }
  func.func @transform_18(%arg0: i32) -> (i32, i32) {
    %c0_i32 = arith.constant 0 : i32
    %c0_i32_0 = arith.constant 0 : i32
    %c0_i32_1 = arith.constant 0 : i32
    return %c0_i32, %c0_i32_0 : i32, i32
  }
  func.func @transform_19(%arg0: i32) -> (i32, i32) {
    %c0_i32 = arith.constant 0 : i32
    %c0_i32_0 = arith.constant 0 : i32
    %c0_i32_1 = arith.constant 0 : i32
    return %c0_i32, %c0_i32_0 : i32, i32
  }
  func.func @transform_20(%arg0: i32) -> (i32, i32) {
    %c0_i32 = arith.constant 0 : i32
    %c0_i32_0 = arith.constant 0 : i32
    %c0_i32_1 = arith.constant 0 : i32
    return %c0_i32, %c0_i32_0 : i32, i32
  }
  func.func @transform_21(%arg0: i32) -> (i32, i32) {
    %c0_i32 = arith.constant 0 : i32
    %c0_i32_0 = arith.constant 0 : i32
    %c0_i32_1 = arith.constant 0 : i32
    return %c0_i32, %c0_i32_0 : i32, i32
  }
  func.func @transform_22(%arg0: i32) -> (i32, i32) {
    %c0_i32 = arith.constant 0 : i32
    %c0_i32_0 = arith.constant 0 : i32
    %c0_i32_1 = arith.constant 0 : i32
    return %c0_i32, %c0_i32_0 : i32, i32
  }
  func.func @transform_23(%arg0: i32) -> (i32, i32) {
    %c0_i32 = arith.constant 0 : i32
    %c0_i32_0 = arith.constant 0 : i32
    %c0_i32_1 = arith.constant 0 : i32
    return %c0_i32, %c0_i32_0 : i32, i32
  }
  func.func @transform_24(%arg0: i32) -> (i32, i32) {
    %c0_i32 = arith.constant 0 : i32
    %c0_i32_0 = arith.constant 0 : i32
    %c0_i32_1 = arith.constant 0 : i32
    return %c0_i32, %c0_i32_0 : i32, i32
  }
  func.func @transform_25(%arg0: i32) -> (i32, i32) {
    %c0_i32 = arith.constant 0 : i32
    %c0_i32_0 = arith.constant 0 : i32
    return %arg0, %c0_i32 : i32, i32
  }
}

</mosaic_0001>

<bundles_post_ra>
// kernel: tpu_custom_call.1
= control target key start
LH: loop header
LB: loop body
LE: loop exit
PB: predicated region body
PF: predicated region fallthrough
CT: control target
= control target key end

     0   :  { %s6710_s0 = inlined_call_operand.hbm [shape: f32[16,64], index: 0, kind: input, shape index: {}]   ;;  %s6711_s1 = inlined_call_operand.hbm [shape: f32[16,64], index: 1, kind: input, shape index: {}]   ;;  %s6712_s2 = inlined_call_operand.hbm [shape: f32[16,64], index: 2, kind: input, shape index: {}]   ;;  %s6713_s3 = inlined_call_operand.hbm [shape: f32[2,8,8], index: 3, kind: input, shape index: {}]   ;;  %s6714_s4 = inlined_call_operand.vmem [shape: f32[1,8,8], index: 4, kind: input, shape index: {}]   ;;  %s6715_s5 = inlined_call_operand.vmem [shape: f32[64,64], index: 5, kind: input, shape index: {}]   ;;  %s6716_s6 = inlined_call_operand.vmem [shape: f32[64,64], index: 6, kind: input, shape index: {}]   ;;  %s6717_s7 = inlined_call_operand.vmem [shape: f32[64,64], index: 7, kind: input, shape index: {}]   ;;  %s6718_s8 = inlined_call_operand.vmem [shape: f32[64,64], index: 8, kind: input, shape index: {}]   ;;  %s6719_s9 = inlined_call_operand.vmem [shape: f32[1,64], index: 9, kind: input, shape index: {}]   ;;  %s6720_s10 = inlined_call_operand.vmem [shape: f32[1,64], index: 10, kind: input, shape index: {}]   ;;  %s6721_s11 = inlined_call_operand.vmem [shape: f32[1,64], index: 11, kind: input, shape index: {}]   ;;  %s6722_s12 = inlined_call_operand.hbm [shape: f32[64,64], index: 12, kind: input, shape index: {}]   ;;  %s6723_s13 = inlined_call_operand.hbm [shape: f32[64,64], index: 13, kind: input, shape index: {}]   ;;  %s6724_s14 = inlined_call_operand.hbm [shape: f32[64,64], index: 14, kind: input, shape index: {}]   ;;  %s6725_s15 = inlined_call_operand.hbm [shape: f32[64,64], index: 15, kind: input, shape index: {}]   ;;  %s6726_s16 = inlined_call_operand.vmem [shape: f32[1,64], index: 16, kind: input, shape index: {}]   ;;  %s6727_s17 = inlined_call_operand.vmem [shape: f32[1,64], index: 17, kind: input, shape index: {}]   ;;  %s6728_s18 = inlined_call_operand.vmem [shape: f32[1,64], index: 18, kind: input, shape index: {}]   ;;  %s6729_s19 = inlined_call_operand.vmem [shape: f32[256,64], index: 19, kind: input, shape index: {}]   ;;  %s6730_s20 = inlined_call_operand.vmem [shape: f32[1,256], index: 20, kind: input, shape index: {}]   ;;  %s6731_s21 = inlined_call_operand.vmem [shape: f32[64,256], index: 21, kind: input, shape index: {}]   ;;  %s6732_s22 = inlined_call_operand.vmem [shape: f32[1,64], index: 22, kind: input, shape index: {}]   ;;  %s6733_s23 = inlined_call_operand.vmem [shape: f32[1,64], index: 23, kind: input, shape index: {}]   ;;  %s6734_s24 = inlined_call_operand.vmem [shape: f32[1,64], index: 24, kind: input, shape index: {}]   ;;  %s6735_s25 = inlined_call_operand.hbm [shape: f32[16,64], index: 25, kind: output, shape index: {}]  }
   0x1   :  { %6745 = sst [smem:[#allocation24_spill]] %s6710_s0 }
   0x2   :  { %6746 = sst [smem:[#allocation25_spill]] %s6711_s1 }
   0x3   :  { %6747 = sst [smem:[#allocation26_spill]] %s6712_s2 }
   0x4   :  { %6748 = sst [smem:[#allocation27_spill]] %s6713_s3 }
   0x5   :  { %6749 = sst [smem:[#allocation28_spill]] %s6714_s4 }
   0x6   :  { %6750 = sst [smem:[#allocation29_spill]] %s6715_s5 }
   0x7   :  { %6751 = sst [smem:[#allocation30_spill]] %s6716_s6 }
   0x8   :  { %6752 = sst [smem:[#allocation31_spill]] %s6717_s7 }
   0x9   :  { %6753 = sst [smem:[#allocation32_spill]] %s6718_s8 }
   0xa   :  { %6754 = sst [smem:[#allocation33_spill]] %s6719_s9 }
   0xb   :  { %6755 = sst [smem:[#allocation34_spill]] %s6734_s24 }
   0xc   :  { %6756 = sst [smem:[#allocation35_spill]] %s6735_s25 }
   0xd   :  { %30 = vsyncpa [#allocation4], 0 }
   0xe   :  { %31 = vsyncpa [#allocation7], 0 }
   0xf   :  { %32 = vsyncpa [#allocation10], 0 }
  0x10   :  { %33 = vsyncpa [#allocation13], 0 }
  0x11   :  { %34 = vsyncpa [#allocation16], 0 }
  0x12   :  { %35 = vsyncpa [#allocation5], 0  ;;  %s5535_s29 = smov [#allocation6]   ;;  %s5536_s6 = smov [#allocation9]  }
  0x13   :  { %s53_s2 = sshll.u32 %s5535_s29, 4  ;;  %s77_s30 = sshll.u32 %s5536_s6, 4  ;;  %s54_s2 = int_to_ptr.vmem [resolvable:$true] %s53_s2  ;;  %s5684_s30 = int_to_ptr.vmem [resolvable:$true] %s77_s30 }
  0x14   :  { %s6757_s26 = sld [smem:[#allocation25_spill]] }
  0x1a   :  { %s5325_s1 = scalar_lea.hbm %s6757_s26, 256 }
  0x1b   :  { %p5326_p0 = scmp.ne.s32.totalorder %s6757_s26, %s5325_s1  ;;  %p5329_p1 = scmp.lt.u32.totalorder %s5325_s1, %s6757_s26 }
  0x1d   :  { %p5331_p2 = pnand %p5329_p1, %p5326_p0 }
  0x1f   :  { %5334 = shalt.err (!%p5331_p2)
}
  0x20   :  { %s5335_s9 = scalar_lea.vmem %s54_s2, 256  ;;  %p5340_p4 = scmp.lt.s32.totalorder %s54_s2, %s54_s2 }
  0x21   :  { %p5336_p3 = scmp.ne.s32.totalorder %s54_s2, %s5335_s9  ;;  %p5341_p5 = scmp.lt.s32.totalorder %s5335_s9, %s5335_s9 }
  0x23   :  { %p5342_p6 = por %p5341_p5, %p5340_p4 }
  0x25   :  { %p5343_p7 = pnand %p5342_p6, %p5336_p3 }
  0x27   :  { %5346 = shalt.err (!%p5343_p7)
}
  0x28   :  { %s5537_s5 = smov 128   ;;  %s5538_s0 = smov 8  }
  0x29   :  { %59 = dma.hbm_to_vmem [thread:$0]  %s6757_s26, 256, %s54_s2, [#allocation7], %s5537_s5, %s5537_s5, %s5538_s0  }
  0x2a   :  { %s6758_s1 = sld [smem:[#allocation27_spill]] }
  0x30   :  { %s5347_s8 = scalar_lea.hbm %s6758_s1, 256 }
  0x31   :  { %p5348_p8 = scmp.ne.s32.totalorder %s6758_s1, %s5347_s8  ;;  %p5351_p9 = scmp.lt.u32.totalorder %s5347_s8, %s6758_s1 }
  0x33   :  { %p5353_p10 = pnand %p5351_p9, %p5348_p8 }
  0x35   :  { %5356 = shalt.err (!%p5353_p10)
}
  0x36   :  { %s5357_s25 = scalar_lea.vmem %s5684_s30, 256  ;;  %p5362_p12 = scmp.lt.s32.totalorder %s5684_s30, %s5684_s30 }
  0x37   :  { %p5358_p11 = scmp.ne.s32.totalorder %s5684_s30, %s5357_s25  ;;  %p5363_p13 = scmp.lt.s32.totalorder %s5357_s25, %s5357_s25 }
  0x39   :  { %p5364_p0 = por %p5363_p13, %p5362_p12 }
  0x3b   :  { %p5365_p1 = pnand %p5364_p0, %p5358_p11 }
  0x3d   :  { %5368 = shalt.err (!%p5365_p1)
}
  0x3e   :  { %83 = dma.hbm_to_vmem [thread:$0]  %s6758_s1, 256, %s5684_s30, [#allocation10], %s5537_s5, %s5537_s5, %s5538_s0  }
  0x3f   :  { %s5539_s29 = smov [#allocation12]   ;;  %s5540_s7 = smov [#allocation3]  }
  0x40   :  { %s117_s6 = sshll.u32 %s5539_s29, 4  ;;  %s41_s3 = sshll.u32 %s5540_s7, 4  ;;  %s118_s6 = int_to_ptr.vmem [resolvable:$true] %s117_s6  ;;  %s5721_s3 = int_to_ptr.vmem [resolvable:$true] %s41_s3 }
  0x41   :  { %s5369_s27 = scalar_lea.hbm %s6723_s13, 1024 }
  0x42   :  { %p5370_p2 = scmp.ne.s32.totalorder %s6723_s13, %s5369_s27  ;;  %p5373_p3 = scmp.lt.u32.totalorder %s5369_s27, %s6723_s13 }
  0x44   :  { %p5375_p4 = pnand %p5373_p3, %p5370_p2 }
  0x46   :  { %5378 = shalt.err (!%p5375_p4)
}
  0x47   :  { %s5379_s30 = scalar_lea.vmem %s118_s6, 1024  ;;  %p5384_p6 = scmp.lt.s32.totalorder %s118_s6, %s118_s6 }
  0x48   :  { %p5380_p5 = scmp.ne.s32.totalorder %s118_s6, %s5379_s30  ;;  %p5385_p7 = scmp.lt.s32.totalorder %s5379_s30, %s5379_s30 }
  0x4a   :  { %p5386_p8 = por %p5385_p7, %p5384_p6 }
  0x4c   :  { %p5387_p9 = pnand %p5386_p8, %p5380_p5 }
  0x4e   :  { %5390 = shalt.err (!%p5387_p9)
}
  0x4f   :  { %123 = dma.hbm_to_vmem [thread:$0]  %s6723_s13, 1024, %s118_s6, [#allocation13], %s5537_s5, %s5537_s5, %s5538_s0  }
  0x50   :  { %s6759_s24 = sld [smem:[#allocation24_spill]] }
  0x56   :  { %s5391_s7 = scalar_lea.hbm %s6759_s24, 256 }
  0x57   :  { %p5392_p10 = scmp.ne.s32.totalorder %s6759_s24, %s5391_s7  ;;  %p5395_p11 = scmp.lt.u32.totalorder %s5391_s7, %s6759_s24 }
  0x59   :  { %p5397_p12 = pnand %p5395_p11, %p5392_p10 }
  0x5b   :  { %5400 = shalt.err (!%p5397_p12)
}
  0x5c   :  { %s5401_s28 = scalar_lea.vmem %s5721_s3, 256  ;;  %p5406_p0 = scmp.lt.s32.totalorder %s5721_s3, %s5721_s3 }
  0x5d   :  { %p5402_p13 = scmp.ne.s32.totalorder %s5721_s3, %s5401_s28  ;;  %p5407_p1 = scmp.lt.s32.totalorder %s5401_s28, %s5401_s28 }
  0x5f   :  { %p5408_p2 = por %p5407_p1, %p5406_p0 }
  0x61   :  { %p5409_p3 = pnand %p5408_p2, %p5402_p13 }
  0x63   :  { %5412 = shalt.err (!%p5409_p3)
}
  0x64   :  { %47 = dma.hbm_to_vmem [thread:$0]  %s6759_s24, 256, %s5721_s3, [#allocation4], %s5537_s5, %s5537_s5, %s5538_s0  }
  0x65   :  { %s5541_s9 = smov [#allocation8]   ;;  %s5542_s1 = smov [#allocation11]  }
  0x66   :  { %s65_s30 = sshll.u32 %s5541_s9, 4  ;;  %s105_s2 = sshll.u32 %s5542_s1, 4  ;;  %s66_s30 = int_to_ptr.vmem [resolvable:$true] %s65_s30  ;;  %s5758_s2 = int_to_ptr.vmem [resolvable:$true] %s105_s2 }
  0x67   :  { %s6760_s7 = sld [smem:[#allocation26_spill]] }
  0x6d   :  { %s5413_s8 = scalar_lea.hbm %s6760_s7, 256 }
  0x6e   :  { %p5414_p4 = scmp.ne.s32.totalorder %s6760_s7, %s5413_s8  ;;  %p5417_p5 = scmp.lt.u32.totalorder %s5413_s8, %s6760_s7 }
  0x70   :  { %p5419_p6 = pnand %p5417_p5, %p5414_p4 }
  0x72   :  { %5422 = shalt.err (!%p5419_p6)
}
  0x73   :  { %s5423_s3 = scalar_lea.vmem %s66_s30, 256  ;;  %p5428_p8 = scmp.lt.s32.totalorder %s66_s30, %s66_s30 }
  0x74   :  { %p5424_p7 = scmp.ne.s32.totalorder %s66_s30, %s5423_s3  ;;  %p5429_p9 = scmp.lt.s32.totalorder %s5423_s3, %s5423_s3 }
  0x76   :  { %p5430_p10 = por %p5429_p9, %p5428_p8 }
  0x78   :  { %p5431_p11 = pnand %p5430_p10, %p5424_p7 }
  0x7a   :  { %5434 = shalt.err (!%p5431_p11)
}
  0x7b   :  { %71 = dma.hbm_to_vmem [thread:$0]  %s6760_s7, 256, %s66_s30, [#allocation7], %s5537_s5, %s5537_s5, %s5538_s0  }
  0x7c   :  { %s5435_s1 = scalar_lea.hbm %s6722_s12, 1024 }
  0x7d   :  { %p5436_p12 = scmp.ne.s32.totalorder %s6722_s12, %s5435_s1  ;;  %p5439_p13 = scmp.lt.u32.totalorder %s5435_s1, %s6722_s12 }
  0x7f   :  { %p5441_p0 = pnand %p5439_p13, %p5436_p12 }
  0x81   :  { %5444 = shalt.err (!%p5441_p0)
}
  0x82   :  { %s5445_s27 = scalar_lea.vmem %s5758_s2, 1024  ;;  %p5450_p2 = scmp.lt.s32.totalorder %s5758_s2, %s5758_s2 }
  0x83   :  { %p5446_p1 = scmp.ne.s32.totalorder %s5758_s2, %s5445_s27  ;;  %p5451_p3 = scmp.lt.s32.totalorder %s5445_s27, %s5445_s27 }
  0x85   :  { %p5452_p4 = por %p5451_p3, %p5450_p2 }
  0x87   :  { %p5453_p5 = pnand %p5452_p4, %p5446_p1 }
  0x89   :  { %5456 = shalt.err (!%p5453_p5)
}
  0x8a   :  { %111 = dma.hbm_to_vmem [thread:$0]  %s6722_s12, 1024, %s5758_s2, [#allocation10], %s5537_s5, %s5537_s5, %s5538_s0  }
  0x8b   :  { %s5543_s4 = smov [#allocation14]   ;;  %s5544_s3 = smov [#allocation15]  }
  0x8c   :  { %s129_s28 = sshll.u32 %s5543_s4, 4  ;;  %s141_s24 = sshll.u32 %s5544_s3, 4  ;;  %s130_s28 = int_to_ptr.vmem [resolvable:$true] %s129_s28  ;;  %s5795_s24 = int_to_ptr.vmem [resolvable:$true] %s141_s24 }
  0x8d   :  { %s5457_s9 = scalar_lea.hbm %s6724_s14, 1024 }
  0x8e   :  { %p5458_p6 = scmp.ne.s32.totalorder %s6724_s14, %s5457_s9  ;;  %p5461_p7 = scmp.lt.u32.totalorder %s5457_s9, %s6724_s14 }
  0x90   :  { %p5463_p8 = pnand %p5461_p7, %p5458_p6 }
  0x92   :  { %5466 = shalt.err (!%p5463_p8)
}
  0x93   :  { %s5467_s12 = scalar_lea.vmem %s130_s28, 1024  ;;  %p5472_p10 = scmp.lt.s32.totalorder %s130_s28, %s130_s28 }
  0x94   :  { %p5468_p9 = scmp.ne.s32.totalorder %s130_s28, %s5467_s12  ;;  %p5473_p11 = scmp.lt.s32.totalorder %s5467_s12, %s5467_s12 }
  0x96   :  { %p5474_p12 = por %p5473_p11, %p5472_p10 }
  0x98   :  { %p5475_p13 = pnand %p5474_p12, %p5468_p9 }
  0x9a   :  { %5478 = shalt.err (!%p5475_p13)
}
  0x9b   :  { %135 = dma.hbm_to_vmem [thread:$0]  %s6724_s14, 1024, %s130_s28, [#allocation13], %s5537_s5, %s5537_s5, %s5538_s0  }
  0x9c   :  { %s5479_s7 = scalar_lea.hbm %s6725_s15, 1024 }
  0x9d   :  { %p5480_p0 = scmp.ne.s32.totalorder %s6725_s15, %s5479_s7  ;;  %p5483_p1 = scmp.lt.u32.totalorder %s5479_s7, %s6725_s15 }
  0x9f   :  { %p5485_p2 = pnand %p5483_p1, %p5480_p0 }
  0xa1   :  { %5488 = shalt.err (!%p5485_p2)
}
  0xa2   :  { %s5489_s9 = scalar_lea.vmem %s5795_s24, 1024  ;;  %p5494_p4 = scmp.lt.s32.totalorder %s5795_s24, %s5795_s24 }
  0xa3   :  { %p5490_p3 = scmp.ne.s32.totalorder %s5795_s24, %s5489_s9  ;;  %p5495_p5 = scmp.lt.s32.totalorder %s5489_s9, %s5489_s9 }
  0xa5   :  { %p5496_p6 = por %p5495_p5, %p5494_p4 }
  0xa7   :  { %p5497_p7 = pnand %p5496_p6, %p5490_p3 }
  0xa9   :  { %5500 = shalt.err (!%p5497_p7)
}
  0xaa   :  { %147 = dma.hbm_to_vmem [thread:$0]  %s6725_s15, 1024, %s5795_s24, [#allocation16], %s5537_s5, %s5537_s5, %s5538_s0  }
  0xab   :  { %5523 = dma.done.wait [#allocation4], 256  }
  0xac   :  { %5524 = vsyncadd [#allocation4], 4294967040 }
  0xad   :  { %5525 = dma.done.wait [#allocation7], 512  }
  0xae   :  { %5526 = vsyncadd [#allocation7], 4294966784 }
  0xaf   :  { %5527 = dma.done.wait [#allocation10], 1280  }
  0xb0   :  { %5528 = vsyncadd [#allocation10], 4294966016 }
  0xb1   :  { %5529 = dma.done.wait [#allocation13], 2048  }
  0xb2   :  { %5530 = vsyncadd [#allocation13], 4294965248 }
  0xb3   :  { %5531 = dma.done.wait [#allocation16], 1024  }
  0xb4   :  { %5532 = vsyncadd [#allocation16], 4294966272  ;;  %vm207_vm0 = vcmask 523264   ;;  %s6763_s15 = sld [smem:[#allocation30_spill]]  ;;  %s6764_s2 = sld [smem:[#allocation29_spill]]  ;;  %v5872_v13 = vld [vmem:[#allocation3] sm:$0xff] }
  0xb5   :  { %vm5834_vm1 = vmpackc.low %vm207_vm0, %vm207_vm0  ;;  %4697 = vmatprep.mubr.msk.f32.mxu1 %vm207_vm0, %v5872_v13  ;;  %4678 = vmatprep.mubr.msk.f32.mxu0 %vm207_vm0, %v5872_v13  ;;  %v5924_v26 = vld [vmem:[#allocation3 + $0x8] sm:$0xff]  ;;  %v5545_v27 = vmov 0.0   ;;  %vm5546_vm2 = vmmov 0   ;;  %vm528_vm3 = vcmask 130048   ;;  %s6765_s28 = sld [smem:[#allocation31_spill]]  ;;  %s6766_s14 = sld [smem:[#allocation28_spill]] }
  0xb6   :  { %vm685_vm5 = vcmask 64512   ;;  %s5549_s1 = smov 80   ;;  %s5550_s26 = smov 16   ;;  %vm1198_vm6 = vcmask 261248   ;;  %vm1541_vm7 = vcmask 392448   ;;  %vm1884_vm8 = vcmask 523648  }
  0xb7   :  { %s5551_s24 = smov 32   ;;  %s6767_s12 = sld [smem:[#allocation32_spill]]  ;;  %v4149_v0 = vld [vmem:[%s6731_s21 + $0x28] sm:$0xff] }
  0xb8   :  { %s5552_s27 = smov 48   ;;  %s6768_s7 = sld [smem:[#allocation33_spill]] }
  0xb9   :  { %s5553_s30 = smov [#allocation17]  }
  0xba   :  { %v313_v1 = vld [vmem:[%s6763_s15] sm:$0xff]  ;;  %v314_v2 = vld [vmem:[%s6763_s15 + $0x8] sm:$0xff]  ;;  %v315_v6 = vld [vmem:[%s6763_s15 + $0x10] sm:$0xff] }
  0xbb   :  { %v199_v3 = vld [vmem:[%s6764_s2] sm:$0xff]  ;;  %v4998_v4 = vpack.c.bf16 %v314_v2, %v313_v1  ;;  %v200_v5 = vld [vmem:[%s6764_s2 + $0x8] sm:$0xff]  ;;  %v316_v7 = vld [vmem:[%s6763_s15 + $0x18] sm:$0xff] }
  0xbc   :  { %v4974_v8 = vpack.c.bf16 %v200_v5, %v199_v3  ;;  %v5004_v9 = vpack.c.bf16 %v316_v7, %v315_v6  ;;  %v201_v10 = vld [vmem:[%s6764_s2 + $0x10] sm:$0xff]  ;;  %v202_v11 = vld [vmem:[%s6764_s2 + $0x18] sm:$0xff]  ;;  %v317_v14 = vld [vmem:[%s6763_s15 + $0x20] sm:$0xff] }
  0xbd   :  { %5000 = vmatprep.subr.msk.bf16.mxu1 %vm5834_vm1, %v4998_v4  ;;  %v4980_v12 = vpack.c.bf16 %v202_v11, %v201_v10  ;;  %v318_v15 = vld [vmem:[%s6763_s15 + $0x28] sm:$0xff]  ;;  %v203_v16 = vld [vmem:[%s6764_s2 + $0x20] sm:$0xff]  ;;  %v319_v20 = vld [vmem:[%s6763_s15 + $0x30] sm:$0xff] }
  0xbe   :  { %5003 = vmatpush3.bf16.xpose.msk.msra.mxu1 %vm5834_vm1, %v4998_v4  ;;  %4976 = vmatprep.subr.msk.bf16.mxu0 %vm5834_vm1, %v4974_v8  ;;  %v204_v17 = vld [vmem:[%s6764_s2 + $0x28] sm:$0xff]  ;;  %v5010_v18 = vpack.c.bf16 %v318_v15, %v317_v14  ;;  %v320_v21 = vld [vmem:[%s6763_s15 + $0x38] sm:$0xff]  ;;  %v205_v22 = vld [vmem:[%s6764_s2 + $0x30] sm:$0xff]  ;;  %s5547_s15 = smov 112  }
  0xbf   :  { %4979 = vmatpush3.bf16.xpose.msk.msra.mxu0 %vm5834_vm1, %v4974_v8  ;;  %5006 = vmatprep.subr.msk.bf16.mxu1 %vm5834_vm1, %v5004_v9  ;;  %v4986_v19 = vpack.c.bf16 %v204_v17, %v203_v16  ;;  %v206_v23 = vld [vmem:[%s6764_s2 + $0x38] sm:$0xff]  ;;  %v5016_v24 = vpack.c.bf16 %v320_v21, %v319_v20  ;;  %v420_v32 = vld [vmem:[%s6765_s28] sm:$0xff]  ;;  %v421_v33 = vld [vmem:[%s6765_s28 + $0x8] sm:$0xff] }
  0xc0   :  { %4982 = vmatprep.subr.msk.bf16.mxu0 %vm5834_vm1, %v4980_v12  ;;  %v4992_v25 = vpack.c.bf16 %v206_v23, %v205_v22  ;;  %v422_v34 = vld [vmem:[%s6765_s28 + $0x10] sm:$0xff]  ;;  %v5022_v35 = vpack.c.bf16 %v421_v33, %v420_v32  ;;  %v423_v36 = vld [vmem:[%s6765_s28 + $0x18] sm:$0xff]  ;;  %v424_v38 = vld [vmem:[%s6765_s28 + $0x20] sm:$0xff] }
  0xc1   :  { %v5028_v37 = vpack.c.bf16 %v423_v36, %v422_v34  ;;  %v425_v39 = vld [vmem:[%s6765_s28 + $0x28] sm:$0xff]  ;;  %v426_v41 = vld [vmem:[%s6765_s28 + $0x30] sm:$0xff]  ;;  %v427_v42 = vld [vmem:[%s6765_s28 + $0x38] sm:$0xff]  ;;  %s5548_s28 = smov 96  }
  0xc2   :  { %v5034_v40 = vpack.c.bf16 %v425_v39, %v424_v38  ;;  %v5040_v43 = vpack.c.bf16 %v427_v42, %v426_v41  ;;  %v6007_v44 = vld [vmem:[%s6766_s14] sm:$0xff] }
  0xc3   :  { %vm527_vm4 = vcmp.eq.f32.partialorder %v6007_v44, 0.0 }
  0xc6   :  { %5009 = vmatpush3.bf16.xpose.msk.msra.mxu1 %vm5834_vm1, %v5004_v9 }
  0xc7   :  { %4985 = vmatpush3.bf16.xpose.msk.msra.mxu0 %vm5834_vm1, %v4980_v12  ;;  %5012 = vmatprep.subr.msk.bf16.mxu1 %vm5834_vm1, %v5010_v18 }
  0xc8   :  { %4988 = vmatprep.subr.msk.bf16.mxu0 %vm5834_vm1, %v4986_v19 }
  0xce   :  { %5015 = vmatpush3.bf16.xpose.msk.msra.mxu1 %vm5834_vm1, %v5010_v18 }
  0xcf   :  { %4991 = vmatpush3.bf16.xpose.msk.msra.mxu0 %vm5834_vm1, %v4986_v19  ;;  %5018 = vmatprep.subr.msk.bf16.mxu1 %vm5834_vm1, %v5016_v24 }
  0xd0   :  { %4994 = vmatprep.subr.msk.bf16.mxu0 %vm5834_vm1, %v4992_v25 }
  0xd6   :  { %5021 = vmatpush3.bf16.xpose.msk.msra.mxu1 %vm5834_vm1, %v5016_v24 }
  0xd7   :  { %4997 = vmatpush3.bf16.xpose.msk.msra.mxu0 %vm5834_vm1, %v4992_v25  ;;  %4719 = vmatprep.subr.mxu1 %v5545_v27 }
  0xd8   :  { %5024 = vmatprep.subr.msk.bf16.mxu0 %vm5834_vm1, %v5022_v35 }
  0xdd   :  { %4698 = vmatmul.mubr.msk.f32.vlgmr.msra.gmra.mrb[0].mxu1 %vm207_vm0, %v5924_v26 }
  0xde   :  { %4679 = vmatmul.mubr.msk.f32.vlgmr.msra.gmra.mrb[0].mxu0 %vm207_vm0, %v5924_v26  ;;  %4721 = vmatprep.mubr.msk.f32.mxu1 %vm5546_vm2, %v5545_v27 }
  0xdf   :  { %4716 = vmatprep.mubr.msk.f32.mxu0 %vm207_vm0, %v5872_v13  ;;  %5027 = vmatpush3.bf16.xpose.msk.msra.mxu0 %vm5834_vm1, %v5022_v35 }
  0xe0   :  { %5030 = vmatprep.subr.msk.bf16.mxu0 %vm5834_vm1, %v5028_v37 }
  0xe7   :  { %5033 = vmatpush3.bf16.xpose.msk.msra.mxu0 %vm5834_vm1, %v5028_v37 }
  0xe8   :  { %5036 = vmatprep.subr.msk.bf16.mxu0 %vm5834_vm1, %v5034_v40 }
  0xef   :  { %5039 = vmatpush3.bf16.xpose.msk.msra.mxu0 %vm5834_vm1, %v5034_v40 }
  0xf0   :  { %5042 = vmatprep.subr.msk.bf16.mxu0 %vm5834_vm1, %v5040_v43 }
  0xf7   :  { %5045 = vmatpush3.bf16.xpose.msk.msra.mxu0 %vm5834_vm1, %v5040_v43 }
  0xf8   :  { %4759 = vmatprep.subr.mxu0 %v5545_v27 }
  0xfe   :  { %4717 = vmatmul.mubr.msk.f32.vlgmr.msra.gmra.mrb[2].mxu0 %vm207_vm0, %v5924_v26 }
  0xff   :  { %4761 = vmatprep.mubr.msk.f32.mxu0 %vm5546_vm2, %v5545_v27 }
 0x1b0   :  { %v5935_v28 = vpop.f32.mrb[0].mxu1 }
 0x1b1   :  { %v5937_v29 = vpop.f32.mrb[1].mxu1  ;;  %v5939_v30 = vpop.f32.mrb[0].mxu0 }
 0x1b2   :  { %4720 = vmatpush3.xpose.msk.msra.mxu1 %vm528_vm3, %v5937_v29  ;;  %v5943_v31 = vpop.f32.mrb[1].mxu0 }
 0x1b3   :  { %856 = vrot.lane.b32.xlu1 %v5943_v31, %s5547_s15  ;;  %4724 = vmatprep.subr.mxu1 %v5545_v27 }
 0x1b5   :  { %4722 = vmatmul.mubr.msk.f32.vlgmr.msra.gmra.mrb[2].mxu1 %vm528_vm3, %v5943_v31 }
 0x1b6   :  { %4725 = vmatpush3.xpose.msk.msra.mxu1 %vm528_vm3, %v5935_v28  ;;  %4726 = vmatprep.mubr.msk.f32.mxu1 %vm5546_vm2, %v5545_v27 }
 0x1b7   :  { %4729 = vmatprep.subr.mxu1 %v5545_v27 }
 0x1b9   :  { %4727 = vmatmul.mubr.msk.f32.vlgmr.msra.gmra.mrb[4].mxu1 %vm528_vm3, %v5939_v30 }
 0x1ba   :  { %4731 = vmatprep.mubr.msk.f32.mxu1 %vm5546_vm2, %v5545_v27 }
 0x1d1   :  { %v6022_v63 = vpop.f32.mrb[2].mxu0 }
 0x1d2   :  { %v6024_v1 = vpop.f32.mrb[3].mxu0 }
 0x1d3   :  { %4730 = vmatpush3.msra.mxu1 %v6024_v1 }
 0x1d4   :  { %4734 = vmatprep.subr.mxu1 %v5545_v27 }
 0x225   :  { %v857_v2 = vpop.permute.xlu1 %856 }
 0x288   :  { %v601_v45 = vpop.f32.mrb[2].mxu1 }
 0x289   :  { %v683_v46 = vsel %vm527_vm4, 1.25e-21, %v601_v45  ;;  %v4723_v47 = vpop.f32.mrb[3].mxu1 }
 0x28a   :  { %v686_v48 = vsel %vm685_vm5, %v683_v46, -inf }
 0x28b   :  { %687 = vmax.xlane.f32.xlu0 %v686_v48 }
 0x28c   :  { %v677_v49 = vpop.f32.mrb[4].mxu1 }
 0x28d   :  { %v684_v50 = vsel %vm527_vm4, 1.25e-21, %v677_v49  ;;  %v4728_v51 = vpop.f32.mrb[5].mxu1 }
 0x28e   :  { %v689_v52 = vsel %vm685_vm5, %v684_v50, -inf }
 0x28f   :  { %690 = vmax.xlane.f32.xlu0 %v689_v52 }
 0x2a5   :  { %858 = vrot.lane.b32.xlu0 %v5937_v29, %s5547_s15 }
 0x318   :  { %v688_v53 = vpop.xlane.xlu0 %687 }
 0x319   :  { %v692_v54 = vsub.f32 %v683_v46, %v688_v53 }
 0x31b   :  { %v694_v55 = vmul.f32 1.442695, %v692_v54 }
 0x31c   :  { %v691_v56 = vpop.xlane.xlu0 %690 }
 0x31d   :  { %5249 = vpow2.f32 %v694_v55  ;;  %v693_v57 = vsub.f32 %v684_v50, %v691_v56 }
 0x31f   :  { %v696_v58 = vmul.f32 1.442695, %v693_v57 }
 0x320   :  { %v859_v9 = vpop.permute.xlu0 %858 }
 0x321   :  { %5251 = vpow2.f32 %v696_v58 }
 0x327   :  { %v5250_v59 = vpop.eup %5249 }
 0x328   :  { %v698_v60 = vsel %vm685_vm5, %v5250_v59, 0.0 }
 0x329   :  { %699 = vadd.xlane.f32.xlu1 %v698_v60 }
 0x32b   :  { %v5252_v61 = vpop.eup %5251 }
 0x32c   :  { %v701_v62 = vsel %vm685_vm5, %v5252_v61, 0.0 }
 0x32d   :  { %702 = vadd.xlane.f32.xlu1 %v701_v62 }
 0x33e   :  { %936 = vrot.lane.b32.xlu1 %v5935_v28, %s5547_s15 }
 0x342   :  { %934 = vrot.lane.b32.xlu1 %v5939_v30, %s5547_s15 }
 0x3b6   :  { %v700_v3 = vpop.xlane.xlu1 %699 }
 0x3b7   :  { %5253 = vrcp.f32 %v700_v3 }
 0x3ba   :  { %v703_v4 = vpop.xlane.xlu1 %702 }
 0x3bb   :  { %5255 = vrcp.f32 %v703_v4 }
 0x3be   :  { %v937_v10 = vpop.permute.xlu1 %936 }
 0x3c1   :  { %v5254_v5 = vpop.eup %5253 }
 0x3c2   :  { %v706_v6 = vmul.f32 %v5254_v5, %v5250_v59  ;;  %v935_v11 = vpop.permute.xlu1 %934 }
 0x3c4   :  { %4732 = vmatmul.mubr.msk.f32.vlgmr.msra.gmra.mrb[6].mxu1 %vm685_vm5, %v706_v6 }
 0x3c5   :  { %v5256_v7 = vpop.eup %5255  ;;  %4735 = vmatpush3.msra.mxu1 %v6022_v63  ;;  %4736 = vmatprep.mubr.msk.f32.mxu1 %vm5546_vm2, %v5545_v27 }
 0x3c6   :  { %v707_v8 = vmul.f32 %v5256_v7, %v5252_v61  ;;  %4739 = vmatprep.subr.mxu1 %v5545_v27 }
 0x3c8   :  { %4737 = vmatmul.mubr.msk.f32.vlgmr.msra.gmra.mrb[8].mxu1 %vm685_vm5, %v707_v8 }
 0x3c9   :  { %4741 = vmatprep.mubr.msk.f32.mxu1 %vm5546_vm2, %v5545_v27 }
 0x3cc   :  { %4740 = vmatpush3.xpose.msk.msra.mxu1 %vm528_vm3, %v859_v9 }
 0x3cd   :  { %4744 = vmatprep.subr.mxu1 %v5545_v27 }
 0x3cf   :  { %4742 = vmatmul.mubr.msk.f32.vlgmr.msra.gmra.mrb[10].mxu1 %vm528_vm3, %v857_v2 }
 0x3d0   :  { %4745 = vmatpush3.xpose.msk.msra.mxu1 %vm528_vm3, %v937_v10  ;;  %4746 = vmatprep.mubr.msk.f32.mxu1 %vm5546_vm2, %v5545_v27 }
 0x3d1   :  { %4749 = vmatprep.subr.mxu1 %v5545_v27 }
 0x3d3   :  { %4747 = vmatmul.mubr.msk.f32.vlgmr.msra.gmra.mrb[12].mxu1 %vm528_vm3, %v935_v11 }
 0x3d4   :  { %4751 = vmatprep.mubr.msk.f32.mxu1 %vm5546_vm2, %v5545_v27 }
 0x497   :  { %v777_v12 = vpop.f32.mrb[6].mxu1 }
 0x498   :  { %854 = vst.msk [vmem:[#allocation2] sm:$0xff] %vm528_vm3, %v777_v12  ;;  %v4733_v14 = vpop.f32.mrb[7].mxu1 }
 0x49b   :  { %v850_v15 = vpop.f32.mrb[8].mxu1 }
 0x49c   :  { %855 = vst.msk [vmem:[#allocation2 + $0x8] sm:$0xff] %vm528_vm3, %v850_v15  ;;  %v4738_v16 = vpop.f32.mrb[9].mxu1 }
 0x4a2   :  { %v930_v17 = vpop.f32.mrb[10].mxu1 }
 0x4a3   :  { %v1012_v18 = vsel %vm527_vm4, 1.25e-21, %v930_v17  ;;  %v4743_v19 = vpop.f32.mrb[11].mxu1 }
 0x4a4   :  { %v1014_v20 = vsel %vm685_vm5, %v1012_v18, -inf }
 0x4a5   :  { %1015 = vmax.xlane.f32.xlu0 %v1014_v20 }
 0x4a6   :  { %v1008_v21 = vpop.f32.mrb[12].mxu1 }
 0x4a7   :  { %v1013_v22 = vsel %vm527_vm4, 1.25e-21, %v1008_v21  ;;  %v4748_v23 = vpop.f32.mrb[13].mxu1 }
 0x4a8   :  { %v1017_v24 = vsel %vm685_vm5, %v1013_v22, -inf }
 0x4a9   :  { %1018 = vmax.xlane.f32.xlu1 %v1017_v24 }
 0x4ba   :  { %1114 = vrot.lane.b32.xlu1 %v6022_v63, %s5547_s15 }
 0x4be   :  { %1203 = vrot.lane.b32.xlu1 %v5937_v29, %s5548_s28 }
 0x4c2   :  { %1281 = vrot.lane.b32.xlu1 %v5935_v28, %s5548_s28 }
 0x4c6   :  { %1279 = vrot.lane.b32.xlu1 %v5939_v30, %s5548_s28 }
 0x532   :  { %v1016_v25 = vpop.xlane.xlu0 %1015 }
 0x533   :  { %v1020_v32 = vsub.f32 %v1012_v18, %v1016_v25 }
 0x535   :  { %v1022_v33 = vmul.f32 1.442695, %v1020_v32 }
 0x536   :  { %v1019_v34 = vpop.xlane.xlu1 %1018 }
 0x537   :  { %5257 = vpow2.f32 %v1022_v33  ;;  %v1021_v39 = vsub.f32 %v1013_v22, %v1019_v34 }
 0x539   :  { %v1024_v40 = vmul.f32 1.442695, %v1021_v39 }
 0x53a   :  { %v1115_v35 = vpop.permute.xlu1 %1114 }
 0x53b   :  { %5259 = vpow2.f32 %v1024_v40 }
 0x53e   :  { %v1204_v36 = vpop.permute.xlu1 %1203 }
 0x53f   :  { %4760 = vmatpush3.xpose.msk.msra.mxu0 %vm528_vm3, %v1204_v36 }
 0x540   :  { %4769 = vmatprep.subr.mxu0 %v5545_v27 }
 0x541   :  { %v5258_v37 = vpop.eup %5257 }
 0x542   :  { %v1026_v38 = vsel %vm685_vm5, %v5258_v37, 0.0  ;;  %v1282_v51 = vpop.permute.xlu1 %1281 }
 0x543   :  { %1027 = vadd.xlane.f32.xlu0 %v1026_v38 }
 0x545   :  { %v5260_v41 = vpop.eup %5259 }
 0x546   :  { %v1029_v42 = vsel %vm685_vm5, %v5260_v41, 0.0  ;;  %v1280_v53 = vpop.permute.xlu1 %1279 }
 0x559   :  { %1037 = vrot.lane.b32.xlu0 %v6024_v1, %s5547_s15 }
 0x578   :  { %1030 = vadd.xlane.f32.xlu0 %v1029_v42 }
 0x58e   :  { %1201 = vrot.lane.b32.xlu0 %v5943_v31, %s5548_s28 }
 0x5d0   :  { %v1028_v43 = vpop.xlane.xlu0 %1027 }
 0x5d1   :  { %5261 = vrcp.f32 %v1028_v43 }
 0x5d4   :  { %v1038_v45 = vpop.permute.xlu0 %1037 }
 0x5d5   :  { %4750 = vmatpush3.msra.mxu1 %v1038_v45 }
 0x5d6   :  { %4754 = vmatprep.subr.mxu1 %v5545_v27 }
 0x5db   :  { %v5262_v46 = vpop.eup %5261 }
 0x5dc   :  { %v1034_v47 = vmul.f32 %v5262_v46, %v5258_v37 }
 0x5de   :  { %4752 = vmatmul.mubr.msk.f32.vlgmr.msra.gmra.mrb[14].mxu1 %vm685_vm5, %v1034_v47 }
 0x5df   :  { %4755 = vmatpush3.msra.mxu1 %v1115_v35  ;;  %4756 = vmatprep.mubr.msk.f32.mxu1 %vm5546_vm2, %v5545_v27 }
 0x5e0   :  { %4764 = vmatprep.subr.mxu1 %v5545_v27 }
 0x605   :  { %v1031_v48 = vpop.xlane.xlu0 %1030 }
 0x606   :  { %5263 = vrcp.f32 %v1031_v48 }
 0x609   :  { %v1202_v49 = vpop.permute.xlu0 %1201 }
 0x60a   :  { %4762 = vmatmul.mubr.msk.f32.vlgmr.msra.gmra.mrb[4].mxu0 %vm528_vm3, %v1202_v49 }
 0x60b   :  { %4771 = vmatprep.mubr.msk.f32.mxu0 %vm5546_vm2, %v5545_v27 }
 0x610   :  { %v5264_v50 = vpop.eup %5263 }
 0x611   :  { %v1035_v52 = vmul.f32 %v5264_v50, %v5260_v41 }
 0x613   :  { %4757 = vmatmul.mubr.msk.f32.vlgmr.msra.gmra.mrb[16].mxu1 %vm685_vm5, %v1035_v52 }
 0x614   :  { %4765 = vmatpush3.xpose.msk.msra.mxu1 %vm528_vm3, %v1282_v51  ;;  %4766 = vmatprep.mubr.msk.f32.mxu1 %vm5546_vm2, %v5545_v27 }
 0x615   :  { %4774 = vmatprep.subr.mxu1 %v5545_v27 }
 0x617   :  { %4767 = vmatmul.mubr.msk.f32.vlgmr.msra.gmra.mrb[18].mxu1 %vm528_vm3, %v1280_v53 }
 0x618   :  { %4776 = vmatprep.mubr.msk.f32.mxu1 %vm5546_vm2, %v5545_v27 }
 0x6b1   :  { %v6088_v54 = vpop.f32.mrb[14].mxu1 }
 0x6b2   :  { %v4753_v55 = vpop.f32.mrb[15].mxu1 }
 0x6dd   :  { %v1275_v56 = vpop.f32.mrb[4].mxu0 }
 0x6de   :  { %v1357_v57 = vsel %vm527_vm4, 1.25e-21, %v1275_v56  ;;  %v4763_v58 = vpop.f32.mrb[5].mxu0 }
 0x6df   :  { %v1359_v59 = vsel %vm685_vm5, %v1357_v57, -inf }
 0x6e0   :  { %1360 = vmax.xlane.f32.xlu0 %v1359_v59 }
 0x6e6   :  { %v6093_v60 = vpop.f32.mrb[16].mxu1 }
 0x6e7   :  { %v4758_v61 = vpop.f32.mrb[17].mxu1 }
 0x6ea   :  { %v1353_v62 = vpop.f32.mrb[18].mxu1 }
 0x6eb   :  { %v1358_v2 = vsel %vm527_vm4, 1.25e-21, %v1353_v62  ;;  %v4768_v3 = vpop.f32.mrb[19].mxu1 }
 0x6ec   :  { %v1362_v4 = vsel %vm685_vm5, %v1358_v2, -inf  ;;  %v1891_v3 = vld [vmem:[%s6767_s12 + $0x10] sm:$0xff] }
 0x6ed   :  { %1363 = vmax.xlane.f32.xlu1 %v1362_v4 }
 0x6fe   :  { %1457 = vrot.lane.b32.xlu1 %v6022_v63, %s5548_s28 }
 0x702   :  { %1546 = vrot.lane.b32.xlu1 %v5937_v29, %s5549_s1 }
 0x706   :  { %1624 = vrot.lane.b32.xlu1 %v5935_v28, %s5549_s1 }
 0x70a   :  { %1622 = vrot.lane.b32.xlu1 %v5939_v30, %s5549_s1 }
 0x76d   :  { %v1361_v5 = vpop.xlane.xlu0 %1360 }
 0x76e   :  { %v1365_v6 = vsub.f32 %v1357_v57, %v1361_v5  ;;  %v1892_v5 = vld [vmem:[%s6767_s12 + $0x18] sm:$0xff] }
 0x770   :  { %v1367_v7 = vmul.f32 1.442695, %v1365_v6  ;;  %v5052_v6 = vpack.c.bf16 %v1892_v5, %v1891_v3  ;;  %v195_v3 = vld [vmem:[#allocation8 + $0x8] sm:$0xff] }
 0x771   :  { %v2283_v5 = vld [vmem:[#allocation14 + $0x8] sm:$0xff] }
 0x772   :  { %5265 = vpow2.f32 %v1367_v7  ;;  %v1893_v7 = vld [vmem:[%s6767_s12 + $0x20] sm:$0xff] }
 0x77a   :  { %v1364_v8 = vpop.xlane.xlu1 %1363 }
 0x77b   :  { %v1366_v28 = vsub.f32 %v1358_v2, %v1364_v8  ;;  %v1890_v2 = vld [vmem:[%s6767_s12 + $0x8] sm:$0xff] }
 0x77c   :  { %v5266_v9 = vpop.eup %5265  ;;  %v1894_v8 = vld [vmem:[%s6767_s12 + $0x28] sm:$0xff] }
 0x77d   :  { %v1371_v10 = vsel %vm685_vm5, %v5266_v9, 0.0  ;;  %v1369_v29 = vmul.f32 1.442695, %v1366_v28 }
 0x77e   :  { %1372 = vadd.xlane.f32.xlu0 %v1371_v10  ;;  %v1458_v11 = vpop.permute.xlu1 %1457  ;;  %v1895_v10 = vld [vmem:[%s6767_s12 + $0x30] sm:$0xff] }
 0x77f   :  { %4775 = vmatpush3.msra.mxu1 %v1458_v11  ;;  %5267 = vpow2.f32 %v1369_v29  ;;  %v1896_v11 = vld [vmem:[%s6767_s12 + $0x38] sm:$0xff] }
 0x780   :  { %4784 = vmatprep.subr.mxu1 %v5545_v27  ;;  %v5064_v28 = vpack.c.bf16 %v1896_v11, %v1895_v10 }
 0x782   :  { %v1547_v18 = vpop.permute.xlu1 %1546 }
 0x786   :  { %v1625_v21 = vpop.permute.xlu1 %1624 }
 0x789   :  { %v5268_v30 = vpop.eup %5267 }
 0x78a   :  { %v1374_v12 = vsel %vm685_vm5, %v5268_v30, 0.0  ;;  %v1623_v23 = vpop.permute.xlu1 %1622 }
 0x794   :  { %1381 = vrot.lane.b32.xlu0 %v6024_v1, %s5548_s28 }
 0x7b3   :  { %1375 = vadd.xlane.f32.xlu0 %v1374_v12 }
 0x7c9   :  { %1544 = vrot.lane.b32.xlu0 %v5943_v31, %s5549_s1 }
 0x80b   :  { %v1373_v14 = vpop.xlane.xlu0 %1372 }
 0x80c   :  { %5269 = vrcp.f32 %v1373_v14 }
 0x80f   :  { %v1382_v15 = vpop.permute.xlu0 %1381 }
 0x810   :  { %4770 = vmatpush3.msra.mxu0 %v1382_v15 }
 0x811   :  { %4779 = vmatprep.subr.mxu0 %v5545_v27 }
 0x816   :  { %v5270_v16 = vpop.eup %5269 }
 0x817   :  { %v1379_v17 = vmul.f32 %v5270_v16, %v5266_v9  ;;  %v5058_v9 = vpack.c.bf16 %v1894_v8, %v1893_v7 }
 0x819   :  { %4772 = vmatmul.mubr.msk.f32.vlgmr.msra.gmra.mrb[6].mxu0 %vm685_vm5, %v1379_v17 }
 0x81a   :  { %4780 = vmatpush3.xpose.msk.msra.mxu0 %vm528_vm3, %v1547_v18  ;;  %4781 = vmatprep.mubr.msk.f32.mxu0 %vm5546_vm2, %v5545_v27 }
 0x81b   :  { %4789 = vmatprep.subr.mxu0 %v5545_v27 }
 0x840   :  { %v1376_v19 = vpop.xlane.xlu0 %1375 }
 0x841   :  { %5271 = vrcp.f32 %v1376_v19  ;;  %v4365_v19 = vld [vmem:[%s6768_s7] ss:$0 sm:$0xff]  ;;  %s4295_s7 = sshll.u32 %s5553_s30, 4  ;;  %s4296_s7 = int_to_ptr.vmem [resolvable:$true] %s4295_s7 }
 0x842   :  { %s5501_s4 = scalar_lea.vmem %s4296_s7, 256  ;;  %p5506_p9 = scmp.lt.s32.totalorder %s4296_s7, %s4296_s7 }
 0x843   :  { %p5502_p8 = scmp.ne.s32.totalorder %s4296_s7, %s5501_s4  ;;  %p5507_p10 = scmp.lt.s32.totalorder %s5501_s4, %s5501_s4 }
 0x844   :  { %v1545_v31 = vpop.permute.xlu0 %1544 }
 0x845   :  { %4782 = vmatmul.mubr.msk.f32.vlgmr.msra.gmra.mrb[8].mxu0 %vm528_vm3, %v1545_v31  ;;  %p5508_p11 = por %p5507_p10, %p5506_p9 }
 0x846   :  { %4791 = vmatprep.mubr.msk.f32.mxu0 %vm5546_vm2, %v5545_v27 }
 0x847   :  { %p5509_p12 = pnand %p5508_p11, %p5502_p8 }
 0x84b   :  { %v5272_v20 = vpop.eup %5271 }
 0x84c   :  { %v1380_v22 = vmul.f32 %v5272_v20, %v5268_v30 }
 0x84e   :  { %4777 = vmatmul.mubr.msk.f32.vlgmr.msra.gmra.mrb[20].mxu1 %vm685_vm5, %v1380_v22 }
 0x84f   :  { %4785 = vmatpush3.xpose.msk.msra.mxu1 %vm528_vm3, %v1625_v21  ;;  %4786 = vmatprep.mubr.msk.f32.mxu1 %vm5546_vm2, %v5545_v27 }
 0x850   :  { %4794 = vmatprep.subr.mxu1 %v5545_v27 }
 0x852   :  { %4787 = vmatmul.mubr.msk.f32.vlgmr.msra.gmra.mrb[22].mxu1 %vm528_vm3, %v1623_v23 }
 0x853   :  { %4796 = vmatprep.mubr.msk.f32.mxu1 %vm5546_vm2, %v5545_v27 }
 0x8ec   :  { %v1453_v24 = vpop.f32.mrb[6].mxu0 }
 0x8ed   :  { %v4773_v25 = vpop.f32.mrb[7].mxu0 }
 0x918   :  { %v1618_v32 = vpop.f32.mrb[8].mxu0 }
 0x919   :  { %v1700_v33 = vsel %vm527_vm4, 1.25e-21, %v1618_v32  ;;  %v4783_v34 = vpop.f32.mrb[9].mxu0 }
 0x91a   :  { %v1702_v35 = vsel %vm685_vm5, %v1700_v33, -inf  ;;  %v2170_v34 = vld [vmem:[#allocation12 + $0x8] sm:$0xff] }
 0x91b   :  { %1703 = vmax.xlane.f32.xlu0 %v1702_v35  ;;  %v2056_v35 = vld [vmem:[#allocation11] sm:$0xff] }
 0x921   :  { %v1529_v36 = vpop.f32.mrb[20].mxu1 }
 0x922   :  { %v4778_v37 = vpop.f32.mrb[21].mxu1 }
 0x923   :  { %v2057_v37 = vld [vmem:[#allocation11 + $0x8] sm:$0xff] }
 0x925   :  { %v1696_v38 = vpop.f32.mrb[22].mxu1 }
 0x926   :  { %v1701_v39 = vsel %vm527_vm4, 1.25e-21, %v1696_v38  ;;  %v4788_v40 = vpop.f32.mrb[23].mxu1  ;;  %v2171_v38 = vld [vmem:[#allocation12 + $0x10] sm:$0xff] }
 0x927   :  { %v1705_v41 = vsel %vm685_vm5, %v1701_v39, -inf  ;;  %v5070_v40 = vpack.c.bf16 %v2057_v37, %v2056_v35 }
 0x928   :  { %1706 = vmax.xlane.f32.xlu1 %v1705_v41 }
 0x939   :  { %1800 = vrot.lane.b32.xlu1 %v6022_v63, %s5549_s1 }
 0x93d   :  { %1192 = vrot.lane.b32.xlu1 %v6088_v54, %s5550_s26 }
 0x941   :  { %1194 = vrot.lane.b32.xlu1 %v6093_v60, %s5550_s26 }
 0x945   :  { %1537 = vrot.lane.b32.xlu1 %v1529_v36, %s5551_s24 }
 0x9a8   :  { %v1704_v42 = vpop.xlane.xlu0 %1703 }
 0x9a9   :  { %v1708_v44 = vsub.f32 %v1700_v33, %v1704_v42  ;;  %v2169_v33 = vld [vmem:[#allocation12] sm:$0xff] }
 0x9aa   :  { %v5094_v36 = vpack.c.bf16 %v2170_v34, %v2169_v33  ;;  %v2288_v33 = vld [vmem:[#allocation14 + $0x30] sm:$0xff]  ;;  %v2289_v34 = vld [vmem:[#allocation14 + $0x38] sm:$0xff] }
 0x9ab   :  { %v1710_v43 = vmul.f32 1.442695, %v1708_v44  ;;  %v5136_v35 = vpack.c.bf16 %v2289_v34, %v2288_v33 }
 0x9ad   :  { %5273 = vpow2.f32 %v1710_v43 }
 0x9b5   :  { %v1707_v45 = vpop.xlane.xlu1 %1706 }
 0x9b6   :  { %v1709_v46 = vsub.f32 %v1701_v39, %v1707_v45  ;;  %v2172_v39 = vld [vmem:[#allocation12 + $0x18] sm:$0xff] }
 0x9b7   :  { %v5274_v47 = vpop.eup %5273  ;;  %v5100_v41 = vpack.c.bf16 %v2172_v39, %v2171_v38 }
 0x9b8   :  { %v1712_v48 = vmul.f32 1.442695, %v1709_v46  ;;  %v1714_v63 = vsel %vm685_vm5, %v5274_v47, 0.0 }
 0x9b9   :  { %1715 = vadd.xlane.f32.xlu0 %v1714_v63  ;;  %v1801_v49 = vpop.permute.xlu1 %1800 }
 0x9ba   :  { %5275 = vpow2.f32 %v1712_v48  ;;  %4795 = vmatpush3.msra.mxu1 %v1801_v49  ;;  %v2058_v49 = vld [vmem:[#allocation11 + $0x10] sm:$0xff] }
 0x9bb   :  { %5072 = vmatprep.subr.msk.bf16.mxu1 %vm5834_vm1, %v5070_v40 }
 0x9bd   :  { %v1193_v50 = vpop.permute.xlu1 %1192 }
 0x9be   :  { %1199 = vst.msk [vmem:[#allocation2] sm:$0xff] %vm1198_vm6, %v1193_v50  ;;  %v2059_v50 = vld [vmem:[#allocation11 + $0x18] sm:$0xff] }
 0x9c1   :  { %v1195_v51 = vpop.permute.xlu1 %1194 }
 0x9c2   :  { %1200 = vst.msk [vmem:[#allocation2 + $0x8] sm:$0xff] %vm1198_vm6, %v1195_v51  ;;  %v5076_v51 = vpack.c.bf16 %v2059_v50, %v2058_v49 }
 0x9c4   :  { %v5276_v52 = vpop.eup %5275 }
 0x9c5   :  { %v1538_v53 = vpop.permute.xlu1 %1537  ;;  %v1717_v54 = vsel %vm685_vm5, %v5276_v52, 0.0 }
 0x9c6   :  { %1543 = vst.msk [vmem:[#allocation2 + $0x8] sm:$0xff] %vm1541_vm7, %v1538_v53  ;;  %1718 = vadd.xlane.f32.xlu0 %v1717_v54  ;;  %v2174_v53 = vld [vmem:[#allocation12 + $0x28] sm:$0xff] }
 0x9dc   :  { %1724 = vrot.lane.b32.xlu0 %v6024_v1, %s5549_s1  ;;  %v1889_v1 = vld [vmem:[%s6767_s12] sm:$0xff]  ;;  %s6769_s12 = sld [smem:[#allocation34_spill]] }
 0x9dd   :  { %v5046_v4 = vpack.c.bf16 %v1890_v2, %v1889_v1  ;;  %v194_v2 = vld [vmem:[#allocation8] sm:$0xff] }
 0x9e0   :  { %1535 = vrot.lane.b32.xlu0 %v1453_v24, %s5551_s24 }
 0xa46   :  { %v1716_v55 = vpop.xlane.xlu0 %1715 }
 0xa47   :  { %5277 = vrcp.f32 %v1716_v55  ;;  %v2060_v55 = vld [vmem:[#allocation11 + $0x20] sm:$0xff] }
 0xa51   :  { %v5278_v57 = vpop.eup %5277 }
 0xa52   :  { %v1722_v58 = vmul.f32 %v5278_v57, %v5274_v47 }
 0xa53   :  { %v1719_v56 = vpop.xlane.xlu0 %1718 }
 0xa54   :  { %5279 = vrcp.f32 %v1719_v56  ;;  %v2061_v56 = vld [vmem:[#allocation11 + $0x28] sm:$0xff] }
 0xa55   :  { %v5082_v57 = vpack.c.bf16 %v2061_v56, %v2060_v55 }
 0xa57   :  { %v1725_v59 = vpop.permute.xlu0 %1724 }
 0xa58   :  { %4790 = vmatpush3.msra.mxu0 %v1725_v59  ;;  %v2176_v59 = vld [vmem:[#allocation12 + $0x38] sm:$0xff] }
 0xa59   :  { %4792 = vmatmul.mubr.msk.f32.vlgmr.msra.gmra.mrb[10].mxu0 %vm685_vm5, %v1722_v58  ;;  %5048 = vmatprep.subr.msk.bf16.mxu0 %vm5834_vm1, %v5046_v4  ;;  %v2175_v58 = vld [vmem:[#allocation12 + $0x30] sm:$0xff] }
 0xa5b   :  { %v1536_v60 = vpop.permute.xlu0 %1535 }
 0xa5c   :  { %1542 = vst.msk [vmem:[#allocation2] sm:$0xff] %vm1541_vm7, %v1536_v60  ;;  %v5112_v60 = vpack.c.bf16 %v2176_v59, %v2175_v58 }
 0xa5e   :  { %v5280_v61 = vpop.eup %5279 }
 0xa5f   :  { %v1723_v62 = vmul.f32 %v5280_v61, %v5276_v52  ;;  %5051 = vmatpush3.bf16.xpose.msk.msra.mxu0 %vm5834_vm1, %v5046_v4  ;;  %v2173_v52 = vld [vmem:[#allocation12 + $0x20] sm:$0xff]  ;;  %v2062_v61 = vld [vmem:[#allocation11 + $0x30] sm:$0xff] }
 0xa60   :  { %5054 = vmatprep.subr.msk.bf16.mxu0 %vm5834_vm1, %v5052_v6  ;;  %v5106_v54 = vpack.c.bf16 %v2174_v53, %v2173_v52  ;;  %v2282_v4 = vld [vmem:[#allocation14] sm:$0xff] }
 0xa61   :  { %4797 = vmatmul.mubr.msk.f32.vlgmr.msra.gmra.mrb[24].mxu1 %vm685_vm5, %v1723_v62  ;;  %v2063_v62 = vld [vmem:[#allocation11 + $0x38] sm:$0xff] }
 0xa62   :  { %5075 = vmatpush3.bf16.xpose.msk.msra.mxu1 %vm5834_vm1, %v5070_v40  ;;  %v5088_v1 = vpack.c.bf16 %v2063_v62, %v2062_v61 }
 0xa63   :  { %5078 = vmatprep.subr.msk.bf16.mxu1 %vm5834_vm1, %v5076_v51 }
 0xa67   :  { %5057 = vmatpush3.bf16.xpose.msk.msra.mxu0 %vm5834_vm1, %v5052_v6  ;;  %v5118_v6 = vpack.c.bf16 %v2283_v5, %v2282_v4 }
 0xa68   :  { %5060 = vmatprep.subr.msk.bf16.mxu0 %vm5834_vm1, %v5058_v9 }
 0xa6a   :  { %5081 = vmatpush3.bf16.xpose.msk.msra.mxu1 %vm5834_vm1, %v5076_v51 }
 0xa6b   :  { %5084 = vmatprep.subr.msk.bf16.mxu1 %vm5834_vm1, %v5082_v57 }
 0xa6f   :  { %5063 = vmatpush3.bf16.xpose.msk.msra.mxu0 %vm5834_vm1, %v5058_v9 }
 0xa70   :  { %5066 = vmatprep.subr.msk.bf16.mxu0 %vm5834_vm1, %v5064_v28 }
 0xa72   :  { %5087 = vmatpush3.bf16.xpose.msk.msra.mxu1 %vm5834_vm1, %v5082_v57 }
 0xa73   :  { %5090 = vmatprep.subr.msk.bf16.mxu1 %vm5834_vm1, %v5088_v1 }
 0xa77   :  { %5069 = vmatpush3.bf16.xpose.msk.msra.mxu0 %vm5834_vm1, %v5064_v28 }
 0xa78   :  { %5096 = vmatprep.subr.msk.bf16.mxu0 %vm5834_vm1, %v5094_v36 }
 0xa7a   :  { %5093 = vmatpush3.bf16.xpose.msk.msra.mxu1 %vm5834_vm1, %v5088_v1 }
 0xa7b   :  { %5120 = vmatprep.subr.msk.bf16.mxu1 %vm5834_vm1, %v5118_v6 }
 0xb2c   :  { %v1796_v29 = vpop.f32.mrb[10].mxu0 }
 0xb2d   :  { %1878 = vrot.lane.b32.xlu0 %v1796_v29, %s5552_s27  ;;  %v4793_v30 = vpop.f32.mrb[11].mxu0 }
 0xb2e   :  { %v4376_v30 = vld [vmem:[%s6720_s10] ss:$0 sm:$0xff] }
 0xb34   :  { %v1872_v12 = vpop.f32.mrb[24].mxu1 }
 0xb35   :  { %1880 = vrot.lane.b32.xlu1 %v1872_v12, %s5552_s27  ;;  %v4798_v14 = vpop.f32.mrb[25].mxu1 }
 0xb36   :  { %v4377_v14 = vld [vmem:[%s6721_s11] ss:$0 sm:$0xff] }
 0xb9f   :  { %v1879_v15 = vpop.permute.xlu0 %1878 }
 0xba0   :  { %1885 = vst.msk [vmem:[#allocation2] sm:$0xff] %vm1884_vm8, %v1879_v15 }
 0xba7   :  { %v1881_v16 = vpop.permute.xlu1 %1880  ;;  %v1887_v17 = vld [vmem:[#allocation2] sm:$0xff] }
 0xba8   :  { %1886 = vst.msk [vmem:[#allocation2 + $0x8] sm:$0xff] %vm1884_vm8, %v1881_v16  ;;  %4815 = vmatprep.mubr.msk.f32.mxu0 %vm207_vm0, %v1887_v17 }
 0xbaf   :  { %v1888_v18 = vld [vmem:[#allocation2 + $0x8] sm:$0xff] }
 0xbb0   :  { %4816 = vmatmul.mubr.msk.f32.vlgmr.msra.gmra.mrb[12].mxu0 %vm207_vm0, %v1888_v18 }
 0xbb1   :  { %5099 = vmatpush3.bf16.xpose.msk.msra.mxu0 %vm5834_vm1, %v5094_v36  ;;  %4853 = vmatprep.mubr.msk.f32.mxu0 %vm207_vm0, %v194_v2  ;;  %v193_v36 = vld [vmem:[#allocation6 + $0x8] sm:$0xff] }
 0xbb2   :  { %5102 = vmatprep.subr.msk.bf16.mxu0 %vm5834_vm1, %v5100_v41 }
 0xbb9   :  { %5105 = vmatpush3.bf16.xpose.msk.msra.mxu0 %vm5834_vm1, %v5100_v41 }
 0xbba   :  { %5108 = vmatprep.subr.msk.bf16.mxu0 %vm5834_vm1, %v5106_v54 }
 0xbc1   :  { %5111 = vmatpush3.bf16.xpose.msk.msra.mxu0 %vm5834_vm1, %v5106_v54 }
 0xbc2   :  { %5114 = vmatprep.subr.msk.bf16.mxu0 %vm5834_vm1, %v5112_v60 }
 0xbc9   :  { %5117 = vmatpush3.bf16.xpose.msk.msra.mxu0 %vm5834_vm1, %v5112_v60 }
 0xbca   :  { %4875 = vmatprep.subr.mxu0 %v5545_v27 }
 0xbd0   :  { %4854 = vmatmul.mubr.msk.f32.vlgmr.msra.gmra.mrb[14].mxu0 %vm207_vm0, %v195_v3 }
 0xbd1   :  { %4877 = vmatprep.mubr.msk.f32.mxu0 %vm5546_vm2, %v5545_v27 }
 0xc83   :  { %v4817_v31 = vpop.f32.mrb[12].mxu0 }
 0xc84   :  { %v2006_v20 = vadd.f32 %v4817_v31, %v4365_v19  ;;  %v2000_v21 = vpop.f32.mrb[13].mxu0  ;;  %v2285_v31 = vld [vmem:[#allocation14 + $0x18] sm:$0xff] }
 0xc85   :  { %v2001_v22 = vadd.f32 %v4365_v19, %v2000_v21  ;;  %v2284_v19 = vld [vmem:[#allocation14 + $0x10] sm:$0xff] }
 0xc86   :  { %v2010_v23 = vadd.f32 %v2006_v20, %v5924_v26 }
 0xc87   :  { %v2009_v24 = vadd.f32 %v2001_v22, %v5872_v13  ;;  %v5124_v22 = vpack.c.bf16 %v2285_v31, %v2284_v19 }
 0xc88   :  { %v2016_v25 = vsel %vm207_vm0, %v2010_v23, 0.0 }
 0xc89   :  { %2017 = vadd.xlane.f32.xlu1 %v2016_v25  ;;  %v2013_v32 = vsel %vm207_vm0, %v2009_v24, 0.0  ;;  %v2287_v25 = vld [vmem:[#allocation14 + $0x28] sm:$0xff] }
 0xc8a   :  { %2014 = vadd.xlane.f32.xlu0 %v2013_v32 }
 0xca3   :  { %v6281_v37 = vpop.f32.mrb[14].mxu0 }
 0xca4   :  { %v6283_v38 = vpop.f32.mrb[15].mxu0 }
 0xca5   :  { %4876 = vmatpush3.xpose.msk.msra.mxu0 %vm528_vm3, %v6283_v38 }
 0xca6   :  { %4885 = vmatprep.subr.mxu0 %v5545_v27 }
 0xd16   :  { %v2018_v13 = vpop.xlane.xlu1 %2017 }
 0xd17   :  { %v2021_v26 = vmul.f32 0.015625, %v2018_v13  ;;  %v2015_v42 = vpop.xlane.xlu0 %2014 }
 0xd18   :  { %v2020_v44 = vmul.f32 0.015625, %v2015_v42  ;;  %v6313_v42 = vld [vmem:[#allocation9] sm:$0xff] }
 0xd19   :  { %v2023_v43 = vsub.f32 %v2010_v23, %v2021_v26  ;;  %v192_v23 = vld [vmem:[#allocation6] sm:$0xff]  ;;  %v6311_v26 = vld [vmem:[#allocation9 + $0x8] sm:$0xff]  ;;  %vm2395_vm10 = vcmp.eq.f32.partialorder %v6313_v42, 0.0 }
 0xd1a   :  { %v2022_v45 = vsub.f32 %v2009_v24, %v2020_v44  ;;  %v2286_v24 = vld [vmem:[#allocation14 + $0x20] sm:$0xff]  ;;  %vm2396_vm9 = vcmp.eq.f32.partialorder %v6311_v26, 0.0 }
 0xd1b   :  { %v2025_v48 = vmul.f32 %v2023_v43, %v2023_v43  ;;  %v5130_v32 = vpack.c.bf16 %v2287_v25, %v2286_v24 }
 0xd1c   :  { %v2024_v46 = vmul.f32 %v2022_v45, %v2022_v45 }
 0xd1d   :  { %v2029_v63 = vsel %vm207_vm0, %v2025_v48, 0.0 }
 0xd1e   :  { %v2026_v47 = vsel %vm207_vm0, %v2024_v46, 0.0 }
 0xd1f   :  { %2027 = vadd.xlane.f32.xlu0 %v2026_v47 }
 0xd23   :  { %2030 = vadd.xlane.f32.xlu0 %v2029_v63 }
 0xdac   :  { %v2028_v7 = vpop.xlane.xlu0 %2027 }
 0xdad   :  { %v2032_v8 = vmul.f32 0.015625, %v2028_v7 }
 0xdaf   :  { %v2034_v9 = vadd.f32 1e-05, %v2032_v8 }
 0xdb0   :  { %v2031_v10 = vpop.xlane.xlu0 %2030 }
 0xdb1   :  { %5281 = vrsqrt.f32 %v2034_v9  ;;  %v2033_v11 = vmul.f32 0.015625, %v2031_v10 }
 0xdb3   :  { %v2035_v28 = vadd.f32 1e-05, %v2033_v11 }
 0xdb5   :  { %5283 = vrsqrt.f32 %v2035_v28 }
 0xdbb   :  { %v5282_v29 = vpop.eup %5281 }
 0xdbc   :  { %v2038_v12 = vmul.f32 %v5282_v29, %v2022_v45 }
 0xdbe   :  { %v2046_v15 = vmul.f32 %v4376_v30, %v2038_v12 }
 0xdbf   :  { %v5284_v16 = vpop.eup %5283 }
 0xdc0   :  { %v2039_v17 = vmul.f32 %v5284_v16, %v2023_v43  ;;  %v6254_v18 = vadd.f32 %v4377_v14, %v2046_v15 }
 0xdc2   :  { %v2047_v20 = vmul.f32 %v4376_v30, %v2039_v17  ;;  %4834 = vmatprep.mubr.msk.f32.mxu1 %vm207_vm0, %v6254_v18 }
 0xdc4   :  { %v6258_v21 = vadd.f32 %v4377_v14, %v2047_v20 }
 0xdc6   :  { %4835 = vmatmul.mubr.msk.f32.vlgmr.msra.gmra.mrb[26].mxu1 %vm207_vm0, %v6258_v21 }
 0xdc7   :  { %5123 = vmatpush3.bf16.xpose.msk.msra.mxu1 %vm5834_vm1, %v5118_v6  ;;  %4872 = vmatprep.mubr.msk.f32.mxu1 %vm207_vm0, %v192_v23 }
 0xdc8   :  { %5126 = vmatprep.subr.msk.bf16.mxu1 %vm5834_vm1, %v5124_v22 }
 0xdcf   :  { %5129 = vmatpush3.bf16.xpose.msk.msra.mxu1 %vm5834_vm1, %v5124_v22 }
 0xdd0   :  { %5132 = vmatprep.subr.msk.bf16.mxu1 %vm5834_vm1, %v5130_v32 }
 0xdd7   :  { %5135 = vmatpush3.bf16.xpose.msk.msra.mxu1 %vm5834_vm1, %v5130_v32 }
 0xdd8   :  { %5138 = vmatprep.subr.msk.bf16.mxu1 %vm5834_vm1, %v5136_v35 }
 0xddf   :  { %5141 = vmatpush3.bf16.xpose.msk.msra.mxu1 %vm5834_vm1, %v5136_v35 }
 0xde0   :  { %4880 = vmatprep.subr.mxu1 %v5545_v27 }
 0xde6   :  { %4873 = vmatmul.mubr.msk.f32.vlgmr.msra.gmra.mrb[28].mxu1 %vm207_vm0, %v193_v36 }
 0xde7   :  { %4882 = vmatprep.mubr.msk.f32.mxu1 %vm5546_vm2, %v5545_v27  ;;  %4881 = vmatpush3.xpose.msk.msra.mxu1 %vm528_vm3, %v6281_v37 }
 0xde8   :  { %4890 = vmatprep.subr.mxu1 %v5545_v27 }
 0xe99   :  { %v6291_v39 = vpop.f32.mrb[26].mxu1 }
 0xe9a   :  { %v6293_v40 = vpop.f32.mrb[27].mxu1  ;;  %4883 = vmatmul.mubr.msk.f32.vlgmr.msra.gmra.mrb[30].mxu1 %vm528_vm3, %v6291_v39 }
 0xe9b   :  { %4878 = vmatmul.mubr.msk.f32.vlgmr.msra.gmra.mrb[16].mxu0 %vm528_vm3, %v6293_v40  ;;  %4892 = vmatprep.mubr.msk.f32.mxu1 %vm5546_vm2, %v5545_v27 }
 0xe9c   :  { %4887 = vmatprep.mubr.msk.f32.mxu0 %vm5546_vm2, %v5545_v27 }
 0xeb9   :  { %v6303_v41 = vpop.f32.mrb[28].mxu1 }
 0xeba   :  { %v6305_v13 = vpop.f32.mrb[29].mxu1  ;;  %4891 = vmatpush3.msra.mxu1 %v6303_v41 }
 0xebb   :  { %4886 = vmatpush3.msra.mxu0 %v6305_v13  ;;  %4900 = vmatprep.subr.mxu1 %v5545_v27 }
 0xebc   :  { %4895 = vmatprep.subr.mxu0 %v5545_v27 }
 0xf6d   :  { %v2545_v44 = vpop.f32.mrb[30].mxu1 }
 0xf6e   :  { %v2550_v43 = vsel %vm2396_vm9, 1.25e-21, %v2545_v44  ;;  %v2469_v45 = vpop.f32.mrb[16].mxu0  ;;  %v4884_v46 = vpop.f32.mrb[31].mxu1 }
 0xf6f   :  { %v2549_v47 = vsel %vm2395_vm10, 1.25e-21, %v2469_v45  ;;  %v4879_v48 = vpop.f32.mrb[17].mxu0  ;;  %v2554_v63 = vsel %vm685_vm5, %v2550_v43, -inf }
 0xf70   :  { %2555 = vmax.xlane.f32.xlu1 %v2554_v63  ;;  %v2551_v49 = vsel %vm685_vm5, %v2549_v47, -inf }
 0xf71   :  { %2552 = vmax.xlane.f32.xlu0 %v2551_v49 }
 0xffd   :  { %v2556_v50 = vpop.xlane.xlu1 %2555 }
 0xffe   :  { %v2558_v51 = vsub.f32 %v2550_v43, %v2556_v50  ;;  %v2553_v52 = vpop.xlane.xlu0 %2552 }
 0xfff   :  { %v2557_v53 = vsub.f32 %v2549_v47, %v2553_v52 }
0x1000   :  { %v2561_v54 = vmul.f32 1.442695, %v2558_v51 }
0x1001   :  { %v2559_v55 = vmul.f32 1.442695, %v2557_v53 }
0x1002   :  { %5285 = vpow2.f32 %v2561_v54 }
0x1003   :  { %5287 = vpow2.f32 %v2559_v55 }
0x100c   :  { %v5286_v56 = vpop.eup %5285 }
0x100d   :  { %v5288_v57 = vpop.eup %5287  ;;  %v2566_v58 = vsel %vm685_vm5, %v5286_v56, 0.0 }
0x100e   :  { %2567 = vadd.xlane.f32.xlu1 %v2566_v58  ;;  %v2563_v59 = vsel %vm685_vm5, %v5288_v57, 0.0 }
0x100f   :  { %2564 = vadd.xlane.f32.xlu0 %v2563_v59 }
0x101f   :  { %2801 = vrot.lane.b32.xlu1 %v6281_v37, %s5547_s15 }
0x1023   :  { %2721 = vrot.lane.b32.xlu1 %v6293_v40, %s5547_s15 }
0x1025   :  { %2723 = vrot.lane.b32.xlu0 %v6283_v38, %s5547_s15 }
0x1027   :  { %2799 = vrot.lane.b32.xlu1 %v6291_v39, %s5547_s15 }
0x109b   :  { %v2568_v60 = vpop.xlane.xlu1 %2567 }
0x109c   :  { %5289 = vrcp.f32 %v2568_v60  ;;  %v2565_v61 = vpop.xlane.xlu0 %2564 }
0x109d   :  { %5291 = vrcp.f32 %v2565_v61 }
0x109f   :  { %v2802_v62 = vpop.permute.xlu1 %2801 }
0x10a0   :  { %v2724_v6 = vpop.permute.xlu0 %2723 }
0x10a3   :  { %v2722_v2 = vpop.permute.xlu1 %2721 }
0x10a6   :  { %v5290_v1 = vpop.eup %5289 }
0x10a7   :  { %v5292_v3 = vpop.eup %5291  ;;  %v2572_v4 = vmul.f32 %v5290_v1, %v5286_v56  ;;  %v2800_v7 = vpop.permute.xlu1 %2799 }
0x10a8   :  { %v2571_v5 = vmul.f32 %v5292_v3, %v5288_v57 }
0x10a9   :  { %4893 = vmatmul.mubr.msk.f32.vlgmr.msra.gmra.mrb[32].mxu1 %vm685_vm5, %v2572_v4 }
0x10aa   :  { %4901 = vmatpush3.xpose.msk.msra.mxu1 %vm528_vm3, %v2802_v62  ;;  %4888 = vmatmul.mubr.msk.f32.vlgmr.msra.gmra.mrb[18].mxu0 %vm685_vm5, %v2571_v5 }
0x10ab   :  { %4896 = vmatpush3.xpose.msk.msra.mxu0 %vm528_vm3, %v2724_v6  ;;  %4902 = vmatprep.mubr.msk.f32.mxu1 %vm5546_vm2, %v5545_v27 }
0x10ac   :  { %4897 = vmatprep.mubr.msk.f32.mxu0 %vm5546_vm2, %v5545_v27  ;;  %4910 = vmatprep.subr.mxu1 %v5545_v27 }
0x10ad   :  { %4903 = vmatmul.mubr.msk.f32.vlgmr.msra.gmra.mrb[34].mxu1 %vm528_vm3, %v2800_v7  ;;  %4905 = vmatprep.subr.mxu0 %v5545_v27 }
0x10ae   :  { %4898 = vmatmul.mubr.msk.f32.vlgmr.msra.gmra.mrb[20].mxu0 %vm528_vm3, %v2722_v2  ;;  %4912 = vmatprep.mubr.msk.f32.mxu1 %vm5546_vm2, %v5545_v27 }
0x10af   :  { %4907 = vmatprep.mubr.msk.f32.mxu0 %vm5546_vm2, %v5545_v27 }
0x117c   :  { %v2715_v8 = vpop.f32.mrb[32].mxu1 }
0x117d   :  { %2720 = vst.msk [vmem:[#allocation2 + $0x8] sm:$0xff] %vm528_vm3, %v2715_v8  ;;  %v2642_v9 = vpop.f32.mrb[18].mxu0  ;;  %v4894_v10 = vpop.f32.mrb[33].mxu1 }
0x117e   :  { %2719 = vst.msk [vmem:[#allocation2] sm:$0xff] %vm528_vm3, %v2642_v9  ;;  %v4889_v11 = vpop.f32.mrb[19].mxu0 }
0x1180   :  { %v2873_v28 = vpop.f32.mrb[34].mxu1 }
0x1181   :  { %v2878_v29 = vsel %vm2396_vm9, 1.25e-21, %v2873_v28  ;;  %v2795_v30 = vpop.f32.mrb[20].mxu0  ;;  %v4904_v12 = vpop.f32.mrb[35].mxu1 }
0x1182   :  { %v2877_v14 = vsel %vm2395_vm10, 1.25e-21, %v2795_v30  ;;  %v4899_v15 = vpop.f32.mrb[21].mxu0  ;;  %v2882_v16 = vsel %vm685_vm5, %v2878_v29, -inf }
0x1183   :  { %2883 = vmax.xlane.f32.xlu1 %v2882_v16  ;;  %v2879_v17 = vsel %vm685_vm5, %v2877_v14, -inf }
0x1184   :  { %2880 = vmax.xlane.f32.xlu0 %v2879_v17 }
0x1194   :  { %2979 = vrot.lane.b32.xlu1 %v6303_v41, %s5547_s15 }
0x1198   :  { %3067 = vrot.lane.b32.xlu1 %v6283_v38, %s5548_s28 }
0x119a   :  { %2902 = vrot.lane.b32.xlu0 %v6305_v13, %s5547_s15 }
0x119c   :  { %3145 = vrot.lane.b32.xlu1 %v6281_v37, %s5548_s28 }
0x11a0   :  { %3143 = vrot.lane.b32.xlu1 %v6291_v39, %s5548_s28 }
0x1210   :  { %v2884_v19 = vpop.xlane.xlu1 %2883 }
0x1211   :  { %v2886_v31 = vsub.f32 %v2878_v29, %v2884_v19  ;;  %v2881_v20 = vpop.xlane.xlu0 %2880 }
0x1212   :  { %v2885_v22 = vsub.f32 %v2877_v14, %v2881_v20 }
0x1213   :  { %v2889_v23 = vmul.f32 1.442695, %v2886_v31 }
0x1214   :  { %v2887_v24 = vmul.f32 1.442695, %v2885_v22  ;;  %v2980_v25 = vpop.permute.xlu1 %2979 }
0x1215   :  { %5293 = vpow2.f32 %v2889_v23  ;;  %v2903_v32 = vpop.permute.xlu0 %2902  ;;  %4911 = vmatpush3.msra.mxu1 %v2980_v25 }
0x1216   :  { %4906 = vmatpush3.msra.mxu0 %v2903_v32  ;;  %4920 = vmatprep.subr.mxu1 %v5545_v27  ;;  %5295 = vpow2.f32 %v2887_v24 }
0x1217   :  { %4915 = vmatprep.subr.mxu0 %v5545_v27 }
0x1218   :  { %v3068_v45 = vpop.permute.xlu1 %3067 }
0x121c   :  { %v3146_v47 = vpop.permute.xlu1 %3145 }
0x121f   :  { %v5294_v33 = vpop.eup %5293 }
0x1220   :  { %v2894_v34 = vsel %vm685_vm5, %v5294_v33, 0.0  ;;  %v5296_v35 = vpop.eup %5295  ;;  %v3144_v50 = vpop.permute.xlu1 %3143 }
0x1221   :  { %2895 = vadd.xlane.f32.xlu0 %v2894_v34  ;;  %v2891_v36 = vsel %vm685_vm5, %v5296_v35, 0.0 }
0x1225   :  { %2892 = vadd.xlane.f32.xlu0 %v2891_v36 }
0x123b   :  { %3065 = vrot.lane.b32.xlu0 %v6293_v40, %s5548_s28 }
0x12ae   :  { %v2896_v44 = vpop.xlane.xlu0 %2895 }
0x12af   :  { %5297 = vrcp.f32 %v2896_v44 }
0x12b2   :  { %v2893_v43 = vpop.xlane.xlu0 %2892 }
0x12b3   :  { %5299 = vrcp.f32 %v2893_v43 }
0x12b6   :  { %v3066_v51 = vpop.permute.xlu0 %3065 }
0x12b9   :  { %v5298_v46 = vpop.eup %5297 }
0x12ba   :  { %v2900_v48 = vmul.f32 %v5298_v46, %v5294_v33 }
0x12bc   :  { %4913 = vmatmul.mubr.msk.f32.vlgmr.msra.gmra.mrb[36].mxu1 %vm685_vm5, %v2900_v48 }
0x12bd   :  { %v5300_v63 = vpop.eup %5299  ;;  %4921 = vmatpush3.xpose.msk.msra.mxu1 %vm528_vm3, %v3146_v47  ;;  %4922 = vmatprep.mubr.msk.f32.mxu1 %vm5546_vm2, %v5545_v27 }
0x12be   :  { %v2899_v49 = vmul.f32 %v5300_v63, %v5296_v35  ;;  %4930 = vmatprep.subr.mxu1 %v5545_v27 }
0x12c0   :  { %4908 = vmatmul.mubr.msk.f32.vlgmr.msra.gmra.mrb[22].mxu0 %vm685_vm5, %v2899_v49  ;;  %4923 = vmatmul.mubr.msk.f32.vlgmr.msra.gmra.mrb[38].mxu1 %vm528_vm3, %v3144_v50 }
0x12c1   :  { %4916 = vmatpush3.xpose.msk.msra.mxu0 %vm528_vm3, %v3068_v45  ;;  %4917 = vmatprep.mubr.msk.f32.mxu0 %vm5546_vm2, %v5545_v27 }
0x12c2   :  { %4925 = vmatprep.subr.mxu0 %v5545_v27  ;;  %4932 = vmatprep.mubr.msk.f32.mxu1 %vm5546_vm2, %v5545_v27 }
0x12c4   :  { %4918 = vmatmul.mubr.msk.f32.vlgmr.msra.gmra.mrb[24].mxu0 %vm528_vm3, %v3066_v51 }
0x12c5   :  { %4927 = vmatprep.mubr.msk.f32.mxu0 %vm5546_vm2, %v5545_v27 }
0x138f   :  { %v6389_v52 = vpop.f32.mrb[36].mxu1 }
0x1390   :  { %v4914_v53 = vpop.f32.mrb[37].mxu1 }
0x1393   :  { %v6391_v54 = vpop.f32.mrb[22].mxu0  ;;  %v3217_v55 = vpop.f32.mrb[38].mxu1 }
0x1394   :  { %v3222_v56 = vsel %vm2396_vm9, 1.25e-21, %v3217_v55  ;;  %v4909_v57 = vpop.f32.mrb[23].mxu0  ;;  %v4924_v58 = vpop.f32.mrb[39].mxu1 }
0x1395   :  { %v3226_v59 = vsel %vm685_vm5, %v3222_v56, -inf }
0x1396   :  { %3227 = vmax.xlane.f32.xlu1 %v3226_v59 }
0x1397   :  { %v3139_v60 = vpop.f32.mrb[24].mxu0 }
0x1398   :  { %v3221_v61 = vsel %vm2395_vm10, 1.25e-21, %v3139_v60  ;;  %v4919_v62 = vpop.f32.mrb[25].mxu0  ;;  %v3752_v60 = vld [vmem:[#allocation15 + $0x8] sm:$0xff] }
0x1399   :  { %v3223_v1 = vsel %vm685_vm5, %v3221_v61, -inf }
0x139a   :  { %3224 = vmax.xlane.f32.xlu0 %v3223_v1  ;;  %v3754_v1 = vld [vmem:[#allocation15 + $0x18] sm:$0xff] }
0x13a7   :  { %3321 = vrot.lane.b32.xlu1 %v6303_v41, %s5548_s28 }
0x13ab   :  { %3409 = vrot.lane.b32.xlu1 %v6283_v38, %s5549_s1 }
0x13af   :  { %3487 = vrot.lane.b32.xlu1 %v6281_v37, %s5549_s1 }
0x13b0   :  { %3245 = vrot.lane.b32.xlu0 %v6305_v13, %s5548_s28 }
0x13b3   :  { %3485 = vrot.lane.b32.xlu1 %v6291_v39, %s5549_s1 }
0x1423   :  { %v3228_v2 = vpop.xlane.xlu1 %3227 }
0x1424   :  { %v3230_v3 = vsub.f32 %v3222_v56, %v3228_v2 }
0x1426   :  { %v3233_v4 = vmul.f32 1.442695, %v3230_v3  ;;  %v3755_v3 = vld [vmem:[#allocation15 + $0x20] sm:$0xff] }
0x1427   :  { %v3225_v5 = vpop.xlane.xlu0 %3224  ;;  %v3322_v6 = vpop.permute.xlu1 %3321 }
0x1428   :  { %5301 = vpow2.f32 %v3233_v4  ;;  %v3229_v7 = vsub.f32 %v3221_v61, %v3225_v5  ;;  %4931 = vmatpush3.msra.mxu1 %v3322_v6  ;;  %v3753_v61 = vld [vmem:[#allocation15 + $0x10] sm:$0xff]  ;;  %v3756_v4 = vld [vmem:[#allocation15 + $0x28] sm:$0xff] }
0x1429   :  { %4940 = vmatprep.subr.mxu1 %v5545_v27  ;;  %v5148_v2 = vpack.c.bf16 %v3754_v1, %v3753_v61  ;;  %v5154_v5 = vpack.c.bf16 %v3756_v4, %v3755_v3  ;;  %v3757_v6 = vld [vmem:[#allocation15 + $0x30] sm:$0xff] }
0x142a   :  { %v3231_v38 = vmul.f32 1.442695, %v3229_v7  ;;  %v3758_v7 = vld [vmem:[#allocation15 + $0x38] sm:$0xff] }
0x142b   :  { %v3246_v8 = vpop.permute.xlu0 %3245  ;;  %v3410_v29 = vpop.permute.xlu1 %3409 }
0x142c   :  { %5303 = vpow2.f32 %v3231_v38  ;;  %4926 = vmatpush3.msra.mxu0 %v3246_v8  ;;  %v5160_v38 = vpack.c.bf16 %v3758_v7, %v3757_v6 }
0x142d   :  { %4935 = vmatprep.subr.mxu0 %v5545_v27 }
0x142f   :  { %v3488_v12 = vpop.permute.xlu1 %3487 }
0x1432   :  { %v5302_v37 = vpop.eup %5301 }
0x1433   :  { %v3238_v9 = vsel %vm685_vm5, %v5302_v37, 0.0 }
0x1434   :  { %3239 = vadd.xlane.f32.xlu0 %v3238_v9 }
0x1436   :  { %v5304_v39 = vpop.eup %5303 }
0x1437   :  { %v3235_v10 = vsel %vm685_vm5, %v5304_v39, 0.0 }
0x1438   :  { %3236 = vadd.xlane.f32.xlu0 %v3235_v10 }
0x144e   :  { %3407 = vrot.lane.b32.xlu0 %v6293_v40, %s5549_s1  ;;  %v3486_v40 = vpop.permute.xlu1 %3485 }
0x14c1   :  { %v3240_v11 = vpop.xlane.xlu0 %3239 }
0x14c2   :  { %5305 = vrcp.f32 %v3240_v11 }
0x14c5   :  { %v3237_v28 = vpop.xlane.xlu0 %3236 }
0x14c6   :  { %5307 = vrcp.f32 %v3237_v28 }
0x14c9   :  { %v3408_v17 = vpop.permute.xlu0 %3407 }
0x14cc   :  { %v5306_v30 = vpop.eup %5305 }
0x14cd   :  { %v3244_v14 = vmul.f32 %v5306_v30, %v5302_v37  ;;  %v4432_v30 = vld [vmem:[%s6726_s16] ss:$0 sm:$0xff] }
0x14cf   :  { %4933 = vmatmul.mubr.msk.f32.vlgmr.msra.gmra.mrb[40].mxu1 %vm685_vm5, %v3244_v14 }
0x14d0   :  { %v5308_v15 = vpop.eup %5307  ;;  %4941 = vmatpush3.xpose.msk.msra.mxu1 %vm528_vm3, %v3488_v12  ;;  %4942 = vmatprep.mubr.msk.f32.mxu1 %vm5546_vm2, %v5545_v27 }
0x14d1   :  { %v3243_v16 = vmul.f32 %v5308_v15, %v5304_v39  ;;  %4950 = vmatprep.subr.mxu1 %v5545_v27 }
0x14d3   :  { %4928 = vmatmul.mubr.msk.f32.vlgmr.msra.gmra.mrb[26].mxu0 %vm685_vm5, %v3243_v16  ;;  %4943 = vmatmul.mubr.msk.f32.vlgmr.msra.gmra.mrb[42].mxu1 %vm528_vm3, %v3486_v40 }
0x14d4   :  { %4936 = vmatpush3.xpose.msk.msra.mxu0 %vm528_vm3, %v3410_v29  ;;  %4937 = vmatprep.mubr.msk.f32.mxu0 %vm5546_vm2, %v5545_v27 }
0x14d5   :  { %4945 = vmatprep.subr.mxu0 %v5545_v27  ;;  %4952 = vmatprep.mubr.msk.f32.mxu1 %vm5546_vm2, %v5545_v27 }
0x14d7   :  { %4938 = vmatmul.mubr.msk.f32.vlgmr.msra.gmra.mrb[28].mxu0 %vm528_vm3, %v3408_v17 }
0x14d8   :  { %4947 = vmatprep.mubr.msk.f32.mxu0 %vm5546_vm2, %v5545_v27 }
0x15a2   :  { %v3393_v19 = vpop.f32.mrb[40].mxu1 }
0x15a3   :  { %v4934_v31 = vpop.f32.mrb[41].mxu1 }
0x15a6   :  { %v3317_v20 = vpop.f32.mrb[26].mxu0  ;;  %v3559_v22 = vpop.f32.mrb[42].mxu1 }
0x15a7   :  { %v3564_v23 = vsel %vm2396_vm9, 1.25e-21, %v3559_v22  ;;  %v4929_v24 = vpop.f32.mrb[27].mxu0  ;;  %v4944_v25 = vpop.f32.mrb[43].mxu1  ;;  %v3934_v22 = vld [vmem:[%s6729_s19 + $0x88] sm:$0xff] }
0x15a8   :  { %v3568_v32 = vsel %vm685_vm5, %v3564_v23, -inf  ;;  %v3935_v24 = vld [vmem:[%s6729_s19 + $0x90] sm:$0xff]  ;;  %v3936_v25 = vld [vmem:[%s6729_s19 + $0x98] sm:$0xff] }
0x15a9   :  { %3569 = vmax.xlane.f32.xlu1 %v3568_v32 }
0x15aa   :  { %v3481_v33 = vpop.f32.mrb[28].mxu0 }
0x15ab   :  { %v3563_v34 = vsel %vm2395_vm10, 1.25e-21, %v3481_v33  ;;  %v4939_v35 = vpop.f32.mrb[29].mxu0  ;;  %v5172_v33 = vpack.c.bf16 %v3936_v25, %v3935_v24  ;;  %v4153_v24 = vld [vmem:[%s6731_s21 + $0x48] sm:$0xff]  ;;  %v4155_v25 = vld [vmem:[%s6731_s21 + $0x58] sm:$0xff] }
0x15ac   :  { %v3565_v36 = vsel %vm685_vm5, %v3563_v34, -inf  ;;  %v3920_v35 = vld [vmem:[%s6729_s19 + $0x18] sm:$0xff] }
0x15ad   :  { %3566 = vmax.xlane.f32.xlu0 %v3565_v36  ;;  %v3937_v36 = vld [vmem:[%s6729_s19 + $0xa0] sm:$0xff] }
0x15ba   :  { %3663 = vrot.lane.b32.xlu1 %v6303_v41, %s5549_s1 }
0x15be   :  { %3057 = vrot.lane.b32.xlu1 %v6391_v54, %s5550_s26 }
0x15c2   :  { %3059 = vrot.lane.b32.xlu1 %v6389_v52, %s5550_s26 }
0x15c6   :  { %3401 = vrot.lane.b32.xlu1 %v3393_v19, %s5551_s24 }
0x1636   :  { %v3570_v27 = vpop.xlane.xlu1 %3569 }
0x1637   :  { %v3572_v26 = vsub.f32 %v3564_v23, %v3570_v27  ;;  %v3938_v27 = vld [vmem:[%s6729_s19 + $0xa8] sm:$0xff] }
0x1639   :  { %v3575_v44 = vmul.f32 1.442695, %v3572_v26 }
0x163a   :  { %v3567_v42 = vpop.xlane.xlu0 %3566  ;;  %v3664_v43 = vpop.permute.xlu1 %3663 }
0x163b   :  { %5309 = vpow2.f32 %v3575_v44  ;;  %v3571_v45 = vsub.f32 %v3563_v34, %v3567_v42  ;;  %4951 = vmatpush3.msra.mxu1 %v3664_v43  ;;  %v3919_v34 = vld [vmem:[%s6729_s19 + $0x10] sm:$0xff]  ;;  %v5178_v44 = vpack.c.bf16 %v3938_v27, %v3937_v36  ;;  %v3921_v42 = vld [vmem:[%s6729_s19 + $0x20] sm:$0xff]  ;;  %v3922_v43 = vld [vmem:[%s6729_s19 + $0x28] sm:$0xff] }
0x163c   :  { %v5175_v26 = vpack.c.bf16 %v3920_v35, %v3919_v34  ;;  %v4152_v34 = vld [vmem:[%s6731_s21 + $0x40] sm:$0xff]  ;;  %v4154_v35 = vld [vmem:[%s6731_s21 + $0x50] sm:$0xff]  ;;  %v4157_v36 = vld [vmem:[%s6731_s21 + $0x68] sm:$0xff] }
0x163d   :  { %v3573_v46 = vmul.f32 1.442695, %v3571_v45  ;;  %v3939_v45 = vld [vmem:[%s6729_s19 + $0xb0] sm:$0xff]  ;;  %v4159_v27 = vld [vmem:[%s6731_s21 + $0x78] sm:$0xff] }
0x163e   :  { %v3058_v47 = vpop.permute.xlu1 %3057 }
0x163f   :  { %5311 = vpow2.f32 %v3573_v46  ;;  %3063 = vst.msk [vmem:[#allocation2] sm:$0xff] %vm1198_vm6, %v3058_v47  ;;  %v3940_v46 = vld [vmem:[%s6729_s19 + $0xb8] sm:$0xff]  ;;  %v5181_v47 = vpack.c.bf16 %v3922_v43, %v3921_v42 }
0x1642   :  { %v3060_v41 = vpop.permute.xlu1 %3059 }
0x1643   :  { %3064 = vst.msk [vmem:[#allocation2 + $0x8] sm:$0xff] %vm1198_vm6, %v3060_v41  ;;  %v5184_v41 = vpack.c.bf16 %v3940_v46, %v3939_v45 }
0x1645   :  { %v5310_v48 = vpop.eup %5309 }
0x1646   :  { %v3402_v63 = vpop.permute.xlu1 %3401  ;;  %v3580_v49 = vsel %vm685_vm5, %v5310_v48, 0.0 }
0x1647   :  { %3406 = vst.msk [vmem:[#allocation2 + $0x8] sm:$0xff] %vm1541_vm7, %v3402_v63  ;;  %3581 = vadd.xlane.f32.xlu0 %v3580_v49  ;;  %v3924_v63 = vld [vmem:[%s6729_s19 + $0x38] sm:$0xff]  ;;  %v3941_v49 = vld [vmem:[%s6729_s19 + $0xc0] sm:$0xff] }
0x1649   :  { %v5312_v50 = vpop.eup %5311 }
0x164a   :  { %v3577_v51 = vsel %vm685_vm5, %v5312_v50, 0.0 }
0x164b   :  { %3578 = vadd.xlane.f32.xlu0 %v3577_v51 }
0x1661   :  { %3587 = vrot.lane.b32.xlu0 %v6305_v13, %s5549_s1  ;;  %v3751_v13 = vld [vmem:[#allocation15] sm:$0xff] }
0x1662   :  { %v5142_v62 = vpack.c.bf16 %v3752_v60, %v3751_v13  ;;  %v3928_v13 = vld [vmem:[%s6729_s19 + $0x58] sm:$0xff] }
0x1665   :  { %3399 = vrot.lane.b32.xlu0 %v3317_v20, %s5551_s24  ;;  %v3933_v20 = vld [vmem:[%s6729_s19 + $0x80] sm:$0xff] }
0x1666   :  { %v5166_v23 = vpack.c.bf16 %v3934_v22, %v3933_v20  ;;  %v4151_v20 = vld [vmem:[%s6731_s21 + $0x38] sm:$0xff] }
0x1668   :  { %5168 = vmatprep.subr.msk.bf16.mxu1 %vm5834_vm1, %v5166_v23  ;;  %v4148_v23 = vld [vmem:[%s6731_s21 + $0x20] sm:$0xff] }
0x16d4   :  { %v3582_v52 = vpop.xlane.xlu0 %3581 }
0x16d5   :  { %5313 = vrcp.f32 %v3582_v52 }
0x16d8   :  { %v3579_v53 = vpop.xlane.xlu0 %3578 }
0x16d9   :  { %5315 = vrcp.f32 %v3579_v53  ;;  %v3925_v53 = vld [vmem:[%s6729_s19 + $0x40] sm:$0xff] }
0x16dc   :  { %v3588_v54 = vpop.permute.xlu0 %3587 }
0x16dd   :  { %4946 = vmatpush3.msra.mxu0 %v3588_v54  ;;  %v3926_v54 = vld [vmem:[%s6729_s19 + $0x48] sm:$0xff] }
0x16de   :  { %5144 = vmatprep.subr.msk.bf16.mxu0 %vm5834_vm1, %v5142_v62 }
0x16df   :  { %v5314_v55 = vpop.eup %5313 }
0x16e0   :  { %v3586_v56 = vmul.f32 %v5314_v55, %v5310_v48  ;;  %v3400_v57 = vpop.permute.xlu0 %3399  ;;  %v3923_v48 = vld [vmem:[%s6729_s19 + $0x30] sm:$0xff] }
0x16e1   :  { %3405 = vst.msk [vmem:[#allocation2] sm:$0xff] %vm1541_vm7, %v3400_v57  ;;  %v5187_v51 = vpack.c.bf16 %v3924_v63, %v3923_v48  ;;  %v3943_v55 = vld [vmem:[%s6729_s19 + $0xd0] sm:$0xff]  ;;  %v5193_v57 = vpack.c.bf16 %v3926_v54, %v3925_v53  ;;  %v4443_v63 = vld [vmem:[%s6727_s17] ss:$0 sm:$0xff] }
0x16e2   :  { %4953 = vmatmul.mubr.msk.f32.vlgmr.msra.gmra.mrb[44].mxu1 %vm685_vm5, %v3586_v56  ;;  %v3944_v56 = vld [vmem:[%s6729_s19 + $0xd8] sm:$0xff] }
0x16e3   :  { %v5316_v58 = vpop.eup %5315 }
0x16e4   :  { %v3585_v59 = vmul.f32 %v5316_v58, %v5312_v50  ;;  %v3942_v50 = vld [vmem:[%s6729_s19 + $0xc8] sm:$0xff]  ;;  %v5196_v58 = vpack.c.bf16 %v3944_v56, %v3943_v55 }
0x16e5   :  { %v5190_v52 = vpack.c.bf16 %v3942_v50, %v3941_v49  ;;  %v4444_v50 = vld [vmem:[%s6728_s18] ss:$0 sm:$0xff] }
0x16e6   :  { %4948 = vmatmul.mubr.msk.f32.vlgmr.msra.gmra.mrb[30].mxu0 %vm685_vm5, %v3585_v59  ;;  %v3927_v59 = vld [vmem:[%s6729_s19 + $0x50] sm:$0xff] }
0x16e7   :  { %5147 = vmatpush3.bf16.xpose.msk.msra.mxu0 %vm5834_vm1, %v5142_v62  ;;  %v5199_v60 = vpack.c.bf16 %v3928_v13, %v3927_v59  ;;  %v3951_v13 = vlaneseq }
0x16e8   :  { %5150 = vmatprep.subr.msk.bf16.mxu0 %vm5834_vm1, %v5148_v2 }
0x16ef   :  { %5153 = vmatpush3.bf16.xpose.msk.msra.mxu0 %vm5834_vm1, %v5148_v2 }
0x16f0   :  { %5156 = vmatprep.subr.msk.bf16.mxu0 %vm5834_vm1, %v5154_v5 }
0x16f7   :  { %5159 = vmatpush3.bf16.xpose.msk.msra.mxu0 %vm5834_vm1, %v5154_v5 }
0x16f8   :  { %5162 = vmatprep.subr.msk.bf16.mxu0 %vm5834_vm1, %v5160_v38 }
0x16ff   :  { %5165 = vmatpush3.bf16.xpose.msk.msra.mxu0 %vm5834_vm1, %v5160_v38 }
0x17b5   :  { %v3735_v8 = vpop.f32.mrb[44].mxu1 }
0x17b6   :  { %3743 = vrot.lane.b32.xlu1 %v3735_v8, %s5552_s27  ;;  %v4954_v37 = vpop.f32.mrb[45].mxu1  ;;  %v3945_v8 = vld [vmem:[%s6729_s19 + $0xe0] sm:$0xff] }
0x17b7   :  { %v3946_v37 = vld [vmem:[%s6729_s19 + $0xe8] sm:$0xff] }
0x17b9   :  { %v3659_v9 = vpop.f32.mrb[30].mxu0 }
0x17ba   :  { %3741 = vrot.lane.b32.xlu0 %v3659_v9, %s5552_s27  ;;  %v4949_v39 = vpop.f32.mrb[31].mxu0  ;;  %v5202_v9 = vpack.c.bf16 %v3946_v37, %v3945_v8 }
0x17bb   :  { %v3929_v39 = vld [vmem:[%s6729_s19 + $0x60] sm:$0xff] }
0x1828   :  { %v3744_v10 = vpop.permute.xlu1 %3743 }
0x1829   :  { %3748 = vst.msk [vmem:[#allocation2 + $0x8] sm:$0xff] %vm1884_vm8, %v3744_v10  ;;  %v3930_v10 = vld [vmem:[%s6729_s19 + $0x68] sm:$0xff] }
0x182c   :  { %v3742_v11 = vpop.permute.xlu0 %3741 }
0x182d   :  { %3747 = vst.msk [vmem:[#allocation2] sm:$0xff] %vm1884_vm8, %v3742_v11  ;;  %v5205_v11 = vpack.c.bf16 %v3930_v10, %v3929_v39 }
0x1830   :  { %v3750_v29 = vld [vmem:[#allocation2 + $0x8] sm:$0xff] }
0x1834   :  { %v3749_v28 = vld [vmem:[#allocation2] sm:$0xff] }
0x1835   :  { %4971 = vmatprep.mubr.msk.f32.mxu0 %vm207_vm0, %v3749_v28  ;;  %v3947_v28 = vld [vmem:[%s6729_s19 + $0xf0] sm:$0xff] }
0x1836   :  { %4972 = vmatmul.mubr.msk.f32.vlgmr.msra.gmra.mrb[32].mxu0 %vm207_vm0, %v3750_v29  ;;  %v3948_v29 = vld [vmem:[%s6729_s19 + $0xf8] sm:$0xff] }
0x1909   :  { %v4973_v12 = vpop.f32.mrb[32].mxu0 }
0x190a   :  { %v3868_v14 = vadd.f32 %v4973_v12, %v4432_v30  ;;  %v3862_v15 = vpop.f32.mrb[33].mxu0  ;;  %v3931_v12 = vld [vmem:[%s6729_s19 + $0x70] sm:$0xff] }
0x190b   :  { %v3863_v16 = vadd.f32 %v4432_v30, %v3862_v15  ;;  %v5208_v30 = vpack.c.bf16 %v3948_v29, %v3947_v28  ;;  %v4479_v29 = vld [vmem:[%s6732_s22] ss:$0 sm:$0xff] }
0x190c   :  { %v3872_v40 = vadd.f32 %v3868_v14, %v6258_v21  ;;  %v3917_v21 = vld [vmem:[%s6729_s19] sm:$0xff]  ;;  %v3932_v14 = vld [vmem:[%s6729_s19 + $0x78] sm:$0xff] }
0x190d   :  { %v3871_v17 = vadd.f32 %v3863_v16, %v6254_v18  ;;  %v3918_v18 = vld [vmem:[%s6729_s19 + $0x8] sm:$0xff]  ;;  %v5211_v15 = vpack.c.bf16 %v3932_v14, %v3931_v12 }
0x190e   :  { %v3878_v19 = vsel %vm207_vm0, %v3872_v40, 0.0  ;;  %v5169_v32 = vpack.c.bf16 %v3918_v18, %v3917_v21  ;;  %v4145_v16 = vld [vmem:[%s6731_s21 + $0x8] sm:$0xff]  ;;  %v5218_v21 = vpack.c.bf16 %v4151_v20, %v4149_v0  ;;  %v4150_v18 = vld [vmem:[%s6731_s21 + $0x30] sm:$0xff] }
0x190f   :  { %3879 = vadd.xlane.f32.xlu1 %v3878_v19  ;;  %v3875_v31 = vsel %vm207_vm0, %v3871_v17, 0.0 }
0x1910   :  { %3876 = vadd.xlane.f32.xlu0 %v3875_v31  ;;  %5171 = vmatpush3.bf16.xpose.msk.msra.mxu1 %vm5834_vm1, %v5169_v32  ;;  %v4146_v31 = vld [vmem:[%s6731_s21 + $0x10] sm:$0xff]  ;;  %v5220_v32 = vpack.c.bf16 %v4150_v18, %v4148_v23 }
0x1911   :  { %5174 = vmatprep.subr.msk.bf16.mxu1 %vm5834_vm1, %v5172_v33  ;;  %v5222_v33 = vpack.c.bf16 %v4155_v25, %v4153_v24 }
0x1918   :  { %5177 = vmatpush3.bf16.xpose.msk.msra.mxu1 %vm5834_vm1, %v5175_v26  ;;  %v5224_v26 = vpack.c.bf16 %v4154_v35, %v4152_v34 }
0x1919   :  { %5180 = vmatprep.subr.msk.bf16.mxu1 %vm5834_vm1, %v5178_v44  ;;  %v5226_v44 = vpack.c.bf16 %v4159_v27, %v4157_v36 }
0x1920   :  { %5183 = vmatpush3.bf16.xpose.msk.msra.mxu1 %vm5834_vm1, %v5181_v47 }
0x1921   :  { %5186 = vmatprep.subr.msk.bf16.mxu1 %vm5834_vm1, %v5184_v41 }
0x1928   :  { %5189 = vmatpush3.bf16.xpose.msk.msra.mxu1 %vm5834_vm1, %v5187_v51 }
0x1929   :  { %5192 = vmatprep.subr.msk.bf16.mxu1 %vm5834_vm1, %v5190_v52 }
0x1930   :  { %5195 = vmatpush3.bf16.xpose.msk.msra.mxu1 %vm5834_vm1, %v5193_v57  ;;  %v4156_v57 = vld [vmem:[%s6731_s21 + $0x60] sm:$0xff] }
0x1931   :  { %5198 = vmatprep.subr.msk.bf16.mxu1 %vm5834_vm1, %v5196_v58  ;;  %v4158_v58 = vld [vmem:[%s6731_s21 + $0x70] sm:$0xff] }
0x1932   :  { %v5228_v59 = vpack.c.bf16 %v4158_v58, %v4156_v57 }
0x1938   :  { %5201 = vmatpush3.bf16.xpose.msk.msra.mxu1 %vm5834_vm1, %v5199_v60  ;;  %v3952_v60 = vshrl.u32 %v3951_v13, 7 }
0x1939   :  { %5204 = vmatprep.subr.msk.bf16.mxu1 %vm5834_vm1, %v5202_v9 }
0x1940   :  { %5207 = vmatpush3.bf16.xpose.msk.msra.mxu1 %vm5834_vm1, %v5205_v11 }
0x1941   :  { %5210 = vmatprep.subr.msk.bf16.mxu1 %vm5834_vm1, %v5208_v30 }
0x1948   :  { %5213 = vmatpush3.bf16.xpose.msk.msra.mxu1 %vm5834_vm1, %v5211_v15 }
0x199c   :  { %v3880_v61 = vpop.xlane.xlu1 %3879 }
0x199d   :  { %v3882_v62 = vmul.f32 0.015625, %v3880_v61  ;;  %v3877_v1 = vpop.xlane.xlu0 %3876  ;;  %v3953_v61 = vsub.s32 0, %v3952_v60 }
0x199e   :  { %v3881_v2 = vmul.f32 0.015625, %v3877_v1  ;;  %v3957_v1 = vsub.s32 1, %v3952_v60 }
0x199f   :  { %v6580_v3 = vsub.f32 %v3872_v40, %v3882_v62  ;;  %v4147_v40 = vld [vmem:[%s6731_s21 + $0x18] sm:$0xff]  ;;  %v3949_v62 = vld [vmem:[%s6730_s20] sm:$0x3] }
0x19a0   :  { %v3883_v4 = vsub.f32 %v3871_v17, %v3881_v2  ;;  %v4144_v17 = vld [vmem:[%s6731_s21] sm:$0xff]  ;;  %v5214_v19 = vpack.c.bf16 %v4147_v40, %v4145_v16  ;;  %v3954_v2 = vrot.slane %v3949_v62, %v3953_v61 }
0x19a1   :  { %v3886_v7 = vmul.f32 %v6580_v3, %v6580_v3  ;;  %v5216_v22 = vpack.c.bf16 %v4146_v31, %v4144_v17 }
0x19a2   :  { %v3885_v5 = vmul.f32 %v3883_v4, %v3883_v4  ;;  %5215 = vmatprep.subr.bf16.mxu0 %v5214_v19 }
0x19a3   :  { %v3890_v38 = vsel %vm207_vm0, %v3886_v7, 0.0  ;;  %5217 = vmatpush1.bf16.xpose.msra.mxu0 %v5216_v22 }
0x19a4   :  { %v3887_v6 = vsel %vm207_vm0, %v3885_v5, 0.0  ;;  %5219 = vmatprep.subr.bf16.mxu0 %v5218_v21 }
0x19a5   :  { %3888 = vadd.xlane.f32.xlu0 %v3887_v6 }
0x19a9   :  { %3891 = vadd.xlane.f32.xlu0 %v3890_v38 }
0x19ab   :  { %5221 = vmatpush1.bf16.xpose.msra.mxu0 %v5220_v32 }
0x19ac   :  { %5223 = vmatprep.subr.bf16.mxu0 %v5222_v33 }
0x19b3   :  { %5225 = vmatpush1.bf16.xpose.msra.mxu0 %v5224_v26 }
0x19b4   :  { %5227 = vmatprep.subr.bf16.mxu0 %v5226_v44 }
0x19bb   :  { %5229 = vmatpush1.bf16.xpose.msra.mxu0 %v5228_v59 }
0x1a32   :  { %v3889_v42 = vpop.xlane.xlu0 %3888 }
0x1a33   :  { %v3893_v43 = vmul.f32 0.015625, %v3889_v42 }
0x1a35   :  { %v3895_v45 = vadd.f32 1e-05, %v3893_v43 }
0x1a36   :  { %v3892_v46 = vpop.xlane.xlu0 %3891 }
0x1a37   :  { %5317 = vrsqrt.f32 %v3895_v45  ;;  %v3894_v47 = vmul.f32 0.015625, %v3892_v46  ;;  %v4480_v45 = vld [vmem:[%s6733_s23] ss:$0 sm:$0xff] }
0x1a39   :  { %v3896_v41 = vadd.f32 1e-05, %v3894_v47  ;;  %v4481_v47 = vld [vmem:[%s6769_s12] ss:$0 sm:$0xff] }
0x1a3b   :  { %5319 = vrsqrt.f32 %v3896_v41 }
0x1a41   :  { %v5318_v48 = vpop.eup %5317 }
0x1a42   :  { %v3899_v49 = vmul.f32 %v5318_v48, %v3883_v4 }
0x1a44   :  { %v3907_v51 = vmul.f32 %v4443_v63, %v3899_v49 }
0x1a45   :  { %v5320_v52 = vpop.eup %5319 }
0x1a46   :  { %v3915_v53 = vadd.f32 %v4444_v50, %v3907_v51  ;;  %v3900_v54 = vmul.f32 %v5320_v52, %v6580_v3  ;;  %v3958_v3 = vrot.slane %v3949_v62, %v3957_v1 }
0x1a48   :  { %4658 = vmatprep.mubr.msk.f32.mxu1 %vm207_vm0, %v3915_v53  ;;  %v3908_v55 = vmul.f32 %v4443_v63, %v3900_v54 }
0x1a49   :  { %4659 = vmatmul.mubr.msk.f32.vlgmr.msra.gmra.mrb[46].mxu1 %vm207_vm0, %v3915_v53 }
0x1a4a   :  { %v3916_v56 = vadd.f32 %v4444_v50, %v3908_v55 }
0x1a4c   :  { %4660 = vmatprep.mubr.msk.f32.mxu1 %vm207_vm0, %v3916_v56 }
0x1a4d   :  { %4661 = vmatmul.mubr.msk.f32.gmra.mrb[48].mxu1 %vm207_vm0, %v3916_v56 }
0x1b1c   :  { %v4129_v4 = vpop.f32.mrb[46].mxu1 }
0x1b1d   :  { %v4130_v5 = vadd.f32 %v4129_v4, %v3954_v2  ;;  %v4131_v6 = vpop.f32.mrb[47].mxu1 }
0x1b1e   :  { %v4132_v7 = vadd.f32 %v4131_v6, %v3958_v3 }
0x1b1f   :  { %v4140_v37 = vmax.f32 %v4130_v5, 0.0 }
0x1b20   :  { %v4141_v38 = vmax.f32 %v4132_v7, 0.0  ;;  %v4135_v8 = vpop.f32.mrb[48].mxu1 }
0x1b21   :  { %v4136_v9 = vadd.f32 %v4135_v8, %v3954_v2  ;;  %v4137_v39 = vpop.f32.mrb[49].mxu1 }
0x1b22   :  { %v4138_v10 = vadd.f32 %v4137_v39, %v3958_v3  ;;  %4231 = vmatprep.mubr.f32.mxu0 %v4141_v38 }
0x1b23   :  { %4232 = vmatmul.mubr.f32.vlgmr.msra.gmra.mrb[34].mxu0 %v4140_v37  ;;  %v4142_v28 = vmax.f32 %v4136_v9, 0.0 }
0x1b24   :  { %v4143_v11 = vmax.f32 %v4138_v10, 0.0 }
0x1b26   :  { %4236 = vmatprep.mubr.f32.mxu0 %v4143_v11 }
0x1b27   :  { %4237 = vmatmul.mubr.f32.gmra.mrb[36].mxu0 %v4142_v28 }
0x1bf6   :  { %v4233_v30 = vpop.f32.mrb[34].mxu0 }
0x1bf7   :  { %v4234_v12 = vadd.f32 %v4479_v29, %v4233_v30  ;;  %v4235_v14 = vpop.f32.mrb[35].mxu0 }
0x1bf9   :  { %v4242_v15 = vadd.f32 %v4234_v12, %v3915_v53 }
0x1bfa   :  { %v4238_v16 = vpop.f32.mrb[36].mxu0 }
0x1bfb   :  { %v4239_v40 = vadd.f32 %v4479_v29, %v4238_v16  ;;  %v4240_v17 = vpop.f32.mrb[37].mxu0  ;;  %v4246_v19 = vsel %vm207_vm0, %v4242_v15, 0.0 }
0x1bfc   :  { %4247 = vadd.xlane.f32.xlu0 %v4246_v19 }
0x1bfd   :  { %v4243_v31 = vadd.f32 %v4239_v40, %v3916_v56 }
0x1bff   :  { %v4249_v0 = vsel %vm207_vm0, %v4243_v31, 0.0 }
0x1c00   :  { %4250 = vadd.xlane.f32.xlu1 %v4249_v0 }
0x1c89   :  { %v4248_v20 = vpop.xlane.xlu0 %4247 }
0x1c8a   :  { %v4252_v22 = vmul.f32 0.015625, %v4248_v20 }
0x1c8c   :  { %v4254_v21 = vsub.f32 %v4242_v15, %v4252_v22 }
0x1c8d   :  { %v4251_v23 = vpop.xlane.xlu1 %4250 }
0x1c8e   :  { %v4253_v18 = vmul.f32 0.015625, %v4251_v23  ;;  %v4256_v24 = vmul.f32 %v4254_v21, %v4254_v21 }
0x1c90   :  { %v4255_v25 = vsub.f32 %v4243_v31, %v4253_v18  ;;  %v4258_v32 = vsel %vm207_vm0, %v4256_v24, 0.0 }
0x1c91   :  { %4259 = vadd.xlane.f32.xlu0 %v4258_v32 }
0x1c92   :  { %v4257_v33 = vmul.f32 %v4255_v25, %v4255_v25 }
0x1c94   :  { %v4261_v34 = vsel %vm207_vm0, %v4257_v33, 0.0 }
0x1c95   :  { %4262 = vadd.xlane.f32.xlu1 %v4261_v34 }
0x1d1e   :  { %v4260_v35 = vpop.xlane.xlu0 %4259 }
0x1d1f   :  { %v4264_v36 = vmul.f32 0.015625, %v4260_v35 }
0x1d21   :  { %v4266_v27 = vadd.f32 1e-05, %v4264_v36 }
0x1d22   :  { %v4263_v26 = vpop.xlane.xlu1 %4262 }
0x1d23   :  { %5321 = vrsqrt.f32 %v4266_v27  ;;  %v4265_v44 = vmul.f32 0.015625, %v4263_v26 }
0x1d25   :  { %v4267_v42 = vadd.f32 1e-05, %v4265_v44 }
0x1d27   :  { %5323 = vrsqrt.f32 %v4267_v42 }
0x1d2d   :  { %v5322_v43 = vpop.eup %5321 }
0x1d2e   :  { %v4270_v46 = vmul.f32 %v5322_v43, %v4254_v21 }
0x1d30   :  { %v4278_v41 = vmul.f32 %v4480_v45, %v4270_v46 }
0x1d31   :  { %v5324_v48 = vpop.eup %5323 }
0x1d32   :  { %v4271_v63 = vmul.f32 %v5324_v48, %v4255_v25  ;;  %v4286_v49 = vadd.f32 %v4481_v47, %v4278_v41 }
0x1d34   :  { %v4279_v50 = vmul.f32 %v4480_v45, %v4271_v63  ;;  %4288 = vst.msk [vmem:[#allocation17] sm:$0xff] %vm207_vm0, %v4286_v49 }
0x1d36   :  { %v4287_v51 = vadd.f32 %v4481_v47, %v4279_v50 }
0x1d38   :  { %4289 = vst.msk [vmem:[#allocation17 + $0x8] sm:$0xff] %vm207_vm0, %v4287_v51 }
0x1d39   :  { %5512 = shalt.err (!%p5509_p12)
}
0x1d3a   :  { %s6770_s13 = sld [smem:[#allocation35_spill]] }
0x1d40   :  { %s5513_s6 = scalar_lea.hbm %s6770_s13, 256 }
0x1d41   :  { %p5514_p13 = scmp.ne.s32.totalorder %s6770_s13, %s5513_s6  ;;  %p5517_p0 = scmp.lt.u32.totalorder %s5513_s6, %s6770_s13 }
0x1d43   :  { %p5519_p1 = pnand %p5517_p0, %p5514_p13 }
0x1d45   :  { %5522 = shalt.err (!%p5519_p1)
}
0x1d46   :  { %4301 = dma.vmem_to_hbm [thread:$0]  %s4296_s7, 256, %s6770_s13, [#allocation5], %s5537_s5, %s5537_s5, %s5538_s0  }
0x1d47   :  { %5533 = dma.done.wait [#allocation5], 256  }
0x1d48   :  { %5534 = vsyncadd [#allocation5], 4294967040 }
0x1d49   :  { %4305 = vsyncpa [#allocation4], 1 }
0x1d4a   :  { %4306 = vsyncpa [#allocation7], 1 }
0x1d4b   :  { %4307 = vsyncpa [#allocation10], 1 }
0x1d4c   :  { %4308 = vsyncpa [#allocation13], 1 }
0x1d4d   :  { %4309 = vsyncpa [#allocation16], 1 }
0x1d4e   :  { %4310 = vsyncpa [#allocation5], 1 }

</bundles_post_ra>
